<compile_context>
chip_gen: v6e
topology: v6e:2x2x1
jax: 0.10.0
libtpu: 0.0.40
codegen_flags: <defaults>
</compile_context>

<pallas_src>
import numpy as np
import jax
import jax.numpy as jnp
from jax import lax
from jax.experimental import pallas as pl
from jax.experimental.pallas import tpu as pltpu

EPS = 1e-5
CI = 512                      # backbone output channels
CO = 256                      # head conv output channels
KH = KW = 4                   # max head kernel extent
TAPS_PER_TILE = 4
KT = TAPS_PER_TILE * CI       # 2048-wide K tile (4 taps)

N_GRAPHEME, N_VOWEL, N_CONSONANT = 168, 11, 7
N_CLS = N_GRAPHEME + N_VOWEL + N_CONSONANT     # 186
NLANES = 256                                   # lane-dense padded classifier output width

# name: ((kh, kw), (pool_h, pool_w)) -- order matters: first 3 feed g_cls, last 5 feed vc_cls.
BRANCH_CFG = {
    "g_s":   ((2, 2), (3, 5)),
    "g_m":   ((3, 3), (2, 4)),
    "g_l":   ((4, 4), (1, 3)),
    "vc_sq": ((2, 2), (3, 5)),
    "vc_vs": ((3, 2), (2, 5)),
    "vc_vl": ((4, 3), (1, 4)),
    "vc_hs": ((2, 3), (3, 4)),
    "vc_hl": ((2, 4), (3, 3)),
}
NB = len(BRANCH_CFG)

# ResNet34 static layer config: (c_in, c_out, n_blocks, first_stride)
RESNET_CFG = [(64, 64, 3, 1), (64, 128, 4, 2), (128, 256, 6, 2), (256, 512, 3, 2)]


# ----------------------------------------------------------------------------
# Static per-branch K-tile schedule (real taps only, padded to 4-tap tiles)
# ----------------------------------------------------------------------------
def _build_schedule():
    sched = []                       # (branch_idx, dh, dw, is_real) per 512-wide K slab
    st_tile, nkt = [], []
    for bi, (_name, ((kh, kw), _pool)) in enumerate(BRANCH_CFG.items()):
        taps = [(dh, dw) for dh in range(kh) for dw in range(kw)]
        ntp = -(-len(taps) // TAPS_PER_TILE) * TAPS_PER_TILE
        st_tile.append(len(sched) // TAPS_PER_TILE)
        nkt.append(ntp // TAPS_PER_TILE)
        for j in range(ntp):
            if j < len(taps):
                sched.append((bi, taps[j][0], taps[j][1], 1))
            else:
                sched.append((bi, 0, 0, 0))            # dummy tap: weights are exactly zero
    return sched, np.asarray(st_tile, np.int32), np.asarray(nkt, np.int32)


SCHED, ST_TILE_NP, NKT_NP = _build_schedule()
NTAP_TOTAL = len(SCHED)                                      # 72 (vs 128 fully padded)
SCHED_TAP_IDX = np.asarray([dh * KW + dw for (_b, dh, dw, _r) in SCHED], np.int32)
NKT_MAX = int(NKT_NP.max())                                  # 4


# ----------------------------------------------------------------------------
# Pallas kernels
# ----------------------------------------------------------------------------
def heads_kernel(st_ref, nkt_ref,                      # scalar prefetch (SMEM int32, (NB,))
                 a_ref, ic_ref,                        # SMEM f32, (NB,)
                 p_ref, w_ref, b_ref, g_ref, bt_ref, m_ref, wp_ref,
                 o_ref, acc_ref):
    del st_ref                                         # only used by the index_maps
    b = pl.program_id(0)
    t = pl.program_id(1)
    nk = nkt_ref[b]

    @pl.when(t == 0)
    def _():
        acc_ref[...] = jnp.zeros_like(acc_ref)

    @pl.when(t < nk)                                   # skip clamped tail K-tiles
    def _():
        acc_ref[...] += jnp.dot(p_ref[...], w_ref[...],
                                preferred_element_type=jnp.float32)

    @pl.when(t == nk - 1)                              # branch epilogue on last real K-tile
    def _():
        y = acc_ref[...] + b_ref[0]                    # conv bias
        a = a_ref[b]                                   # PReLU single parameter
        y = jnp.where(y >= 0.0, y, a * y)
        msk = m_ref[0]                                 # (Mmax, 1) valid conv output rows
        inv_n = ic_ref[b]                              # 1 / (B*oh*ow)
        mu = jnp.sum(y * msk, axis=0, keepdims=True) * inv_n
        d = (y - mu) * msk
        var = jnp.sum(d * d, axis=0, keepdims=True) * inv_n
        y = (y - mu) * lax.rsqrt(var + EPS) * g_ref[0] + bt_ref[0]
        # AvgPool2d (floor mode, single output window) as a tiny pooling-matrix matmul;
        # invalid / dropped positions carry zero pooling weight.
        o_ref[...] = jnp.dot(wp_ref[0], y, preferred_element_type=jnp.float32)[None]


def cls_kernel(p_ref, w_ref, b_ref, g_ref, bt_ref, o_ref):
    """Fused g_cls + vc_cls: branch sums + single bf16 Linear + BatchNorm1d(train)."""
    p = p_ref[...]                                     # (8, B, 256): 0..2 -> g, 3..7 -> vc
    xg = jnp.sum(p[:3], axis=0)                        # (B, 256)
    xvc = jnp.sum(p[3:], axis=0)                       # (B, 256)
    x = jnp.concatenate([xg, xvc], axis=-1).astype(jnp.bfloat16)   # (B, 512)
    y = jnp.dot(x, w_ref[...], preferred_element_type=jnp.float32) + b_ref[...]
    mu = jnp.mean(y, axis=0, keepdims=True)
    var = jnp.mean((y - mu) ** 2, axis=0, keepdims=True)
    o_ref[...] = (y - mu) * lax.rsqrt(var + EPS) * g_ref[...] + bt_ref[...]


# ----------------------------------------------------------------------------
# Pallas wrappers
# ----------------------------------------------------------------------------
def heads_pallas(packed, P_cat, B, Mmax):
    return pl.pallas_call(
        heads_kernel,
        out_shape=jax.ShapeDtypeStruct((NB, B, CO), jnp.float32),
        grid_spec=pltpu.PrefetchScalarGridSpec(
            num_scalar_prefetch=2,
            grid=(NB, NKT_MAX),
            in_specs=[
                pl.BlockSpec(memory_space=pltpu.MemorySpace.SMEM),   # PReLU a     (NB,)
                pl.BlockSpec(memory_space=pltpu.MemorySpace.SMEM),   # 1/BN-count  (NB,)
                pl.BlockSpec((Mmax, KT),                             # schedule-packed patches
                             lambda b, t, st, nk: (0, st[b] + jnp.minimum(t, nk[b] - 1))),
                pl.BlockSpec((KT, CO),                               # schedule-packed weights
                             lambda b, t, st, nk: (st[b] + jnp.minimum(t, nk[b] - 1), 0)),
                pl.BlockSpec((1, 1, CO), lambda b, t, st, nk: (b, 0, 0)),    # conv bias
                pl.BlockSpec((1, 1, CO), lambda b, t, st, nk: (b, 0, 0)),    # BN gamma
                pl.BlockSpec((1, 1, CO), lambda b, t, st, nk: (b, 0, 0)),    # BN beta
                pl.BlockSpec((1, Mmax, 1), lambda b, t, st, nk: (b, 0, 0)),  # valid-row mask
                pl.BlockSpec((1, B, Mmax), lambda b, t, st, nk: (b, 0, 0)),  # pooling matrix
            ],
            out_specs=pl.BlockSpec((1, B, CO), lambda b, t, st, nk: (b, 0, 0)),
            scratch_shapes=[pltpu.VMEM((Mmax, CO), jnp.float32)],
        ),
        compiler_params=pltpu.CompilerParams(
            dimension_semantics=("parallel", "arbitrary")),
    )(packed["st_tile"], packed["nkt"], packed["a"], packed["inv_cnt"],
      P_cat, packed["w"], packed["bias"], packed["gamma"], packed["beta"],
      packed["mask"], packed["pool"])


def classifier_pallas(pooled, w_cls, b_c, g_c, bt_c):
    nb, B, C = pooled.shape
    n = w_cls.shape[1]
    return pl.pallas_call(
        cls_kernel,
        out_shape=jax.ShapeDtypeStruct((B, n), jnp.float32),
        grid_spec=pltpu.PrefetchScalarGridSpec(
            num_scalar_prefetch=0,
            grid=(1,),
            in_specs=[
                pl.BlockSpec((nb, B, C), lambda i: (0, 0, 0)),
                pl.BlockSpec((2 * C, n), lambda i: (0, 0)),
                pl.BlockSpec((1, n), lambda i: (0, 0)),
                pl.BlockSpec((1, n), lambda i: (0, 0)),
                pl.BlockSpec((1, n), lambda i: (0, 0)),
            ],
            out_specs=pl.BlockSpec((B, n), lambda i: (0, 0)),
        ),
        compiler_params=pltpu.CompilerParams(dimension_semantics=("arbitrary",)),
    )(pooled, w_cls, b_c, g_c, bt_c)


# ----------------------------------------------------------------------------
# resnet34 feature extractor (children[:8]) in plain JAX, train-mode BN, bf16 convs
# ----------------------------------------------------------------------------
def conv2d(x, w, stride, pad):
    return lax.conv_general_dilated(
        x.astype(jnp.bfloat16), w.astype(jnp.bfloat16), (stride, stride),
        [(pad, pad), (pad, pad)],
        dimension_numbers=("NCHW", "OIHW", "NCHW"),
        preferred_element_type=jnp.float32)


def bn2d_train(x, gamma, beta):
    mu = jnp.mean(x, axis=(0, 2, 3), keepdims=True)
    var = jnp.mean((x - mu) ** 2, axis=(0, 2, 3), keepdims=True)
    return (x - mu) * lax.rsqrt(var + EPS) * gamma.reshape(1, -1, 1, 1) + beta.reshape(1, -1, 1, 1)


def init_conv(key, co, ci, kh, kw):
    fan_in = ci * kh * kw
    return jax.random.normal(key, (co, ci, kh, kw), jnp.float32) * np.sqrt(2.0 / fan_in)


def make_resnet34_params(key):
    keys = iter(jax.random.split(key, 64))
    p = {"conv1": init_conv(next(keys), 64, 3, 7, 7),
         "bn1": (jnp.ones(64, jnp.float32), jnp.zeros(64, jnp.float32))}
    layers = []
    for cin, cout, nblocks, stride in RESNET_CFG:
        blocks = []
        for i in range(nblocks):
            s = stride if i == 0 else 1
            ci = cin if i == 0 else cout
            blk = {
                "conv1": init_conv(next(keys), cout, ci, 3, 3),
                "bn1": (jnp.ones(cout, jnp.float32), jnp.zeros(cout, jnp.float32)),
                "conv2": init_conv(next(keys), cout, cout, 3, 3),
                "bn2": (jnp.ones(cout, jnp.float32), jnp.zeros(cout, jnp.float32)),
            }
            if s != 1 or ci != cout:
                blk["down_conv"] = init_conv(next(keys), cout, ci, 1, 1)
                blk["down_bn"] = (jnp.ones(cout, jnp.float32), jnp.zeros(cout, jnp.float32))
            blocks.append(blk)                 # NOTE: strides are static config, not pytree leaves
        layers.append(blocks)
    p["layers"] = layers
    return p


def basic_block(x, blk, stride):
    out = conv2d(x, blk["conv1"], stride, 1)
    out = jax.nn.relu(bn2d_train(out, *blk["bn1"]))
    out = conv2d(out, blk["conv2"], 1, 1)
    out = bn2d_train(out, *blk["bn2"])
    if "down_conv" in blk:
        idn = bn2d_train(conv2d(x, blk["down_conv"], stride, 0), *blk["down_bn"])
    else:
        idn = x
    return jax.nn.relu(out + idn)


def resnet34_features(x, p):
    x = conv2d(x, p["conv1"], 2, 3)
    x = jax.nn.relu(bn2d_train(x, *p["bn1"]))
    x = lax.reduce_window(x, -jnp.inf, lax.max, (1, 1, 3, 3), (1, 1, 2, 2),
                          [(0, 0), (0, 0), (1, 1), (1, 1)])
    for blocks, (_cin, _cout, _nb, stride) in zip(p["layers"], RESNET_CFG):
        for i, blk in enumerate(blocks):
            x = basic_block(x, blk, stride if i == 0 else 1)
    return x   # (B, 512, 4, 7) for a (B, 3, 128, 224) input


# ----------------------------------------------------------------------------
# Head parameters (deterministic init) + one-time packing (outside jit)
# ----------------------------------------------------------------------------
def make_head_params(key):
    keys = iter(jax.random.split(key, 64))
    head = {}
    for name, ((kh, kw), _pool) in BRANCH_CFG.items():
        head[name] = {
            "w": init_conv(next(keys), CO, CI, kh, kw),
            "b": jax.random.normal(next(keys), (CO,), jnp.float32) * 0.01,
            "a": jnp.float32(0.25),   # PReLU default init
            "gamma": 1.0 + 0.1 * jax.random.normal(next(keys), (CO,), jnp.float32),
            "beta": 0.1 * jax.random.normal(next(keys), (CO,), jnp.float32),
        }
    for name, n_out in (("g_cls", N_GRAPHEME), ("vc_cls", N_VOWEL + N_CONSONANT)):
        head[name] = {
            "w": jax.random.normal(next(keys), (CO, n_out), jnp.float32) / np.sqrt(CO),
            "b": jax.random.normal(next(keys), (n_out,), jnp.float32) * 0.01,
            "gamma": 1.0 + 0.1 * jax.random.normal(next(keys), (n_out,), jnp.float32),
            "beta": 0.1 * jax.random.normal(next(keys), (n_out,), jnp.float32),
        }
    return head


def pack_params(head_params, B, Hf, Wf):
    """One-time (outside jit) packing of all head/classifier weights and epilogue constants."""
    OHc, OWc = Hf - 1, Wf - 1
    M = B * OHc * OWc
    Mmax = ((M + 15) // 16) * 16          # bf16 sublane packing: multiple of 16
    names = list(BRANCH_CFG.keys())

    # Schedule-packed conv weights: one (CI, CO) slab per schedule slot (zeros for dummy taps).
    w_host = {n: np.asarray(head_params[n]["w"], np.float32) for n in names}
    slabs = []
    for (bi, dh, dw, real) in SCHED:
        if real:
            slabs.append(np.ascontiguousarray(w_host[names[bi]][:, :, dh, dw].T))  # (CI, CO)
        else:
            slabs.append(np.zeros((CI, CO), np.float32))
    W_packed = jnp.asarray(np.concatenate(slabs, axis=0), dtype=jnp.bfloat16)  # (NTAP_TOTAL*CI, CO)

    bias = np.stack([np.asarray(head_params[n]["b"], np.float32).reshape(1, CO) for n in names])
    gamma = np.stack([np.asarray(head_params[n]["gamma"], np.float32).reshape(1, CO) for n in names])
    beta = np.stack([np.asarray(head_params[n]["beta"], np.float32).reshape(1, CO) for n in names])
    a_vec = np.asarray([float(head_params[n]["a"]) for n in names], np.float32)

    inv_cnt = np.zeros((NB,), np.float32)
    mask = np.zeros((NB, Mmax, 1), np.float32)
    pool = np.zeros((NB, B, Mmax), np.float32)
    for bi, (_name, ((kh, kw), (ph, pw))) in enumerate(BRANCH_CFG.items()):
        oh, ow = Hf - kh + 1, Wf - kw + 1
        inv_cnt[bi] = 1.0 / (B * oh * ow)
        for bb in range(B):
            for hh in range(OHc):
                for ww in range(OWc):
                    m = (bb * OHc + hh) * OWc + ww
                    if hh < oh and ww < ow:           # valid conv output position -> BN stats
                        mask[bi, m, 0] = 1.0
                    if hh < ph and ww < pw:           # inside the single AvgPool window
                        pool[bi, bb, m] = 1.0 / (ph * pw)

    # Classifier: single packed (512, 256) bf16 weight (rows 0..255 act on the g-sum,
    # rows 256..511 on the vc-sum), lane-dense 256-wide padded outputs.
    gc, vc = head_params["g_cls"], head_params["vc_cls"]
    w_cls = np.zeros((2 * CO, NLANES), np.float32)
    w_cls[:CO, :N_GRAPHEME] = np.asarray(gc["w"], np.float32)
    w_cls[CO:, N_GRAPHEME:N_CLS] = np.asarray(vc["w"], np.float32)

    def _pack_vec(kname):
        v = np.zeros((1, NLANES), np.float32)
        v[0, :N_GRAPHEME] = np.asarray(gc[kname], np.float32)
        v[0, N_GRAPHEME:N_CLS] = np.asarray(vc[kname], np.float32)
        return v

    return dict(
        st_tile=jnp.asarray(ST_TILE_NP), nkt=jnp.asarray(NKT_NP),
        a=jnp.asarray(a_vec), inv_cnt=jnp.asarray(inv_cnt),
        w=W_packed,
        bias=jnp.asarray(bias), gamma=jnp.asarray(gamma), beta=jnp.asarray(beta),
        mask=jnp.asarray(mask), pool=jnp.asarray(pool),
        w_cls=jnp.asarray(w_cls, dtype=jnp.bfloat16),
        b_cls=jnp.asarray(_pack_vec("b")),
        g_cls=jnp.asarray(_pack_vec("gamma")),
        bt_cls=jnp.asarray(_pack_vec("beta")),
    )


# ----------------------------------------------------------------------------
# Full forward
# ----------------------------------------------------------------------------
def forward(x, backbone_params, packed):
    feat = resnet34_features(x, backbone_params)          # (B, 512, Hf, Wf) = (B, 512, 4, 7)
    B, _C, Hf, Wf = feat.shape
    OHc, OWc = Hf - 1, Wf - 1                             # common output grid (2x2 kernel grid)
    M = B * OHc * OWc
    Mmax = ((M + 15) // 16) * 16

    # Schedule-aligned im2col: one 512-wide column slab per schedule slot (taps duplicated
    # across branches; dummy slots gather tap 0 but their weights are exactly zero).
    feat_p = jnp.pad(feat, ((0, 0), (0, 0), (0, KH - 1), (0, KW - 1)))
    taps = jnp.stack([feat_p[:, :, dh:dh + OHc, dw:dw + OWc]
                      for dh in range(KH) for dw in range(KW)], axis=-1)   # (B, C, OHc, OWc, 16)
    taps = taps.transpose(0, 2, 3, 4, 1).reshape(M, KH * KW, CI)           # (M, 16, 512)
    P_cat = jnp.take(taps, jnp.asarray(SCHED_TAP_IDX), axis=1).reshape(M, NTAP_TOTAL * CI)
    P_cat = jnp.pad(P_cat, ((0, Mmax - M), (0, 0))).astype(jnp.bfloat16)   # (Mmax, 36864)

    pooled = heads_pallas(packed, P_cat, B, Mmax)                          # (8, B, 256) f32

    out = classifier_pallas(pooled, packed["w_cls"], packed["b_cls"],
                            packed["g_cls"], packed["bt_cls"])             # (B, 256)
    x_g = out[:, :N_GRAPHEME]
    x_vc = out[:, N_GRAPHEME:N_CLS]
    return x_g, x_vc[:, :N_VOWEL], x_vc[:, N_VOWEL:]   # matches torch.split((11, 7), dim=1)


if __name__ == "__main__":
    key = jax.random.PRNGKey(0)
    k_img, k_bb, k_head = jax.random.split(key, 3)

    B = 2
    # Smallest image size for which the head pooling geometry closes to (1, 1): feature map (4, 7).
    x = jax.random.normal(k_img, (B, 3, 128, 224), jnp.float32)

    backbone_params = make_resnet34_params(k_bb)
    head_params = make_head_params(k_head)

    feat_shape = jax.eval_shape(resnet34_features,
                                jax.ShapeDtypeStruct(x.shape, x.dtype), backbone_params).shape
    packed = pack_params(head_params, B, int(feat_shape[2]), int(feat_shape[3]))

    fwd = jax.jit(forward)
    x_g, x_v, x_c = fwd(x, backbone_params, packed)
    jax.block_until_ready((x_g, x_v, x_c))

    assert x_g.shape == (B, N_GRAPHEME)
    assert x_v.shape == (B, N_VOWEL)
    assert x_c.shape == (B, N_CONSONANT)
    assert bool(jnp.all(jnp.isfinite(x_g))) and bool(jnp.all(jnp.isfinite(x_v))) \
        and bool(jnp.all(jnp.isfinite(x_c)))

    print("KERNEL_OK")
</pallas_src>

<mosaic_0001>
module attributes {stable_mosaic.version = 11 : i64} {
  func.func @heads_kernel(%arg0: i32, %arg1: i32, %arg2: memref<8xi32, #tpu.memory_space<smem>>, %arg3: memref<8xi32, #tpu.memory_space<smem>>, %arg4: memref<8xf32, #tpu.memory_space<smem>>, %arg5: memref<8xf32, #tpu.memory_space<smem>>, %arg6: memref<48x2048xbf16, #tpu.memory_space<vmem>>, %arg7: memref<2048x256xbf16, #tpu.memory_space<vmem>>, %arg8: memref<1x1x256xf32, #tpu.memory_space<vmem>>, %arg9: memref<1x1x256xf32, #tpu.memory_space<vmem>>, %arg10: memref<1x1x256xf32, #tpu.memory_space<vmem>>, %arg11: memref<1x48x1xf32, #tpu.memory_space<vmem>>, %arg12: memref<1x2x48xf32, #tpu.memory_space<vmem>>, %arg13: memref<1x2x256xf32, #tpu.memory_space<vmem>>, %arg14: memref<48x256xf32, #tpu.memory_space<vmem>>) attributes {dimension_semantics = [#tpu.dimension_semantics<parallel>, #tpu.dimension_semantics<arbitrary>], iteration_bounds = array<i64: 8, 4>, scalar_prefetch = 2 : i64, scratch_operands = 1 : i64, tpu.core_type = #tpu.core_type<tc>, window_params = [{transform_indices = @transform_0, window_bounds = array<i64: 8>}, {transform_indices = @transform_1, window_bounds = array<i64: 8>}, {transform_indices = @transform_2, window_bounds = array<i64: 48, 2048>}, {transform_indices = @transform_3, window_bounds = array<i64: 2048, 256>}, {transform_indices = @transform_4, window_bounds = array<i64: 1, 1, 256>}, {transform_indices = @transform_5, window_bounds = array<i64: 1, 1, 256>}, {transform_indices = @transform_6, window_bounds = array<i64: 1, 1, 256>}, {transform_indices = @transform_7, window_bounds = array<i64: 1, 48, 1>}, {transform_indices = @transform_8, window_bounds = array<i64: 1, 2, 48>}, {transform_indices = @transform_9, window_bounds = array<i64: 1, 2, 256>}]} {
    %0 = arith.index_cast %arg0 : i32 to index
    %1 = memref.load %arg3[%0] : memref<8xi32, #tpu.memory_space<smem>>
    %c0_i32 = arith.constant 0 : i32
    %2 = arith.cmpi eq, %arg1, %c0_i32 : i32
    %3 = arith.extui %2 : i1 to i32
    %c0_i32_0 = arith.constant 0 : i32
    %4 = arith.cmpi ne, %3, %c0_i32_0 : i32
    scf.if %4 {
      %cst = arith.constant 0.000000e+00 : f32
      %12 = vector.broadcast %cst : f32 to vector<48x256xf32>
      %c0 = arith.constant 0 : index
      %c0_3 = arith.constant 0 : index
      %13 = vector.load %arg14[%c0, %c0_3] : memref<48x256xf32, #tpu.memory_space<vmem>>, vector<48x256xf32>
      tpu.vector_store %arg14[%c0, %c0_3], %12 {strides = array<i32>} : memref<48x256xf32, #tpu.memory_space<vmem>>, vector<48x256xf32>,
    } else {
    }
    %5 = arith.cmpi slt, %arg1, %1 : i32
    %6 = arith.extui %5 : i1 to i32
    %c0_i32_1 = arith.constant 0 : i32
    %7 = arith.cmpi ne, %6, %c0_i32_1 : i32
    scf.if %7 {
      %c0 = arith.constant 0 : index
      %c0_3 = arith.constant 0 : index
      %12 = vector.load %arg14[%c0, %c0_3] : memref<48x256xf32, #tpu.memory_space<vmem>>, vector<48x256xf32>
      %c0_4 = arith.constant 0 : index
      %c0_5 = arith.constant 0 : index
      %13 = vector.load %arg6[%c0_4, %c0_5] : memref<48x2048xbf16, #tpu.memory_space<vmem>>, vector<48x2048xbf16>
      %c0_6 = arith.constant 0 : index
      %c0_7 = arith.constant 0 : index
      %14 = vector.load %arg7[%c0_6, %c0_7] : memref<2048x256xbf16, #tpu.memory_space<vmem>>, vector<2048x256xbf16>
      %cst = arith.constant dense<0.000000e+00> : vector<48x256xf32>
      %15 = tpu.matmul %13, %14, %cst {dimension_numbers = #tpu.dot_dimension_numbers<[1], [0], [0], [1], [0, 0, 1, 1], [], []>} : vector<48x2048xbf16>, vector<2048x256xbf16>, vector<48x256xf32> -> vector<48x256xf32>
      %16 = arith.addf %12, %15 : vector<48x256xf32>
      %c0_8 = arith.constant 0 : index
      %c0_9 = arith.constant 0 : index
      %17 = vector.load %arg14[%c0_8, %c0_9] : memref<48x256xf32, #tpu.memory_space<vmem>>, vector<48x256xf32>
      tpu.vector_store %arg14[%c0_8, %c0_9], %16 {strides = array<i32>} : memref<48x256xf32, #tpu.memory_space<vmem>>, vector<48x256xf32>,
    } else {
    }
    %c1_i32 = arith.constant 1 : i32
    %8 = arith.subi %1, %c1_i32 : i32
    %9 = arith.cmpi eq, %arg1, %8 : i32
    %10 = arith.extui %9 : i1 to i32
    %c0_i32_2 = arith.constant 0 : i32
    %11 = arith.cmpi ne, %10, %c0_i32_2 : i32
    scf.if %11 {
      %c0 = arith.constant 0 : index
      %c0_3 = arith.constant 0 : index
      %12 = vector.load %arg14[%c0, %c0_3] : memref<48x256xf32, #tpu.memory_space<vmem>>, vector<48x256xf32>
      %c0_4 = arith.constant 0 : index
      %c0_5 = arith.constant 0 : index
      %c0_6 = arith.constant 0 : index
      %13 = vector.load %arg8[%c0_4, %c0_5, %c0_6] : memref<1x1x256xf32, #tpu.memory_space<vmem>>, vector<1x1x256xf32>
      %14 = vector.shape_cast %13 : vector<1x1x256xf32> to vector<1x256xf32>
      %15 = vector.broadcast %14 : vector<1x256xf32> to vector<48x256xf32>
      %16 = arith.addf %12, %15 : vector<48x256xf32>
      %17 = arith.index_cast %arg0 : i32 to index
      %18 = memref.load %arg4[%17] : memref<8xf32, #tpu.memory_space<smem>>
      %cst = arith.constant 0.000000e+00 : f32
      %19 = vector.broadcast %cst : f32 to vector<48x256xf32>
      %20 = arith.cmpf oge, %16, %19 : vector<48x256xf32>
      %21 = vector.broadcast %18 : f32 to vector<48x256xf32>
      %22 = arith.mulf %21, %16 : vector<48x256xf32>
      %23 = arith.select %20, %16, %22 : vector<48x256xi1>, vector<48x256xf32>
      %c0_7 = arith.constant 0 : index
      %c0_8 = arith.constant 0 : index
      %c0_9 = arith.constant 0 : index
      %24 = vector.load %arg11[%c0_7, %c0_8, %c0_9] : memref<1x48x1xf32, #tpu.memory_space<vmem>>, vector<1x48x1xf32>
      %25 = vector.shape_cast %24 : vector<1x48x1xf32> to vector<48x1xf32>
      %26 = arith.index_cast %arg0 : i32 to index
      %27 = memref.load %arg5[%26] : memref<8xf32, #tpu.memory_space<smem>>
      %28 = vector.broadcast %25 : vector<48x1xf32> to vector<48x256xf32>
      %29 = arith.mulf %23, %28 : vector<48x256xf32>
      %cst_10 = arith.constant dense<0.000000e+00> : vector<256xf32>
      %30 = vector.multi_reduction <add>, %29, %cst_10 [0] : vector<48x256xf32> to vector<256xf32>
      %31 = vector.shape_cast %30 : vector<256xf32> to vector<1x256xf32>
      %32 = vector.broadcast %27 : f32 to vector<1x256xf32>
      %33 = arith.mulf %31, %32 : vector<1x256xf32>
      %34 = vector.broadcast %33 : vector<1x256xf32> to vector<48x256xf32>
      %35 = arith.subf %23, %34 : vector<48x256xf32>
      %36 = vector.broadcast %25 : vector<48x1xf32> to vector<48x256xf32>
      %37 = arith.mulf %35, %36 : vector<48x256xf32>
      %38 = arith.mulf %37, %37 : vector<48x256xf32>
      %cst_11 = arith.constant dense<0.000000e+00> : vector<256xf32>
      %39 = vector.multi_reduction <add>, %38, %cst_11 [0] : vector<48x256xf32> to vector<256xf32>
      %40 = vector.shape_cast %39 : vector<256xf32> to vector<1x256xf32>
      %41 = vector.broadcast %27 : f32 to vector<1x256xf32>
      %42 = arith.mulf %40, %41 : vector<1x256xf32>
      %43 = vector.broadcast %33 : vector<1x256xf32> to vector<48x256xf32>
      %44 = arith.subf %23, %43 : vector<48x256xf32>
      %cst_12 = arith.constant 9.99999974E-6 : f32
      %45 = vector.broadcast %cst_12 : f32 to vector<1x256xf32>
      %46 = arith.addf %42, %45 : vector<1x256xf32>
      %47 = math.rsqrt %46 : vector<1x256xf32>
      %48 = vector.broadcast %47 : vector<1x256xf32> to vector<48x256xf32>
      %49 = arith.mulf %44, %48 : vector<48x256xf32>
      %c0_13 = arith.constant 0 : index
      %c0_14 = arith.constant 0 : index
      %c0_15 = arith.constant 0 : index
      %50 = vector.load %arg9[%c0_13, %c0_14, %c0_15] : memref<1x1x256xf32, #tpu.memory_space<vmem>>, vector<1x1x256xf32>
      %51 = vector.shape_cast %50 : vector<1x1x256xf32> to vector<1x256xf32>
      %52 = vector.broadcast %51 : vector<1x256xf32> to vector<48x256xf32>
      %53 = arith.mulf %49, %52 : vector<48x256xf32>
      %c0_16 = arith.constant 0 : index
      %c0_17 = arith.constant 0 : index
      %c0_18 = arith.constant 0 : index
      %54 = vector.load %arg10[%c0_16, %c0_17, %c0_18] : memref<1x1x256xf32, #tpu.memory_space<vmem>>, vector<1x1x256xf32>
      %55 = vector.shape_cast %54 : vector<1x1x256xf32> to vector<1x256xf32>
      %56 = vector.broadcast %55 : vector<1x256xf32> to vector<48x256xf32>
      %57 = arith.addf %53, %56 : vector<48x256xf32>
      %c0_19 = arith.constant 0 : index
      %c0_20 = arith.constant 0 : index
      %c0_21 = arith.constant 0 : index
      %58 = vector.load %arg12[%c0_19, %c0_20, %c0_21] : memref<1x2x48xf32, #tpu.memory_space<vmem>>, vector<1x2x48xf32>
      %59 = vector.shape_cast %58 : vector<1x2x48xf32> to vector<2x48xf32>
      %cst_22 = arith.constant dense<0.000000e+00> : vector<2x256xf32>
      %60 = tpu.matmul %59, %57, %cst_22 {dimension_numbers = #tpu.dot_dimension_numbers<[1], [0], [0], [1], [0, 0, 1, 1], [], []>} : vector<2x48xf32>, vector<48x256xf32>, vector<2x256xf32> -> vector<2x256xf32>
      %61 = vector.shape_cast %60 : vector<2x256xf32> to vector<1x2x256xf32>
      %c0_23 = arith.constant 0 : index
      %c0_24 = arith.constant 0 : index
      %c0_25 = arith.constant 0 : index
      %62 = vector.load %arg13[%c0_23, %c0_24, %c0_25] : memref<1x2x256xf32, #tpu.memory_space<vmem>>, vector<1x2x256xf32>
      tpu.vector_store %arg13[%c0_23, %c0_24, %c0_25], %61 {strides = array<i32>} : memref<1x2x256xf32, #tpu.memory_space<vmem>>, vector<1x2x256xf32>,
    } else {
    }
    return
  }
  func.func @transform_0(%arg0: i32, %arg1: i32, %arg2: memref<8xi32, #tpu.memory_space<smem>>, %arg3: memref<8xi32, #tpu.memory_space<smem>>) -> i32 {
    %c0_i32 = arith.constant 0 : i32
    %c0_i32_0 = arith.constant 0 : i32
    return %c0_i32 : i32
  }
  func.func @transform_1(%arg0: i32, %arg1: i32, %arg2: memref<8xi32, #tpu.memory_space<smem>>, %arg3: memref<8xi32, #tpu.memory_space<smem>>) -> i32 {
    %c0_i32 = arith.constant 0 : i32
    %c0_i32_0 = arith.constant 0 : i32
    return %c0_i32 : i32
  }
  func.func @transform_2(%arg0: i32, %arg1: i32, %arg2: memref<8xi32, #tpu.memory_space<smem>>, %arg3: memref<8xi32, #tpu.memory_space<smem>>) -> (i32, i32) {
    %0 = arith.index_cast %arg0 : i32 to index
    %1 = memref.load %arg2[%0] : memref<8xi32, #tpu.memory_space<smem>>
    %2 = arith.index_cast %arg0 : i32 to index
    %3 = memref.load %arg3[%2] : memref<8xi32, #tpu.memory_space<smem>>
    %c1_i32 = arith.constant 1 : i32
    %4 = arith.subi %3, %c1_i32 : i32
    %5 = arith.minsi %arg1, %4 : i32
    %6 = arith.addi %1, %5 : i32
    %c0_i32 = arith.constant 0 : i32
    %c0_i32_0 = arith.constant 0 : i32
    return %c0_i32, %6 : i32, i32
  }
  func.func @transform_3(%arg0: i32, %arg1: i32, %arg2: memref<8xi32, #tpu.memory_space<smem>>, %arg3: memref<8xi32, #tpu.memory_space<smem>>) -> (i32, i32) {
    %0 = arith.index_cast %arg0 : i32 to index
    %1 = memref.load %arg2[%0] : memref<8xi32, #tpu.memory_space<smem>>
    %2 = arith.index_cast %arg0 : i32 to index
    %3 = memref.load %arg3[%2] : memref<8xi32, #tpu.memory_space<smem>>
    %c1_i32 = arith.constant 1 : i32
    %4 = arith.subi %3, %c1_i32 : i32
    %5 = arith.minsi %arg1, %4 : i32
    %6 = arith.addi %1, %5 : i32
    %c0_i32 = arith.constant 0 : i32
    %c0_i32_0 = arith.constant 0 : i32
    return %6, %c0_i32 : i32, i32
  }
  func.func @transform_4(%arg0: i32, %arg1: i32, %arg2: memref<8xi32, #tpu.memory_space<smem>>, %arg3: memref<8xi32, #tpu.memory_space<smem>>) -> (i32, i32, i32) {
    %c0_i32 = arith.constant 0 : i32
    %c0_i32_0 = arith.constant 0 : i32
    %c0_i32_1 = arith.constant 0 : i32
    return %arg0, %c0_i32, %c0_i32_0 : i32, i32, i32
  }
  func.func @transform_5(%arg0: i32, %arg1: i32, %arg2: memref<8xi32, #tpu.memory_space<smem>>, %arg3: memref<8xi32, #tpu.memory_space<smem>>) -> (i32, i32, i32) {
    %c0_i32 = arith.constant 0 : i32
    %c0_i32_0 = arith.constant 0 : i32
    %c0_i32_1 = arith.constant 0 : i32
    return %arg0, %c0_i32, %c0_i32_0 : i32, i32, i32
  }
  func.func @transform_6(%arg0: i32, %arg1: i32, %arg2: memref<8xi32, #tpu.memory_space<smem>>, %arg3: memref<8xi32, #tpu.memory_space<smem>>) -> (i32, i32, i32) {
    %c0_i32 = arith.constant 0 : i32
    %c0_i32_0 = arith.constant 0 : i32
    %c0_i32_1 = arith.constant 0 : i32
    return %arg0, %c0_i32, %c0_i32_0 : i32, i32, i32
  }
  func.func @transform_7(%arg0: i32, %arg1: i32, %arg2: memref<8xi32, #tpu.memory_space<smem>>, %arg3: memref<8xi32, #tpu.memory_space<smem>>) -> (i32, i32, i32) {
    %c0_i32 = arith.constant 0 : i32
    %c0_i32_0 = arith.constant 0 : i32
    %c0_i32_1 = arith.constant 0 : i32
    return %arg0, %c0_i32, %c0_i32_0 : i32, i32, i32
  }
  func.func @transform_8(%arg0: i32, %arg1: i32, %arg2: memref<8xi32, #tpu.memory_space<smem>>, %arg3: memref<8xi32, #tpu.memory_space<smem>>) -> (i32, i32, i32) {
    %c0_i32 = arith.constant 0 : i32
    %c0_i32_0 = arith.constant 0 : i32
    %c0_i32_1 = arith.constant 0 : i32
    return %arg0, %c0_i32, %c0_i32_0 : i32, i32, i32
  }
  func.func @transform_9(%arg0: i32, %arg1: i32, %arg2: memref<8xi32, #tpu.memory_space<smem>>, %arg3: memref<8xi32, #tpu.memory_space<smem>>) -> (i32, i32, i32) {
    %c0_i32 = arith.constant 0 : i32
    %c0_i32_0 = arith.constant 0 : i32
    %c0_i32_1 = arith.constant 0 : i32
    return %arg0, %c0_i32, %c0_i32_0 : i32, i32, i32
  }
}

module attributes {stable_mosaic.version = 11 : i64} {
  func.func @cls_kernel(%arg0: i32, %arg1: memref<8x2x256xf32, #tpu.memory_space<vmem>>, %arg2: memref<512x256xbf16, #tpu.memory_space<vmem>>, %arg3: memref<1x256xf32, #tpu.memory_space<vmem>>, %arg4: memref<1x256xf32, #tpu.memory_space<vmem>>, %arg5: memref<1x256xf32, #tpu.memory_space<vmem>>, %arg6: memref<2x256xf32, #tpu.memory_space<vmem>>) attributes {dimension_semantics = [#tpu.dimension_semantics<arbitrary>], iteration_bounds = array<i64: 1>, scalar_prefetch = 0 : i64, scratch_operands = 0 : i64, tpu.core_type = #tpu.core_type<tc>, window_params = [{pipeline_mode = #tpu.pipeline_mode<synchronous>, transform_indices = @transform_0, window_bounds = array<i64: 8, 2, 256>}, {pipeline_mode = #tpu.pipeline_mode<synchronous>, transform_indices = @transform_1, window_bounds = array<i64: 512, 256>}, {pipeline_mode = #tpu.pipeline_mode<synchronous>, transform_indices = @transform_2, window_bounds = array<i64: 1, 256>}, {pipeline_mode = #tpu.pipeline_mode<synchronous>, transform_indices = @transform_3, window_bounds = array<i64: 1, 256>}, {pipeline_mode = #tpu.pipeline_mode<synchronous>, transform_indices = @transform_4, window_bounds = array<i64: 1, 256>}, {pipeline_mode = #tpu.pipeline_mode<synchronous>, transform_indices = @transform_5, window_bounds = array<i64: 2, 256>}]} {
    %c0 = arith.constant 0 : index
    %c0_0 = arith.constant 0 : index
    %c0_1 = arith.constant 0 : index
    %0 = vector.load %arg1[%c0, %c0_0, %c0_1] : memref<8x2x256xf32, #tpu.memory_space<vmem>>, vector<8x2x256xf32>
    %1 = vector.extract_strided_slice %0 {offsets = [0, 0, 0], sizes = [3, 2, 256], strides = [1, 1, 1]} : vector<8x2x256xf32> to vector<3x2x256xf32>
    %cst = arith.constant dense<0.000000e+00> : vector<2x256xf32>
    %2 = vector.multi_reduction <add>, %1, %cst [0] : vector<3x2x256xf32> to vector<2x256xf32>
    %3 = vector.extract_strided_slice %0 {offsets = [3, 0, 0], sizes = [5, 2, 256], strides = [1, 1, 1]} : vector<8x2x256xf32> to vector<5x2x256xf32>
    %cst_2 = arith.constant dense<0.000000e+00> : vector<2x256xf32>
    %4 = vector.multi_reduction <add>, %3, %cst_2 [0] : vector<5x2x256xf32> to vector<2x256xf32>
    %5 = tpu.concatenate %2, %4 in 1 : vector<2x256xf32>, vector<2x256xf32> -> vector<2x512xf32>
    %6 = arith.truncf %5 : vector<2x512xf32> to vector<2x512xbf16>
    %c0_3 = arith.constant 0 : index
    %c0_4 = arith.constant 0 : index
    %7 = vector.load %arg2[%c0_3, %c0_4] : memref<512x256xbf16, #tpu.memory_space<vmem>>, vector<512x256xbf16>
    %cst_5 = arith.constant dense<0.000000e+00> : vector<2x256xf32>
    %8 = tpu.matmul %6, %7, %cst_5 {dimension_numbers = #tpu.dot_dimension_numbers<[1], [0], [0], [1], [0, 0, 1, 1], [], []>} : vector<2x512xbf16>, vector<512x256xbf16>, vector<2x256xf32> -> vector<2x256xf32>
    %c0_6 = arith.constant 0 : index
    %c0_7 = arith.constant 0 : index
    %9 = vector.load %arg3[%c0_6, %c0_7] : memref<1x256xf32, #tpu.memory_space<vmem>>, vector<1x256xf32>
    %10 = vector.broadcast %9 : vector<1x256xf32> to vector<2x256xf32>
    %11 = arith.addf %8, %10 : vector<2x256xf32>
    %cst_8 = arith.constant dense<0.000000e+00> : vector<256xf32>
    %12 = vector.multi_reduction <add>, %11, %cst_8 [0] : vector<2x256xf32> to vector<256xf32>
    %13 = vector.shape_cast %12 : vector<256xf32> to vector<1x256xf32>
    %cst_9 = arith.constant 2.000000e+00 : f32
    %14 = vector.broadcast %cst_9 : f32 to vector<1x256xf32>
    %15 = arith.divf %13, %14 : vector<1x256xf32>
    %16 = vector.broadcast %15 : vector<1x256xf32> to vector<2x256xf32>
    %17 = arith.subf %11, %16 : vector<2x256xf32>
    %18 = arith.mulf %17, %17 : vector<2x256xf32>
    %cst_10 = arith.constant dense<0.000000e+00> : vector<256xf32>
    %19 = vector.multi_reduction <add>, %18, %cst_10 [0] : vector<2x256xf32> to vector<256xf32>
    %20 = vector.shape_cast %19 : vector<256xf32> to vector<1x256xf32>
    %cst_11 = arith.constant 2.000000e+00 : f32
    %21 = vector.broadcast %cst_11 : f32 to vector<1x256xf32>
    %22 = arith.divf %20, %21 : vector<1x256xf32>
    %23 = vector.broadcast %15 : vector<1x256xf32> to vector<2x256xf32>
    %24 = arith.subf %11, %23 : vector<2x256xf32>
    %cst_12 = arith.constant 9.99999974E-6 : f32
    %25 = vector.broadcast %cst_12 : f32 to vector<1x256xf32>
    %26 = arith.addf %22, %25 : vector<1x256xf32>
    %27 = math.rsqrt %26 : vector<1x256xf32>
    %28 = vector.broadcast %27 : vector<1x256xf32> to vector<2x256xf32>
    %29 = arith.mulf %24, %28 : vector<2x256xf32>
    %c0_13 = arith.constant 0 : index
    %c0_14 = arith.constant 0 : index
    %30 = vector.load %arg4[%c0_13, %c0_14] : memref<1x256xf32, #tpu.memory_space<vmem>>, vector<1x256xf32>
    %31 = vector.broadcast %30 : vector<1x256xf32> to vector<2x256xf32>
    %32 = arith.mulf %29, %31 : vector<2x256xf32>
    %c0_15 = arith.constant 0 : index
    %c0_16 = arith.constant 0 : index
    %33 = vector.load %arg5[%c0_15, %c0_16] : memref<1x256xf32, #tpu.memory_space<vmem>>, vector<1x256xf32>
    %34 = vector.broadcast %33 : vector<1x256xf32> to vector<2x256xf32>
    %35 = arith.addf %32, %34 : vector<2x256xf32>
    %c0_17 = arith.constant 0 : index
    %c0_18 = arith.constant 0 : index
    %36 = vector.load %arg6[%c0_17, %c0_18] : memref<2x256xf32, #tpu.memory_space<vmem>>, vector<2x256xf32>
    tpu.vector_store %arg6[%c0_17, %c0_18], %35 {strides = array<i32>} : memref<2x256xf32, #tpu.memory_space<vmem>>, vector<2x256xf32>,
    return
  }
  func.func @transform_0(%arg0: i32) -> (i32, i32, i32) {
    %c0_i32 = arith.constant 0 : i32
    %c0_i32_0 = arith.constant 0 : i32
    %c0_i32_1 = arith.constant 0 : i32
    %c0_i32_2 = arith.constant 0 : i32
    return %c0_i32, %c0_i32_0, %c0_i32_1 : i32, i32, i32
  }
  func.func @transform_1(%arg0: i32) -> (i32, i32) {
    %c0_i32 = arith.constant 0 : i32
    %c0_i32_0 = arith.constant 0 : i32
    %c0_i32_1 = arith.constant 0 : i32
    return %c0_i32, %c0_i32_0 : i32, i32
  }
  func.func @transform_2(%arg0: i32) -> (i32, i32) {
    %c0_i32 = arith.constant 0 : i32
    %c0_i32_0 = arith.constant 0 : i32
    %c0_i32_1 = arith.constant 0 : i32
    return %c0_i32, %c0_i32_0 : i32, i32
  }
  func.func @transform_3(%arg0: i32) -> (i32, i32) {
    %c0_i32 = arith.constant 0 : i32
    %c0_i32_0 = arith.constant 0 : i32
    %c0_i32_1 = arith.constant 0 : i32
    return %c0_i32, %c0_i32_0 : i32, i32
  }
  func.func @transform_4(%arg0: i32) -> (i32, i32) {
    %c0_i32 = arith.constant 0 : i32
    %c0_i32_0 = arith.constant 0 : i32
    %c0_i32_1 = arith.constant 0 : i32
    return %c0_i32, %c0_i32_0 : i32, i32
  }
  func.func @transform_5(%arg0: i32) -> (i32, i32) {
    %c0_i32 = arith.constant 0 : i32
    %c0_i32_0 = arith.constant 0 : i32
    %c0_i32_1 = arith.constant 0 : i32
    return %c0_i32, %c0_i32_0 : i32, i32
  }
}

</mosaic_0001>

<bundles_post_ra>
// kernel: forward.3
= control target key start
LH: loop header
LB: loop body
LE: loop exit
PB: predicated region body
PF: predicated region fallthrough
CT: control target
= control target key end

     0   :  { %vm61_vm0 = vcmask 1041408   ;;  %s1175_s1 = inlined_call_operand.vmem [shape: bf16[512,256], index: 1, kind: input, shape index: {}]   ;;  %s1176_s0 = inlined_call_operand.vmem [shape: f32[8,2,256], index: 0, kind: input, shape index: {}]   ;;  %s1177_s2 = inlined_call_operand.vmem [shape: f32[1,256], index: 2, kind: input, shape index: {}]   ;;  %s1178_s3 = inlined_call_operand.vmem [shape: f32[1,256], index: 3, kind: input, shape index: {}]   ;;  %s1179_s4 = inlined_call_operand.vmem [shape: f32[1,256], index: 4, kind: input, shape index: {}]   ;;  %s1180_s5 = inlined_call_operand.vmem [shape: f32[2,256], index: 5, kind: output, shape index: {}]  }
   0x1   :  { %v787_v0 = vld [vmem:[%s1175_s1 + $0x74] ss:$8 sps:$4 sm:$0xff]   ;;  %v791_v2 = vld [vmem:[%s1175_s1 + $0x70] ss:$8 sps:$4 sm:$0xff]   ;;  %v793_v4 = vld [vmem:[%s1175_s1 + $0x64] ss:$8 sps:$4 sm:$0xff]  }
   0x2   :  { %v789_v1 = vld [vmem:[%s1175_s1 + $0x174] ss:$8 sps:$4 sm:$0xff]   ;;  %545 = vmatprep.subr.bf16.mxu0 %v787_v0  ;;  %v792_v3 = vld [vmem:[%s1175_s1 + $0x170] ss:$8 sps:$4 sm:$0xff]   ;;  %v795_v5 = vld [vmem:[%s1175_s1 + $0x164] ss:$8 sps:$4 sm:$0xff]  }
   0x3   :  { %586 = vmatprep.subr.bf16.mxu1 %v789_v1  ;;  %546 = vmatpush1.bf16.msra.mxu0 %v791_v2  ;;  %v797_v6 = vld [vmem:[%s1175_s1 + $0x60] ss:$8 sps:$4 sm:$0xff]   ;;  %v799_v8 = vld [vmem:[%s1175_s1 + $0x54] ss:$8 sps:$4 sm:$0xff]   ;;  %v803_v10 = vld [vmem:[%s1175_s1 + $0x50] ss:$8 sps:$4 sm:$0xff]  }
   0x4   :  { %587 = vmatpush1.bf16.msra.mxu1 %v792_v3  ;;  %547 = vmatprep.subr.bf16.mxu0 %v793_v4  ;;  %v798_v7 = vld [vmem:[%s1175_s1 + $0x160] ss:$8 sps:$4 sm:$0xff]   ;;  %v801_v9 = vld [vmem:[%s1175_s1 + $0x154] ss:$8 sps:$4 sm:$0xff]   ;;  %v804_v11 = vld [vmem:[%s1175_s1 + $0x150] ss:$8 sps:$4 sm:$0xff]  }
   0x5   :  { %588 = vmatprep.subr.bf16.mxu1 %v795_v5  ;;  %v805_v12 = vld [vmem:[%s1175_s1 + $0x44] ss:$8 sps:$4 sm:$0xff]   ;;  %v809_v14 = vld [vmem:[%s1175_s1 + $0x40] ss:$8 sps:$4 sm:$0xff]   ;;  %v811_v16 = vld [vmem:[%s1175_s1 + $0x34] ss:$8 sps:$4 sm:$0xff]  }
   0x6   :  { %v807_v13 = vld [vmem:[%s1175_s1 + $0x144] ss:$8 sps:$4 sm:$0xff]   ;;  %v810_v15 = vld [vmem:[%s1175_s1 + $0x140] ss:$8 sps:$4 sm:$0xff]   ;;  %v813_v17 = vld [vmem:[%s1175_s1 + $0x134] ss:$8 sps:$4 sm:$0xff]  }
   0x7   :  { %548 = vmatpush1.bf16.msra.mxu0 %v797_v6  ;;  %v815_v18 = vld [vmem:[%s1175_s1 + $0x30] ss:$8 sps:$4 sm:$0xff]   ;;  %v817_v20 = vld [vmem:[%s1175_s1 + $0x24] ss:$8 sps:$4 sm:$0xff]   ;;  %v821_v22 = vld [vmem:[%s1175_s1 + $0x20] ss:$8 sps:$4 sm:$0xff]  }
   0x8   :  { %589 = vmatpush1.bf16.msra.mxu1 %v798_v7  ;;  %549 = vmatprep.subr.bf16.mxu0 %v799_v8  ;;  %v816_v19 = vld [vmem:[%s1175_s1 + $0x130] ss:$8 sps:$4 sm:$0xff]   ;;  %v819_v21 = vld [vmem:[%s1175_s1 + $0x124] ss:$8 sps:$4 sm:$0xff]   ;;  %v822_v23 = vld [vmem:[%s1175_s1 + $0x120] ss:$8 sps:$4 sm:$0xff]  }
   0x9   :  { %590 = vmatprep.subr.bf16.mxu1 %v801_v9  ;;  %v823_v24 = vld [vmem:[%s1175_s1 + $0x14] ss:$8 sps:$4 sm:$0xff]   ;;  %v827_v26 = vld [vmem:[%s1175_s1 + $0x10] ss:$8 sps:$4 sm:$0xff]   ;;  %v829_v28 = vld [vmem:[%s1175_s1 + $0x4] ss:$8 sps:$4 sm:$0xff]  }
   0xa   :  { %v825_v25 = vld [vmem:[%s1175_s1 + $0x114] ss:$8 sps:$4 sm:$0xff]   ;;  %v828_v27 = vld [vmem:[%s1175_s1 + $0x110] ss:$8 sps:$4 sm:$0xff]   ;;  %v831_v29 = vld [vmem:[%s1175_s1 + $0x104] ss:$8 sps:$4 sm:$0xff]  }
   0xb   :  { %550 = vmatpush1.bf16.msra.mxu0 %v803_v10  ;;  %v833_v30 = vld [vmem:[%s1175_s1] ss:$8 sps:$4 sm:$0xff]   ;;  %v835_v32 = vld [vmem:[%s1175_s1 + $0xf4] ss:$8 sps:$4 sm:$0xff]   ;;  %v839_v34 = vld [vmem:[%s1175_s1 + $0xf0] ss:$8 sps:$4 sm:$0xff]  }
   0xc   :  { %591 = vmatpush1.bf16.msra.mxu1 %v804_v11  ;;  %551 = vmatprep.subr.bf16.mxu0 %v805_v12  ;;  %v834_v31 = vld [vmem:[%s1175_s1 + $0x100] ss:$8 sps:$4 sm:$0xff]   ;;  %v837_v33 = vld [vmem:[%s1175_s1 + $0x1f4] ss:$8 sps:$4 sm:$0xff]   ;;  %v840_v35 = vld [vmem:[%s1175_s1 + $0x1f0] ss:$8 sps:$4 sm:$0xff]  }
   0xd   :  { %592 = vmatprep.subr.bf16.mxu1 %v807_v13  ;;  %v841_v36 = vld [vmem:[%s1175_s1 + $0xe4] ss:$8 sps:$4 sm:$0xff]   ;;  %v845_v38 = vld [vmem:[%s1175_s1 + $0xe0] ss:$8 sps:$4 sm:$0xff]   ;;  %v847_v40 = vld [vmem:[%s1175_s1 + $0xd4] ss:$8 sps:$4 sm:$0xff]  }
   0xe   :  { %v843_v37 = vld [vmem:[%s1175_s1 + $0x1e4] ss:$8 sps:$4 sm:$0xff]   ;;  %v846_v39 = vld [vmem:[%s1175_s1 + $0x1e0] ss:$8 sps:$4 sm:$0xff]   ;;  %v849_v41 = vld [vmem:[%s1175_s1 + $0x1d4] ss:$8 sps:$4 sm:$0xff]  }
   0xf   :  { %552 = vmatpush1.bf16.msra.mxu0 %v809_v14  ;;  %v851_v42 = vld [vmem:[%s1175_s1 + $0xd0] ss:$8 sps:$4 sm:$0xff]   ;;  %v853_v44 = vld [vmem:[%s1175_s1 + $0xc4] ss:$8 sps:$4 sm:$0xff]   ;;  %v857_v46 = vld [vmem:[%s1175_s1 + $0xc0] ss:$8 sps:$4 sm:$0xff]  }
  0x10   :  { %593 = vmatpush1.bf16.msra.mxu1 %v810_v15  ;;  %553 = vmatprep.subr.bf16.mxu0 %v811_v16  ;;  %v852_v43 = vld [vmem:[%s1175_s1 + $0x1d0] ss:$8 sps:$4 sm:$0xff]   ;;  %v855_v45 = vld [vmem:[%s1175_s1 + $0x1c4] ss:$8 sps:$4 sm:$0xff]   ;;  %v858_v47 = vld [vmem:[%s1175_s1 + $0x1c0] ss:$8 sps:$4 sm:$0xff]  }
  0x11   :  { %594 = vmatprep.subr.bf16.mxu1 %v813_v17  ;;  %v714_v48 = vld.sshfl [vmem:[%s1176_s0] sm:$0x33 pattern:$0x76325410]  ;;  %v859_v49 = vld [vmem:[%s1175_s1 + $0xb4] ss:$8 sps:$4 sm:$0xff]  }
  0x12   :  { %v715_v50 = vld.sshfl [vmem:[%s1176_s0 + $0x4] sm:$0x33 pattern:$0x76325410]  ;;  %v38_v51 = vcombine.high %v714_v48, %v714_v48  ;;  %v861_v52 = vld [vmem:[%s1175_s1 + $0x1b4] ss:$8 sps:$4 sm:$0xff]  }
  0x13   :  { %554 = vmatpush1.bf16.msra.mxu0 %v815_v18  ;;  %v716_v53 = vld.sshfl [vmem:[%s1176_s0 + $0x8] sm:$0x33 pattern:$0x76325410]  ;;  %v46_v54 = vcombine.high %v715_v50, %v715_v50  ;;  %v863_v55 = vld [vmem:[%s1175_s1 + $0xb0] ss:$8 sps:$4 sm:$0xff]  }
  0x14   :  { %595 = vmatpush1.bf16.msra.mxu1 %v816_v19  ;;  %555 = vmatprep.subr.bf16.mxu0 %v817_v20  ;;  %v864_v56 = vld [vmem:[%s1175_s1 + $0x1b0] ss:$8 sps:$4 sm:$0xff]   ;;  %v54_v57 = vcombine.high %v716_v53, %v716_v53  ;;  %v67_v58 = vsel %vm61_vm0, %v38_v51, 0.0  ;;  %v865_v60 = vld [vmem:[%s1175_s1 + $0xa4] ss:$8 sps:$4 sm:$0xff]   ;;  %v62_v1 = vsel %vm61_vm0, %v714_v48, 0.0  ;;  %v215_v48 = vlaneseq }
  0x15   :  { %596 = vmatprep.subr.bf16.mxu1 %v819_v21  ;;  %v717_v59 = vld.sshfl [vmem:[%s1176_s0 + $0xc] sm:$0x33 pattern:$0x76325410]  ;;  %v68_v62 = vsel %vm61_vm0, %v46_v54, 0.0  ;;  %v63_v15 = vsel %vm61_vm0, %v715_v50, 0.0 }
  0x16   :  { %v867_v61 = vld [vmem:[%s1175_s1 + $0x1a4] ss:$8 sps:$4 sm:$0xff]   ;;  %v718_v63 = vld.sshfl [vmem:[%s1176_s0 + $0x10] sm:$0x33 pattern:$0x76325410]  ;;  %v84_v0 = vcombine.high %v717_v59, %v717_v59  ;;  %v69_v2 = vadd.f32 %v68_v62, %v67_v58 }
  0x17   :  { %556 = vmatpush1.bf16.msra.mxu0 %v821_v22  ;;  %v70_v3 = vsel %vm61_vm0, %v54_v57, 0.0  ;;  %v719_v4 = vld.sshfl [vmem:[%s1176_s0 + $0x14] sm:$0x33 pattern:$0x76325410]  ;;  %v92_v5 = vcombine.high %v718_v63, %v718_v63  ;;  %v127_v6 = vsel %vm61_vm0, %v717_v59, 0.0 }
  0x18   :  { %597 = vmatpush1.bf16.msra.mxu1 %v822_v23  ;;  %557 = vmatprep.subr.bf16.mxu0 %v823_v24  ;;  %v720_v7 = vld.sshfl [vmem:[%s1176_s0 + $0x18] sm:$0x33 pattern:$0x76325410]  ;;  %v100_v8 = vcombine.high %v719_v4, %v719_v4  ;;  %v136_v9 = vsel %vm61_vm0, %v84_v0, 0.0  ;;  %v128_v10 = vsel %vm61_vm0, %v718_v63, 0.0  ;;  %v71_v11 = vadd.f32 %v70_v3, %v69_v2 }
  0x19   :  { %598 = vmatprep.subr.bf16.mxu1 %v825_v25  ;;  %v721_v12 = vld.sshfl [vmem:[%s1176_s0 + $0x1c] sm:$0x33 pattern:$0x76325410]  ;;  %v108_v13 = vcombine.high %v720_v7, %v720_v7  ;;  %v137_v14 = vsel %vm61_vm0, %v92_v5, 0.0  ;;  %v129_v20 = vadd.f32 %v128_v10, %v127_v6  ;;  %v130_v24 = vsel %vm61_vm0, %v719_v4, 0.0 }
  0x1a   :  { %v869_v16 = vld [vmem:[%s1175_s1 + $0xa0] ss:$8 sps:$4 sm:$0xff]   ;;  %v116_v17 = vcombine.high %v721_v12, %v721_v12  ;;  %v138_v18 = vadd.f32 %v137_v14, %v136_v9  ;;  %v139_v19 = vsel %vm61_vm0, %v100_v8, 0.0  ;;  %v146_v22 = vpack.c.bf16 %v71_v11, %v71_v11 }
  0x1b   :  { %558 = vmatpush1.bf16.msra.mxu0 %v827_v26  ;;  %v870_v21 = vld [vmem:[%s1175_s1 + $0x1a0] ss:$8 sps:$4 sm:$0xff]   ;;  %v141_v23 = vsel %vm61_vm0, %v108_v13, 0.0  ;;  %v132_v25 = vsel %vm61_vm0, %v720_v7, 0.0  ;;  %v871_v26 = vld [vmem:[%s1175_s1 + $0x94] ss:$8 sps:$4 sm:$0xff]  }
  0x1c   :  { %599 = vmatpush1.bf16.msra.mxu1 %v828_v27  ;;  %559 = vmatprep.subr.bf16.mxu0 %v829_v28  ;;  %v873_v27 = vld [vmem:[%s1175_s1 + $0x194] ss:$8 sps:$4 sm:$0xff]   ;;  %v140_v28 = vadd.f32 %v139_v19, %v138_v18  ;;  %v213_v51 = vld [vmem:[%s1177_s2] sm:$0x3] }
  0x1d   :  { %600 = vmatprep.subr.bf16.mxu1 %v831_v29  ;;  %v131_v29 = vadd.f32 %v130_v24, %v129_v20  ;;  %577 = vmatprep.mubr.bf16.mxu0 %v146_v22 }
  0x1f   :  { %560 = vmatpush1.bf16.msra.mxu0 %v833_v30  ;;  %v143_v30 = vsel %vm61_vm0, %v116_v17, 0.0 }
  0x20   :  { %601 = vmatpush1.bf16.msra.mxu1 %v834_v31  ;;  %561 = vmatprep.subr.bf16.mxu0 %v835_v32  ;;  %v142_v31 = vadd.f32 %v141_v23, %v140_v28  ;;  %v64_v32 = vadd.f32 %v63_v15, %v62_v1 }
  0x21   :  { %602 = vmatprep.subr.bf16.mxu1 %v837_v33  ;;  %v133_v33 = vadd.f32 %v132_v25, %v131_v29 }
  0x23   :  { %562 = vmatpush2.bf16.msra.mxu0 %v839_v34  ;;  %v875_v34 = vld [vmem:[%s1175_s1 + $0x90] ss:$8 sps:$4 sm:$0xff]  }
  0x24   :  { %603 = vmatpush2.bf16.msra.mxu1 %v840_v35  ;;  %563 = vmatprep.subr.bf16.mxu0 %v841_v36  ;;  %v876_v35 = vld [vmem:[%s1175_s1 + $0x190] ss:$8 sps:$4 sm:$0xff]   ;;  %v65_v36 = vsel %vm61_vm0, %v716_v53, 0.0 }
  0x25   :  { %604 = vmatprep.subr.bf16.mxu1 %v843_v37  ;;  %v134_v37 = vsel %vm61_vm0, %v721_v12, 0.0 }
  0x27   :  { %564 = vmatpush2.bf16.msra.mxu0 %v845_v38  ;;  %v877_v38 = vld [vmem:[%s1175_s1 + $0x84] ss:$8 sps:$4 sm:$0xff]  }
  0x28   :  { %605 = vmatpush2.bf16.msra.mxu1 %v846_v39  ;;  %565 = vmatprep.subr.bf16.mxu0 %v847_v40  ;;  %v879_v39 = vld [vmem:[%s1175_s1 + $0x184] ss:$8 sps:$4 sm:$0xff]   ;;  %v144_v40 = vadd.f32 %v143_v30, %v142_v31 }
  0x29   :  { %606 = vmatprep.subr.bf16.mxu1 %v849_v41 }
  0x2a   :  { %v148_v41 = vpack.c.bf16 %v144_v40, %v144_v40 }
  0x2b   :  { %566 = vmatpush2.bf16.msra.mxu0 %v851_v42  ;;  %v66_v42 = vadd.f32 %v65_v36, %v64_v32 }
  0x2c   :  { %607 = vmatpush2.bf16.msra.mxu1 %v852_v43  ;;  %567 = vmatprep.subr.bf16.mxu0 %v853_v44  ;;  %v135_v43 = vadd.f32 %v134_v37, %v133_v33  ;;  %v881_v44 = vld [vmem:[%s1175_s1 + $0x80] ss:$8 sps:$4 sm:$0xff]  }
  0x2d   :  { %608 = vmatprep.subr.bf16.mxu1 %v855_v45  ;;  %v882_v45 = vld [vmem:[%s1175_s1 + $0x180] ss:$8 sps:$4 sm:$0xff]   ;;  %618 = vmatprep.mubr.bf16.mxu1 %v148_v41 }
  0x2e   :  { %v670_v41 = vld [vmem:[%s1178_s3] sm:$0x3] }
  0x2f   :  { %568 = vmatpush2.bf16.msra.mxu0 %v857_v46  ;;  %v145_v46 = vpack.c.bf16 %v66_v42, %v66_v42 }
  0x30   :  { %609 = vmatpush2.bf16.msra.mxu1 %v858_v47  ;;  %569 = vmatprep.subr.bf16.mxu0 %v859_v49  ;;  %v147_v47 = vpack.c.bf16 %v135_v43, %v135_v43  ;;  %v216_v49 = vshrl.u32 %v215_v48, 7 }
  0x31   :  { %610 = vmatprep.subr.bf16.mxu1 %v861_v52 }
  0x32   :  { %v1149_v50 = vsub.s32 0, %v216_v49  ;;  %v1154_v52 = vsub.s32 1, %v216_v49 }
  0x33   :  { %570 = vmatpush2.bf16.msra.mxu0 %v863_v55 }
  0x34   :  { %611 = vmatpush2.bf16.msra.mxu1 %v864_v56  ;;  %571 = vmatprep.subr.bf16.mxu0 %v865_v60  ;;  %v218_v53 = vrot.slane %v213_v51, %v1149_v50  ;;  %v222_v54 = vrot.slane %v213_v51, %v1154_v52  ;;  %v675_v42 = vrot.slane %v670_v41, %v1149_v50 }
  0x35   :  { %612 = vmatprep.subr.bf16.mxu1 %v867_v61 }
  0x37   :  { %572 = vmatpush2.bf16.msra.mxu0 %v869_v16 }
  0x38   :  { %613 = vmatpush2.bf16.msra.mxu1 %v870_v21  ;;  %573 = vmatprep.subr.bf16.mxu0 %v871_v26 }
  0x39   :  { %614 = vmatprep.subr.bf16.mxu1 %v873_v27 }
  0x3b   :  { %574 = vmatpush2.bf16.msra.mxu0 %v875_v34 }
  0x3c   :  { %615 = vmatpush2.bf16.msra.mxu1 %v876_v35  ;;  %575 = vmatprep.subr.bf16.mxu0 %v877_v38 }
  0x3d   :  { %616 = vmatprep.subr.bf16.mxu1 %v879_v39 }
  0x3f   :  { %576 = vmatpush2.bf16.msra.mxu0 %v881_v44  ;;  %v684_v44 = vld [vmem:[%s1179_s4] sm:$0x3] }
  0x40   :  { %617 = vmatpush2.bf16.msra.mxu1 %v882_v45  ;;  %v689_v49 = vrot.slane %v684_v44, %v1149_v50 }
  0x42   :  { %578 = vmatmul.mubr.bf16.vlgmr.msra.gmra.mxu0 %v145_v46  ;;  %v679_v46 = vrot.slane %v670_v41, %v1154_v52 }
  0x43   :  { %619 = vmatmul.mubr.bf16.vlgmr.msra.gmra.mxu1 %v147_v47 }
 0x102   :  { %v579_v55 = vpop.f32.mrf.mxu0 }
 0x103   :  { %v620_v56 = vpop.f32.mrf.mxu1  ;;  %v580_v57 = vadd.f32 %v579_v55, %v218_v53  ;;  %v693_v53 = vrot.slane %v684_v44, %v1154_v52 }
 0x104   :  { %v581_v58 = vpop.f32.mrf.mxu0 }
 0x105   :  { %v622_v59 = vpop.f32.mrf.mxu1  ;;  %v621_v60 = vadd.f32 %v620_v56, %v580_v57  ;;  %v582_v61 = vadd.f32 %v581_v58, %v222_v54 }
 0x106   :  { %v583_v62 = vpop.f32.mrf.mxu0 }
 0x107   :  { %v624_v63 = vpop.f32.mrf.mxu1  ;;  %v627_v0 = vsel %vm61_vm0, %v621_v60, 0.0  ;;  %v623_v1 = vadd.f32 %v622_v59, %v582_v61 }
 0x108   :  { %v628_v2 = vrot.slane %v627_v0, 4  ;;  %v584_v3 = vpop.f32.mrf.mxu0 }
 0x109   :  { %v625_v4 = vpop.f32.mrf.mxu1  ;;  %v634_v5 = vsel %vm61_vm0, %v623_v1, 0.0 }
 0x10a   :  { %v629_v6 = vadd.f32 %v628_v2, %v627_v0  ;;  %v635_v7 = vrot.slane %v634_v5, 4 }
 0x10c   :  { %v630_v8 = vrot.slane %v629_v6, 2  ;;  %v636_v9 = vadd.f32 %v635_v7, %v634_v5 }
 0x10e   :  { %v631_v10 = vadd.f32 %v630_v8, %v629_v6  ;;  %v637_v11 = vrot.slane %v636_v9, 2 }
 0x110   :  { %v632_v12 = vrot.slane %v631_v10, 1  ;;  %v638_v13 = vadd.f32 %v637_v11, %v636_v9 }
 0x112   :  { %v633_v14 = vadd.f32 %v632_v12, %v631_v10  ;;  %v639_v15 = vrot.slane %v638_v13, 1 }
 0x114   :  { %v642_v16 = vmul.f32 0.5, %v633_v14  ;;  %v640_v17 = vadd.f32 %v639_v15, %v638_v13 }
 0x116   :  { %v644_v18 = vsub.f32 %v621_v60, %v642_v16  ;;  %v643_v19 = vmul.f32 0.5, %v640_v17 }
 0x118   :  { %v646_v20 = vmul.f32 %v644_v18, %v644_v18  ;;  %v645_v21 = vsub.f32 %v623_v1, %v643_v19 }
 0x11a   :  { %v648_v22 = vsel %vm61_vm0, %v646_v20, 0.0  ;;  %v647_v23 = vmul.f32 %v645_v21, %v645_v21 }
 0x11b   :  { %v649_v24 = vrot.slane %v648_v22, 4 }
 0x11c   :  { %v655_v25 = vsel %vm61_vm0, %v647_v23, 0.0 }
 0x11d   :  { %v650_v26 = vadd.f32 %v649_v24, %v648_v22  ;;  %v656_v27 = vrot.slane %v655_v25, 4 }
 0x11f   :  { %v651_v28 = vrot.slane %v650_v26, 2  ;;  %v657_v29 = vadd.f32 %v656_v27, %v655_v25 }
 0x121   :  { %v652_v30 = vadd.f32 %v651_v28, %v650_v26  ;;  %v658_v31 = vrot.slane %v657_v29, 2 }
 0x123   :  { %v653_v32 = vrot.slane %v652_v30, 1  ;;  %v659_v33 = vadd.f32 %v658_v31, %v657_v29 }
 0x125   :  { %v654_v34 = vadd.f32 %v653_v32, %v652_v30  ;;  %v660_v35 = vrot.slane %v659_v33, 1 }
 0x127   :  { %v662_v36 = vmul.f32 0.5, %v654_v34  ;;  %v661_v37 = vadd.f32 %v660_v35, %v659_v33 }
 0x129   :  { %v664_v38 = vadd.f32 1e-05, %v662_v36  ;;  %v663_v39 = vmul.f32 0.5, %v661_v37 }
 0x12b   :  { %883 = vrsqrt.f32 %v664_v38  ;;  %v665_v40 = vadd.f32 1e-05, %v663_v39 }
 0x12d   :  { %885 = vrsqrt.f32 %v665_v40 }
 0x138   :  { %v884_v43 = vpop.eup %883 }
 0x139   :  { %v668_v45 = vmul.f32 %v884_v43, %v644_v18 }
 0x13a   :  { %v886_v47 = vpop.eup %885 }
 0x13b   :  { %v682_v48 = vmul.f32 %v675_v42, %v668_v45  ;;  %v669_v51 = vmul.f32 %v886_v47, %v645_v21 }
 0x13d   :  { %v683_v54 = vmul.f32 %v679_v46, %v669_v51  ;;  %v696_v55 = vadd.f32 %v689_v49, %v682_v48 }
 0x13f   :  { %v697_v56 = vadd.f32 %v693_v53, %v683_v54 }
 0x141   :  { %v700_v57 = vcombine.low %v696_v55, %v697_v56 }
 0x143   :  { %786 = vst.sshfl [vmem:[%s1180_s5] sm:$0x33 pattern:$0x76325410] %v700_v57 }

// kernel: forward.2
= control target key start
LH: loop header
LB: loop body
LE: loop exit
PB: predicated region body
PF: predicated region fallthrough
CT: control target
= control target key end

     0   :  { %s5544_s0 = inlined_call_operand.vmem [shape: s32[8], index: 0, kind: input, shape index: {}]   ;;  %s5545_s2 = inlined_call_operand.vmem [shape: f32[8], index: 2, kind: input, shape index: {}]   ;;  %s5546_s3 = inlined_call_operand.vmem [shape: f32[8], index: 3, kind: input, shape index: {}]   ;;  %s5547_s4 = inlined_call_operand.vmem [shape: bf16[48,36864], index: 4, kind: input, shape index: {}]   ;;  %s5548_s5 = inlined_call_operand.vmem [shape: bf16[36864,256], index: 5, kind: input, shape index: {}]   ;;  %s5549_s6 = inlined_call_operand.vmem [shape: f32[8,1,256], index: 6, kind: input, shape index: {}]   ;;  %s5550_s7 = inlined_call_operand.vmem [shape: f32[8,1,256], index: 7, kind: input, shape index: {}]   ;;  %s5551_s8 = inlined_call_operand.vmem [shape: f32[8,1,256], index: 8, kind: input, shape index: {}]   ;;  %s5552_s9 = inlined_call_operand.vmem [shape: f32[8,48,1], index: 9, kind: input, shape index: {}]   ;;  %s5553_s10 = inlined_call_operand.vmem [shape: f32[8,2,48], index: 10, kind: input, shape index: {}]   ;;  %s5554_s11 = inlined_call_operand.vmem [shape: f32[8,2,256], index: 11, kind: output, shape index: {}]   ;;  %s5555_s1 = inlined_call_operand.vmem [shape: s32[8], index: 1, kind: input, shape index: {}]  }
   0x1   :  { %5561 = sst [smem:[#allocation33_spill]] %s5545_s2  ;;  %s16_s19 = sshll.u32 %s5544_s0, 4  ;;  %s17_s19 = int_to_ptr.vmem [resolvable:$true] %s16_s19 }
   0x2   :  { %5562 = sst [smem:[#allocation34_spill]] %s5546_s3  ;;  %s20_s22 = sshll.u32 %s5555_s1, 4  ;;  %s21_s22 = int_to_ptr.vmem [resolvable:$true] %s20_s22 }
   0x3   :  { %5563 = sst [smem:[#allocation35_spill]] %s5547_s4  ;;  %s4413_s23 = scalar_lea.vmem %s17_s19, 16 }
   0x4   :  { %5564 = sst [smem:[#allocation36_spill]] %s5548_s5  ;;  %p4414_p0 = scmp.ne.s32.totalorder %s17_s19, %s4413_s23 }
   0x5   :  { %5565 = sst [smem:[#allocation37_spill]] %s5552_s9  ;;  %p4418_p1 = scmp.lt.s32.totalorder %s17_s19, %s17_s19 }
   0x6   :  { %5566 = sst [smem:[#allocation38_spill]] %s5553_s10  ;;  %p4419_p2 = scmp.lt.s32.totalorder %s4413_s23, %s4413_s23 }
   0x7   :  { %5567 = sst [smem:[#allocation39_spill]] %s5554_s11 }
   0x8   :  { %p4420_p3 = por %p4419_p2, %p4418_p1 }
   0xa   :  { %p4421_p4 = pnand %p4420_p3, %p4414_p0 }
   0xc   :  { %4424 = shalt.err (!%p4421_p4)  }
   0xd   :  { %s4533_s24 = smov [#allocation4]   ;;  %s4425_s25 = scalar_lea.vmem %s21_s22, 16 }
   0xe   :  { %19 = dma.vmem_to_smem %s17_s19, 16, %s4533_s24, [#allocation3] }
   0xf   :  { %p4426_p5 = scmp.ne.s32.totalorder %s21_s22, %s4425_s25  ;;  %p4430_p6 = scmp.lt.s32.totalorder %s21_s22, %s21_s22 }
  0x10   :  { %p4431_p7 = scmp.lt.s32.totalorder %s4425_s25, %s4425_s25 }
  0x12   :  { %p4432_p8 = por %p4431_p7, %p4430_p6 }
  0x14   :  { %p4433_p9 = pnand %p4432_p8, %p4426_p5 }
  0x16   :  { %4436 = shalt.err (!%p4433_p9)  }
  0x17   :  { %s4534_s0 = smov [#allocation5]  }
  0x18   :  { %23 = dma.vmem_to_smem %s21_s22, 16, %s4534_s0, [#allocation3] }
  0x19   :  { %4495 = dma.done.wait [#allocation3], 32 }
  0x1a   :  { %4496 = vsyncadd [#allocation3], 4294967264 }
  0x1b   :  { %25 = sfence }
  0x1c   :  { %26 = vsyncpa [#allocation7], 0 }
  0x1d   :  { %27 = vsyncpa [#allocation9], 0  ;;  %s4606_s1 = smov 0   ;;  %s4608_s26 = smov 0  }
  0x1e   :  { %s4610_s27 = smov 0   ;;  %s4612_s28 = smov 0  }
  0x1f   :  { %s4614_s29 = smov 0   ;;  %s4616_s30 = smov 0  }
  0x20   :  { %s4618_s12 = smov 0  }
  0x21 LB: > { %5568 = sst [smem:[#allocation14_spill]] %s4511_s26  ;;  %s42_s13 = sadd.s32 1, %s4523_s29  ;;  %s4531_s12 = sphi %s4618_s12, %s33_s12   ;;  %s4527_s30 = sphi %s4616_s30, %s5620_s30   ;;  %s4523_s29 = sphi %s4614_s29, %s5619_s29   ;;  %s4519_s28 = sphi %s4612_s28, %s5618_s28   ;;  %s4515_s27 = sphi %s4610_s27, %s5617_s27   ;;  %s4511_s26 = sphi %s4608_s26, %s5616_s26   ;;  %s4507_s1 = sphi %s4606_s1, %s5615_s1  }
  0x22   : > { %5569 = sst [smem:[#allocation15_spill]] %s4523_s29  ;;  %p43_p10 = scmp.ge.s32.totalorder %s42_s13, 4 }
  0x23   : > { %5570 = sst [smem:[#allocation16_spill]] %s4527_s30  ;;  %s45_s14 = sadd.s32 1, %s4527_s30 }
  0x24   : > { %s3596_s15 = sadd.s32 4294967295, %s4531_s12   ;;  %s4645_s16 = sld [smem:[#allocation4 + %s4527_s30]] }
  0x25   : > { %s5622_s13 = smov (%p43_p10, %s42_s13), 0  ;;  %s5624_s14 = smov (!%p43_p10, %s45_s14), %s4527_s30 }
  0x26   : > { %5571 = sst [smem:[#allocation17_spill]] %s5622_s13  ;;  %p113_p11 = scmp.ne.s32.totalorder %s4511_s26, %s4507_s1 }
  0x27   : > { %s92_s17 = sld [smem:[#allocation5 + %s4527_s30]]  ;;  %p47_p12 = scmp.ge.s32.totalorder %s5624_s14, 8 }
  0x28   : > { %p114_p13 = scmp.eq.s32.totalorder %s4531_s12, 0  ;;  %p3602_p0 = scmp.ge.s32.totalorder %s4531_s12, 1 }
  0x29   : > { %p324_p1 = scmp.lt.s32.totalorder %s4531_s12, 33  ;;  %s5626_s14 = smov (%p47_p12, %s5624_s14), 0 }
  0x2a   : > { %5572 = sst [smem:[#allocation18_spill]] %s5626_s14  ;;  %p4658_p2 = por %p114_p13, %p113_p11 }
  0x2b   : > { %p4662_p3 = pnand %p3602_p0, %p324_p1  ;;  %s4667_s20 = sld [smem:[#allocation4 + %s5626_s14]] }
  0x2c   : > { %s98_s22 = sld [smem:[#allocation5 + %s5626_s14]]  ;;  %p4673_p6 = scmp.eq.s32.totalorder %s3596_s15, 0 }
  0x2d   : > { %s3598_s21 = sadd.s32 4294967295, %s92_s17  ;;  %p3949_p5 = pneg %p4662_p3 }
  0x2e   : > { %p94_p4 = scmp.lt.s32.totalorder %s4523_s29, %s3598_s21  ;;  %s5576_s2 = sld [smem:[#allocation33_spill]] }
  0x2f   : > { %p4683_p7 = pnand %p4673_p6, %p3949_p5  ;;  %s5579_s3 = sld [smem:[#allocation34_spill]] }
  0x30   : > { %s95_s5 = scalar_select %p94_p4, %s4523_s29, %s3598_s21 }
  0x31   : > { %p4439_p10 = pneg %p4683_p7 }
  0x32   : > { %s96_s17 = sadd.s32 %s95_s5, %s4645_s16  ;;  %s3599_s14 = sadd.s32 4294967295, %s98_s22 }
  0x33   : > { %p4689_p8 = scmp.lt.s32.totalorder %s5622_s13, %s3599_s14 }
  0x34   : > { %s337_s0 = sshll.u32 %s5576_s2, 4  ;;  %s338_s0 = int_to_ptr.vmem [resolvable:$true] %s337_s0 }
  0x35   : > { %s348_s24 = sshll.u32 %s5579_s3, 4  ;;  %s4437_s25 = scalar_lea.vmem %s338_s0, 16  ;;  %s349_s24 = int_to_ptr.vmem [resolvable:$true] %s348_s24 }
  0x36   : > { %p4438_p9 = scmp.ne.s32.totalorder %s338_s0, %s4437_s25  ;;  %p4445_p13 = scmp.lt.s32.totalorder %s338_s0, %s338_s0 }
  0x37   : > { %p4446_p0 = scmp.lt.s32.totalorder %s4437_s25, %s4437_s25 }
  0x38   : > { %p4440_p11 = pnand %p4439_p10, %p4438_p9 }
  0x39   : > { %p4447_p1 = por %p4446_p0, %p4445_p13 }
  0x3a   : > { %p4441_p12 = pneg %p4440_p11 }
  0x3c   : > { %p4448_p4 = pnand %p4447_p1, %p4441_p12 }
  0x3e   : > { %4451 = shalt.err (!%p4448_p4)
}
  0x3f   : > { %s4535_s5 = smov [#allocation6]   ;;  %s106_s21 = sadd.s32 1, %s4511_s26 }
  0x40   : > { %3952 = dma.vmem_to_smem (!%p4683_p7), %s338_s0, 16, %s4535_s5, [#allocation7]  }
  0x41   : > { %s101_s9 = scalar_select %p4689_p8, %s5622_s13, %s3599_s14 }
  0x42   : > { %s4452_s22 = scalar_lea.vmem %s349_s24, 16  ;;  %p4460_p13 = scmp.lt.s32.totalorder %s349_s24, %s349_s24 }
  0x43   : > { %s102_s10 = sadd.s32 %s101_s9, %s4667_s20  ;;  %p4453_p9 = scmp.ne.s32.totalorder %s349_s24, %s4452_s22 }
  0x44   : > { %s103_s16 = ssub.s32 %s96_s17, %s102_s10  ;;  %p4461_p0 = scmp.lt.s32.totalorder %s4452_s22, %s4452_s22 }
  0x45   : > { %p104_p5 = scmp.eq.s32.totalorder %s103_s16, 0  ;;  %p4455_p11 = pnand %p4453_p9, %p4439_p10 }
  0x46   : > { %p4462_p1 = por %p4461_p0, %p4460_p13 }
  0x47   : > { %p4456_p12 = pneg %p4455_p11 }
  0x49   : > { %p4463_p4 = pnand %p4462_p1, %p4456_p12 }
  0x4b   : > { %4466 = shalt.err (!%p4463_p4)
}
  0x4c   : > { %s4536_s25 = smov [#allocation8]   ;;  %p3605_p8 = scmp.ge.s32.totalorder %s4531_s12, 32 }
  0x4d   : > { %3955 = dma.vmem_to_smem (!%p4683_p7), %s349_s24, 16, %s4536_s25, [#allocation9]  }
  0x4e   : > { %s4714_s14 = scalar_select %p104_p5, %s4511_s26, %s106_s21  }
  0x4f   : > { %355 = sbr.rel (%p3605_p8) target bundleno = 123 (0x7b), region = 24 }
  0x50   : > { %5580 = sst [smem:[#allocation19_spill]] %s4714_s14 }
  0x54   : > { %358 = sbr.rel (!%p4658_p2) target bundleno = 123 (0x7b), region = 28  ;;  %s364_s20 = sld [smem:[#allocation5 + %s4527_s30]] (%p4658_p2) }
  0x55   : > { %s363_s0 = sld [smem:[#allocation4 + %s4527_s30]] (%p4658_p2)  ;;  %s360_s17 = sand.u32 (%p4658_p2), 1, %s4511_s26  }
  0x56   : > { %s3938_s11 = smul.u32 (%p4658_p2), 384, %s360_s17  ;;  %s5581_s4 = sld [smem:[#allocation35_spill]] (%p4658_p2) }
  0x58   : > { %s4732_s18 = scalar_lea.vmem (%p4658_p2), [#allocation10], %s3938_s11 }
  0x5a   : > { %s3606_s15 = sadd.s32 4294967295, %s364_s20 }
  0x5b   : > { %p366_p10 = scmp.lt.s32.totalorder %s4523_s29, %s3606_s15 }
  0x5d   : > { %s367_s24 = scalar_select %p366_p10, %s4523_s29, %s3606_s15 }
  0x5f   : > { %s368_s5 = sadd.s32 %s367_s24, %s363_s0 }
  0x60   : > { %s3935_s9 = sshll.u32 %s368_s5, 6 }
  0x61   : > { %s4727_s21 = scalar_lea.vmem %s5581_s4, %s3935_s9 }
  0x62   : > { %v384_v0 = vld [vmem:[%s4727_s21] sm:$0xff]  ;;  %v386_v1 = vld [vmem:[%s4727_s21 + $0x8] sm:$0xff]  ;;  %v388_v2 = vld [vmem:[%s4727_s21 + $0x10] sm:$0xff] }
  0x63   : > { %385 = vst [vmem:[%s4732_s18] sm:$0xff] %v384_v0  ;;  %387 = vst [vmem:[%s4732_s18 + $0x8] sm:$0xff] %v386_v1  ;;  %v390_v3 = vld [vmem:[%s4727_s21 + $0x18] sm:$0xff]  ;;  %v392_v4 = vld [vmem:[%s4727_s21 + $0x20] sm:$0xff] }
  0x64   : > { %389 = vst [vmem:[%s4732_s18 + $0x10] sm:$0xff] %v388_v2  ;;  %v394_v5 = vld [vmem:[%s4727_s21 + $0x28] sm:$0xff]  ;;  %391 = vst [vmem:[%s4732_s18 + $0x18] sm:$0xff] %v390_v3  ;;  %v396_v6 = vld [vmem:[%s4727_s21 + $0x30] sm:$0xff] }
  0x65   : > { %393 = vst [vmem:[%s4732_s18 + $0x20] sm:$0xff] %v392_v4  ;;  %395 = vst [vmem:[%s4732_s18 + $0x28] sm:$0xff] %v394_v5  ;;  %v398_v7 = vld [vmem:[%s4727_s21 + $0x38] sm:$0xff]  ;;  %v400_v8 = vld [vmem:[%s4727_s21 + $0x480] sm:$0xff] }
  0x66   : > { %397 = vst [vmem:[%s4732_s18 + $0x30] sm:$0xff] %v396_v6  ;;  %399 = vst [vmem:[%s4732_s18 + $0x38] sm:$0xff] %v398_v7  ;;  %v402_v9 = vld [vmem:[%s4727_s21 + $0x488] sm:$0xff]  ;;  %v404_v10 = vld [vmem:[%s4727_s21 + $0x490] sm:$0xff] }
  0x67   : > { %401 = vst [vmem:[%s4732_s18 + $0x40] sm:$0xff] %v400_v8  ;;  %v406_v11 = vld [vmem:[%s4727_s21 + $0x498] sm:$0xff]  ;;  %403 = vst [vmem:[%s4732_s18 + $0x48] sm:$0xff] %v402_v9  ;;  %v408_v12 = vld [vmem:[%s4727_s21 + $0x4a0] sm:$0xff] }
  0x68   : > { %405 = vst [vmem:[%s4732_s18 + $0x50] sm:$0xff] %v404_v10  ;;  %407 = vst [vmem:[%s4732_s18 + $0x58] sm:$0xff] %v406_v11  ;;  %v410_v13 = vld [vmem:[%s4727_s21 + $0x4a8] sm:$0xff]  ;;  %v412_v14 = vld [vmem:[%s4727_s21 + $0x4b0] sm:$0xff] }
  0x69   : > { %409 = vst [vmem:[%s4732_s18 + $0x60] sm:$0xff] %v408_v12  ;;  %411 = vst [vmem:[%s4732_s18 + $0x68] sm:$0xff] %v410_v13  ;;  %v414_v15 = vld [vmem:[%s4727_s21 + $0x4b8] sm:$0xff]  ;;  %v416_v16 = vld [vmem:[%s4727_s21 + $0x900] sm:$0xff] }
  0x6a   : > { %413 = vst [vmem:[%s4732_s18 + $0x70] sm:$0xff] %v412_v14  ;;  %v418_v17 = vld [vmem:[%s4727_s21 + $0x908] sm:$0xff]  ;;  %415 = vst [vmem:[%s4732_s18 + $0x78] sm:$0xff] %v414_v15  ;;  %v420_v18 = vld [vmem:[%s4727_s21 + $0x910] sm:$0xff] }
  0x6b   : > { %417 = vst [vmem:[%s4732_s18 + $0x80] sm:$0xff] %v416_v16  ;;  %419 = vst [vmem:[%s4732_s18 + $0x88] sm:$0xff] %v418_v17  ;;  %v422_v19 = vld [vmem:[%s4727_s21 + $0x918] sm:$0xff]  ;;  %v424_v20 = vld [vmem:[%s4727_s21 + $0x920] sm:$0xff] }
  0x6c   : > { %421 = vst [vmem:[%s4732_s18 + $0x90] sm:$0xff] %v420_v18  ;;  %423 = vst [vmem:[%s4732_s18 + $0x98] sm:$0xff] %v422_v19  ;;  %v426_v21 = vld [vmem:[%s4727_s21 + $0x928] sm:$0xff]  ;;  %v428_v22 = vld [vmem:[%s4727_s21 + $0x930] sm:$0xff] }
  0x6d   : > { %425 = vst [vmem:[%s4732_s18 + $0xa0] sm:$0xff] %v424_v20  ;;  %v430_v23 = vld [vmem:[%s4727_s21 + $0x938] sm:$0xff]  ;;  %427 = vst [vmem:[%s4732_s18 + $0xa8] sm:$0xff] %v426_v21  ;;  %v432_v24 = vld [vmem:[%s4727_s21 + $0xd80] sm:$0xff] }
  0x6e   : > { %429 = vst [vmem:[%s4732_s18 + $0xb0] sm:$0xff] %v428_v22  ;;  %431 = vst [vmem:[%s4732_s18 + $0xb8] sm:$0xff] %v430_v23  ;;  %v434_v25 = vld [vmem:[%s4727_s21 + $0xd88] sm:$0xff]  ;;  %v436_v26 = vld [vmem:[%s4727_s21 + $0xd90] sm:$0xff] }
  0x6f   : > { %433 = vst [vmem:[%s4732_s18 + $0xc0] sm:$0xff] %v432_v24  ;;  %435 = vst [vmem:[%s4732_s18 + $0xc8] sm:$0xff] %v434_v25  ;;  %v438_v27 = vld [vmem:[%s4727_s21 + $0xd98] sm:$0xff]  ;;  %v440_v28 = vld [vmem:[%s4727_s21 + $0xda0] sm:$0xff] }
  0x70   : > { %437 = vst [vmem:[%s4732_s18 + $0xd0] sm:$0xff] %v436_v26  ;;  %v442_v29 = vld [vmem:[%s4727_s21 + $0xda8] sm:$0xff]  ;;  %439 = vst [vmem:[%s4732_s18 + $0xd8] sm:$0xff] %v438_v27  ;;  %v444_v30 = vld [vmem:[%s4727_s21 + $0xdb0] sm:$0xff] }
  0x71   : > { %441 = vst [vmem:[%s4732_s18 + $0xe0] sm:$0xff] %v440_v28  ;;  %443 = vst [vmem:[%s4732_s18 + $0xe8] sm:$0xff] %v442_v29  ;;  %v446_v31 = vld [vmem:[%s4727_s21 + $0xdb8] sm:$0xff]  ;;  %v448_v32 = vld [vmem:[%s4727_s21 + $0x1200] sm:$0xff] }
  0x72   : > { %445 = vst [vmem:[%s4732_s18 + $0xf0] sm:$0xff] %v444_v30  ;;  %447 = vst [vmem:[%s4732_s18 + $0xf8] sm:$0xff] %v446_v31  ;;  %v450_v33 = vld [vmem:[%s4727_s21 + $0x1208] sm:$0xff]  ;;  %v452_v34 = vld [vmem:[%s4727_s21 + $0x1210] sm:$0xff] }
  0x73   : > { %449 = vst [vmem:[%s4732_s18 + $0x100] sm:$0xff] %v448_v32  ;;  %v454_v35 = vld [vmem:[%s4727_s21 + $0x1218] sm:$0xff]  ;;  %451 = vst [vmem:[%s4732_s18 + $0x108] sm:$0xff] %v450_v33  ;;  %v456_v36 = vld [vmem:[%s4727_s21 + $0x1220] sm:$0xff] }
  0x74   : > { %453 = vst [vmem:[%s4732_s18 + $0x110] sm:$0xff] %v452_v34  ;;  %455 = vst [vmem:[%s4732_s18 + $0x118] sm:$0xff] %v454_v35  ;;  %v458_v37 = vld [vmem:[%s4727_s21 + $0x1228] sm:$0xff]  ;;  %v460_v38 = vld [vmem:[%s4727_s21 + $0x1230] sm:$0xff] }
  0x75   : > { %457 = vst [vmem:[%s4732_s18 + $0x120] sm:$0xff] %v456_v36  ;;  %459 = vst [vmem:[%s4732_s18 + $0x128] sm:$0xff] %v458_v37  ;;  %v462_v39 = vld [vmem:[%s4727_s21 + $0x1238] sm:$0xff]  ;;  %v464_v40 = vld [vmem:[%s4727_s21 + $0x1680] sm:$0xff] }
  0x76   : > { %461 = vst [vmem:[%s4732_s18 + $0x130] sm:$0xff] %v460_v38  ;;  %v466_v41 = vld [vmem:[%s4727_s21 + $0x1688] sm:$0xff]  ;;  %463 = vst [vmem:[%s4732_s18 + $0x138] sm:$0xff] %v462_v39  ;;  %v468_v42 = vld [vmem:[%s4727_s21 + $0x1690] sm:$0xff] }
  0x77   : > { %465 = vst [vmem:[%s4732_s18 + $0x140] sm:$0xff] %v464_v40  ;;  %467 = vst [vmem:[%s4732_s18 + $0x148] sm:$0xff] %v466_v41  ;;  %v470_v43 = vld [vmem:[%s4727_s21 + $0x1698] sm:$0xff]  ;;  %v472_v44 = vld [vmem:[%s4727_s21 + $0x16a0] sm:$0xff] }
  0x78   : > { %469 = vst [vmem:[%s4732_s18 + $0x150] sm:$0xff] %v468_v42  ;;  %471 = vst [vmem:[%s4732_s18 + $0x158] sm:$0xff] %v470_v43  ;;  %v474_v45 = vld [vmem:[%s4727_s21 + $0x16a8] sm:$0xff]  ;;  %v476_v46 = vld [vmem:[%s4727_s21 + $0x16b0] sm:$0xff] }
  0x79   : > { %473 = vst [vmem:[%s4732_s18 + $0x160] sm:$0xff] %v472_v44  ;;  %v478_v47 = vld [vmem:[%s4727_s21 + $0x16b8] sm:$0xff]  ;;  %475 = vst [vmem:[%s4732_s18 + $0x168] sm:$0xff] %v474_v45 }
  0x7a   : > { %477 = vst [vmem:[%s4732_s18 + $0x170] sm:$0xff] %v476_v46  ;;  %479 = vst [vmem:[%s4732_s18 + $0x178] sm:$0xff] %v478_v47 }
  0x7b PF: > { %546 = sbr.rel (%p4662_p3) target bundleno = 1076 (0x434), region = 75 }
  0x80   : > { %4498 = dma.done.wait (%p4673_p6), [#allocation7], 16  }
  0x81   : > { %4500 = vsyncadd (%p4673_p6), [#allocation7], 4294967280 }
  0x82   : > { %4502 = dma.done.wait (%p4673_p6), [#allocation9], 16  }
  0x83   : > { %4504 = vsyncadd (%p4673_p6), [#allocation9], 4294967280  ;;  %s557_s22 = sand.u32 1, %s4507_s1  }
  0x84   : > { %s3939_s25 = smul.u32 384, %s557_s22 }
  0x86   : > { %s4838_s20 = scalar_lea.vmem [#allocation10], %s3939_s25 }
  0x87   : > { %563 = sfence }
  0x88   : > { %s633_s19 = sld [smem:[#allocation4 + %s4519_s28]]  ;;  %p652_p2 = scmp.lt.s32.totalorder %s4519_s28, 7 }
  0x89   : > { %s634_s0 = sld [smem:[#allocation5 + %s4519_s28]]  ;;  %p3623_p7 = scmp.ne.s32.totalorder %s4515_s27, 0 }
  0x8a   : > { %s653_s17 = scalar_select %p652_p2, %s4519_s28, 7 }
  0x8b   : > { %s4845_s15 = sld [smem:[#allocation5 + %s4519_s28]] }
  0x8c   : > { %s4847_s23 = sshll.u32 %s653_s17, 1  ;;  %s3940_s1 = smul.u32 48, %s653_s17 }
  0x8d   : > { %s663_s22 = scalar_lea.vmem %s5551_s8, %s4847_s23  ;;  %s5582_s3 = sld [smem:[#allocation37_spill]] }
  0x8e   : > { %s5583_s14 = sld [smem:[#allocation38_spill]]  ;;  %s3937_s11 = sshll.u32 %s653_s17, 2 }
  0x8f   : > { %s3612_s13 = sadd.s32 4294967295, %s634_s0  ;;  %s5584_s9 = sld [smem:[#allocation39_spill]] }
  0x90   : > { %p636_p3 = scmp.lt.s32.totalorder %s4515_s27, %s3612_s13  ;;  %s5585_s0 = sld [smem:[#allocation36_spill]] }
  0x92   : > { %s637_s16 = scalar_select %p636_p3, %s4515_s27, %s3612_s13 }
  0x93   : > { %s4864_s4 = scalar_lea.vmem %s5582_s3, %s3940_s1 }
  0x94   : > { %s672_s26 = scalar_lea.vmem %s5583_s14, %s4847_s23  ;;  %s638_s21 = sadd.s32 %s637_s16, %s633_s19 }
  0x95   : > { %s4874_s10 = scalar_lea.vmem %s5584_s9, %s3937_s11  ;;  %s3613_s18 = sshll.u32 %s638_s21, 8 }
  0x96   : > { %p640_p6 = scmp.lt.s32.totalorder %s3613_s18, 4607  ;;  %682 = sbr.rel (%p3623_p7) target bundleno = 162 (0xa2), region = 91 }
  0x98   : > { %s5628_s18 = smov (!%p640_p6, %s3613_s18), 4607 }
  0x99   : > { %s3936_s2 = sshll.u32 %s5628_s18, 3 }
  0x9a   : > { %s4880_s25 = scalar_lea.vmem %s5585_s0, %s3936_s2 }
  0x9b   : > { %v4537_v48 = vmov 0.0  }
  0x9c   : > { %683 = vst [vmem:[#allocation2 + $0x30] sm:$0xff] %v4537_v48  ;;  %684 = vst [vmem:[#allocation2] sm:$0xff] %v4537_v48 }
  0x9d   : > { %685 = vst [vmem:[#allocation2 + $0x58] sm:$0xff] %v4537_v48  ;;  %686 = vst [vmem:[#allocation2 + $0x18] sm:$0xff] %v4537_v48 }
  0x9e   : > { %687 = vst [vmem:[#allocation2 + $0x50] sm:$0xff] %v4537_v48  ;;  %688 = vst [vmem:[#allocation2 + $0x20] sm:$0xff] %v4537_v48 }
  0x9f   : > { %689 = vst [vmem:[#allocation2 + $0x8] sm:$0xff] %v4537_v48  ;;  %690 = vst [vmem:[#allocation2 + $0x38] sm:$0xff] %v4537_v48 }
  0xa0   : > { %691 = vst [vmem:[#allocation2 + $0x28] sm:$0xff] %v4537_v48  ;;  %692 = vst [vmem:[#allocation2 + $0x48] sm:$0xff] %v4537_v48 }
  0xa1   : > { %693 = vst [vmem:[#allocation2 + $0x10] sm:$0xff] %v4537_v48  ;;  %694 = vst [vmem:[#allocation2 + $0x40] sm:$0xff] %v4537_v48 }
  0xa2 PF: > { %p3624_p5 = scmp.ge.s32.totalorder %s4515_s27, %s4845_s15 }
  0xa4   : > { %698 = sbr.rel (%p3624_p5) target bundleno = 648 (0x288), region = 95 }
  0xa9   : > { %v4023_v49 = vld [vmem:[%s4880_s25 + $0x74] ss:$8 sps:$4 sm:$0xff]   ;;  %v4027_v51 = vld [vmem:[%s4880_s25 + $0x70] ss:$8 sps:$4 sm:$0xff]   ;;  %v4029_v53 = vld [vmem:[%s4880_s25 + $0x64] ss:$8 sps:$4 sm:$0xff]  }
  0xaa   : > { %v4025_v50 = vld [vmem:[%s4880_s25 + $0x174] ss:$8 sps:$4 sm:$0xff]   ;;  %2535 = vmatprep.subr.bf16.mxu0 %v4023_v49  ;;  %v4028_v52 = vld [vmem:[%s4880_s25 + $0x170] ss:$8 sps:$4 sm:$0xff]   ;;  %v4031_v54 = vld [vmem:[%s4880_s25 + $0x164] ss:$8 sps:$4 sm:$0xff]  }
  0xab   : > { %2598 = vmatprep.subr.bf16.mxu1 %v4025_v50  ;;  %2536 = vmatpush1.bf16.msra.mxu0 %v4027_v51  ;;  %v4033_v55 = vld [vmem:[%s4880_s25 + $0x60] ss:$8 sps:$4 sm:$0xff]   ;;  %v4035_v57 = vld [vmem:[%s4880_s25 + $0x54] ss:$8 sps:$4 sm:$0xff]   ;;  %v4039_v59 = vld [vmem:[%s4880_s25 + $0x50] ss:$8 sps:$4 sm:$0xff]  }
  0xac   : > { %2599 = vmatpush1.bf16.msra.mxu1 %v4028_v52  ;;  %2537 = vmatprep.subr.bf16.mxu0 %v4029_v53  ;;  %v4034_v56 = vld [vmem:[%s4880_s25 + $0x160] ss:$8 sps:$4 sm:$0xff]   ;;  %v4037_v58 = vld [vmem:[%s4880_s25 + $0x154] ss:$8 sps:$4 sm:$0xff]   ;;  %v4040_v60 = vld [vmem:[%s4880_s25 + $0x150] ss:$8 sps:$4 sm:$0xff]  }
  0xad   : > { %2600 = vmatprep.subr.bf16.mxu1 %v4031_v54  ;;  %v4041_v61 = vld [vmem:[%s4880_s25 + $0x44] ss:$8 sps:$4 sm:$0xff]   ;;  %v4045_v63 = vld [vmem:[%s4880_s25 + $0x40] ss:$8 sps:$4 sm:$0xff]   ;;  %v4047_v1 = vld [vmem:[%s4880_s25 + $0x34] ss:$8 sps:$4 sm:$0xff]  }
  0xae   : > { %v4043_v62 = vld [vmem:[%s4880_s25 + $0x144] ss:$8 sps:$4 sm:$0xff]   ;;  %v4046_v0 = vld [vmem:[%s4880_s25 + $0x140] ss:$8 sps:$4 sm:$0xff]   ;;  %v4049_v2 = vld [vmem:[%s4880_s25 + $0x134] ss:$8 sps:$4 sm:$0xff]  }
  0xaf   : > { %2538 = vmatpush1.bf16.msra.mxu0 %v4033_v55  ;;  %v4051_v3 = vld [vmem:[%s4880_s25 + $0x30] ss:$8 sps:$4 sm:$0xff]   ;;  %v4053_v5 = vld [vmem:[%s4880_s25 + $0x24] ss:$8 sps:$4 sm:$0xff]   ;;  %v4057_v7 = vld [vmem:[%s4880_s25 + $0x20] ss:$8 sps:$4 sm:$0xff]  }
  0xb0   : > { %2601 = vmatpush1.bf16.msra.mxu1 %v4034_v56  ;;  %2539 = vmatprep.subr.bf16.mxu0 %v4035_v57  ;;  %v4052_v4 = vld [vmem:[%s4880_s25 + $0x130] ss:$8 sps:$4 sm:$0xff]   ;;  %v4055_v6 = vld [vmem:[%s4880_s25 + $0x124] ss:$8 sps:$4 sm:$0xff]   ;;  %v4058_v8 = vld [vmem:[%s4880_s25 + $0x120] ss:$8 sps:$4 sm:$0xff]  }
  0xb1   : > { %2602 = vmatprep.subr.bf16.mxu1 %v4037_v58  ;;  %v4059_v9 = vld [vmem:[%s4880_s25 + $0x14] ss:$8 sps:$4 sm:$0xff]   ;;  %v4063_v11 = vld [vmem:[%s4880_s25 + $0x10] ss:$8 sps:$4 sm:$0xff]   ;;  %v4065_v13 = vld [vmem:[%s4880_s25 + $0x4] ss:$8 sps:$4 sm:$0xff]  }
  0xb2   : > { %v4061_v10 = vld [vmem:[%s4880_s25 + $0x114] ss:$8 sps:$4 sm:$0xff]   ;;  %v4064_v12 = vld [vmem:[%s4880_s25 + $0x110] ss:$8 sps:$4 sm:$0xff]   ;;  %v4067_v14 = vld [vmem:[%s4880_s25 + $0x104] ss:$8 sps:$4 sm:$0xff]  }
  0xb3   : > { %2540 = vmatpush1.bf16.msra.mxu0 %v4039_v59  ;;  %v4069_v15 = vld [vmem:[%s4880_s25] ss:$8 sps:$4 sm:$0xff]   ;;  %v4071_v17 = vld [vmem:[%s4880_s25 + $0xf4] ss:$8 sps:$4 sm:$0xff]   ;;  %v4075_v19 = vld [vmem:[%s4880_s25 + $0xf0] ss:$8 sps:$4 sm:$0xff]  }
  0xb4   : > { %2603 = vmatpush1.bf16.msra.mxu1 %v4040_v60  ;;  %2541 = vmatprep.subr.bf16.mxu0 %v4041_v61  ;;  %v4070_v16 = vld [vmem:[%s4880_s25 + $0x100] ss:$8 sps:$4 sm:$0xff]   ;;  %v4073_v18 = vld [vmem:[%s4880_s25 + $0x1f4] ss:$8 sps:$4 sm:$0xff]   ;;  %v4076_v20 = vld [vmem:[%s4880_s25 + $0x1f0] ss:$8 sps:$4 sm:$0xff]  }
  0xb5   : > { %2604 = vmatprep.subr.bf16.mxu1 %v4043_v62  ;;  %v4077_v21 = vld [vmem:[%s4880_s25 + $0xe4] ss:$8 sps:$4 sm:$0xff]   ;;  %v4081_v23 = vld [vmem:[%s4880_s25 + $0xe0] ss:$8 sps:$4 sm:$0xff]   ;;  %v4083_v25 = vld [vmem:[%s4880_s25 + $0xd4] ss:$8 sps:$4 sm:$0xff]  }
  0xb6   : > { %v4079_v22 = vld [vmem:[%s4880_s25 + $0x1e4] ss:$8 sps:$4 sm:$0xff]   ;;  %v4082_v24 = vld [vmem:[%s4880_s25 + $0x1e0] ss:$8 sps:$4 sm:$0xff]   ;;  %v4085_v26 = vld [vmem:[%s4880_s25 + $0x1d4] ss:$8 sps:$4 sm:$0xff]  }
  0xb7   : > { %2542 = vmatpush1.bf16.msra.mxu0 %v4045_v63  ;;  %v4087_v27 = vld [vmem:[%s4880_s25 + $0xd0] ss:$8 sps:$4 sm:$0xff]   ;;  %v4089_v29 = vld [vmem:[%s4880_s25 + $0xc4] ss:$8 sps:$4 sm:$0xff]   ;;  %v4093_v31 = vld [vmem:[%s4880_s25 + $0xc0] ss:$8 sps:$4 sm:$0xff]  }
  0xb8   : > { %2605 = vmatpush1.bf16.msra.mxu1 %v4046_v0  ;;  %2543 = vmatprep.subr.bf16.mxu0 %v4047_v1  ;;  %v4088_v28 = vld [vmem:[%s4880_s25 + $0x1d0] ss:$8 sps:$4 sm:$0xff]   ;;  %v4091_v30 = vld [vmem:[%s4880_s25 + $0x1c4] ss:$8 sps:$4 sm:$0xff]   ;;  %v4094_v32 = vld [vmem:[%s4880_s25 + $0x1c0] ss:$8 sps:$4 sm:$0xff]  }
  0xb9   : > { %2606 = vmatprep.subr.bf16.mxu1 %v4049_v2  ;;  %v711_v33 = vld [vmem:[%s4838_s20] sm:$0xff]  ;;  %v712_v35 = vld [vmem:[%s4838_s20 + $0x8] sm:$0xff]  ;;  %v4095_v37 = vld [vmem:[%s4880_s25 + $0xb4] ss:$8 sps:$4 sm:$0xff]  }
  0xba   : > { %v719_v34 = vld [vmem:[%s4838_s20 + $0x40] sm:$0xff]  ;;  %v720_v36 = vld [vmem:[%s4838_s20 + $0x48] sm:$0xff]  ;;  %v4097_v39 = vld [vmem:[%s4880_s25 + $0x1b4] ss:$8 sps:$4 sm:$0xff]  }
  0xbb   : > { %2544 = vmatpush1.bf16.msra.mxu0 %v4051_v3  ;;  %v3626_v38 = vcombine.high %v711_v33, %v719_v34  ;;  %v3628_v40 = vcombine.high %v712_v35, %v720_v36  ;;  %v4099_v41 = vld [vmem:[%s4880_s25 + $0xb0] ss:$8 sps:$4 sm:$0xff]   ;;  %v4101_v43 = vld [vmem:[%s4880_s25 + $0xa4] ss:$8 sps:$4 sm:$0xff]   ;;  %v4105_v45 = vld [vmem:[%s4880_s25 + $0xa0] ss:$8 sps:$4 sm:$0xff]   ;;  %v3625_v57 = vcombine.low %v711_v33, %v719_v34  ;;  %v3627_v58 = vcombine.low %v712_v35, %v720_v36 }
  0xbc   : > { %2607 = vmatpush1.bf16.msra.mxu1 %v4052_v4  ;;  %2545 = vmatprep.subr.bf16.mxu0 %v4053_v5  ;;  %v4100_v42 = vld [vmem:[%s4880_s25 + $0x1b0] ss:$8 sps:$4 sm:$0xff]   ;;  %v4103_v44 = vld [vmem:[%s4880_s25 + $0x1a4] ss:$8 sps:$4 sm:$0xff]   ;;  %v4106_v46 = vld [vmem:[%s4880_s25 + $0x1a0] ss:$8 sps:$4 sm:$0xff]  }
  0xbd   : > { %2608 = vmatprep.subr.bf16.mxu1 %v4055_v6  ;;  %2567 = vmatprep.mubr.bf16.mxu0 %v3626_v38  ;;  %v4107_v47 = vld [vmem:[%s4880_s25 + $0x94] ss:$8 sps:$4 sm:$0xff]   ;;  %v4111_v49 = vld [vmem:[%s4880_s25 + $0x90] ss:$8 sps:$4 sm:$0xff]   ;;  %v4113_v51 = vld [vmem:[%s4880_s25 + $0x84] ss:$8 sps:$4 sm:$0xff]  }
  0xbe   : > { %2630 = vmatprep.mubr.bf16.mxu1 %v3628_v40  ;;  %v4109_v48 = vld [vmem:[%s4880_s25 + $0x194] ss:$8 sps:$4 sm:$0xff]   ;;  %v4112_v50 = vld [vmem:[%s4880_s25 + $0x190] ss:$8 sps:$4 sm:$0xff]   ;;  %v4115_v52 = vld [vmem:[%s4880_s25 + $0x184] ss:$8 sps:$4 sm:$0xff]  }
  0xbf   : > { %2546 = vmatpush1.bf16.msra.mxu0 %v4057_v7  ;;  %v4117_v53 = vld [vmem:[%s4880_s25 + $0x80] ss:$8 sps:$4 sm:$0xff]   ;;  %v4121_v55 = vld [vmem:[%s4880_s25 + $0x274] ss:$8 sps:$4 sm:$0xff]   ;;  %v4119_v59 = vld [vmem:[%s4880_s25 + $0x270] ss:$8 sps:$4 sm:$0xff]  }
  0xc0   : > { %2609 = vmatpush1.bf16.msra.mxu1 %v4058_v8  ;;  %2547 = vmatprep.subr.bf16.mxu0 %v4059_v9  ;;  %v4118_v54 = vld [vmem:[%s4880_s25 + $0x180] ss:$8 sps:$4 sm:$0xff]   ;;  %v4124_v56 = vld [vmem:[%s4880_s25 + $0x374] ss:$8 sps:$4 sm:$0xff]   ;;  %v4122_v60 = vld [vmem:[%s4880_s25 + $0x370] ss:$8 sps:$4 sm:$0xff]  }
  0xc1   : > { %2610 = vmatprep.subr.bf16.mxu1 %v4061_v10  ;;  %v4127_v61 = vld [vmem:[%s4880_s25 + $0x264] ss:$8 sps:$4 sm:$0xff]   ;;  %v4125_v63 = vld [vmem:[%s4880_s25 + $0x260] ss:$8 sps:$4 sm:$0xff]   ;;  %v4133_v1 = vld [vmem:[%s4880_s25 + $0x254] ss:$8 sps:$4 sm:$0xff]  }
  0xc2   : > { %v4130_v62 = vld [vmem:[%s4880_s25 + $0x364] ss:$8 sps:$4 sm:$0xff]   ;;  %v4128_v0 = vld [vmem:[%s4880_s25 + $0x360] ss:$8 sps:$4 sm:$0xff]   ;;  %v4136_v2 = vld [vmem:[%s4880_s25 + $0x354] ss:$8 sps:$4 sm:$0xff]  }
  0xc3   : > { %2548 = vmatpush1.bf16.msra.mxu0 %v4063_v11  ;;  %v4131_v3 = vld [vmem:[%s4880_s25 + $0x250] ss:$8 sps:$4 sm:$0xff]   ;;  %v4139_v5 = vld [vmem:[%s4880_s25 + $0x244] ss:$8 sps:$4 sm:$0xff]   ;;  %v4157_v33 = vld [vmem:[%s4880_s25 + $0x214] ss:$8 sps:$4 sm:$0xff]  }
  0xc4   : > { %2611 = vmatpush1.bf16.msra.mxu1 %v4064_v12  ;;  %2549 = vmatprep.subr.bf16.mxu0 %v4065_v13  ;;  %v4134_v4 = vld [vmem:[%s4880_s25 + $0x350] ss:$8 sps:$4 sm:$0xff]   ;;  %v4142_v6 = vld [vmem:[%s4880_s25 + $0x344] ss:$8 sps:$4 sm:$0xff]   ;;  %v4137_v12 = vld [vmem:[%s4880_s25 + $0x240] ss:$8 sps:$4 sm:$0xff]  }
  0xc5   : > { %2612 = vmatprep.subr.bf16.mxu1 %v4067_v14  ;;  %v727_v7 = vld [vmem:[%s4838_s20 + $0x80] sm:$0xff]  ;;  %v728_v10 = vld [vmem:[%s4838_s20 + $0x88] sm:$0xff]  ;;  %v4160_v34 = vld [vmem:[%s4880_s25 + $0x314] ss:$8 sps:$4 sm:$0xff]  }
  0xc6   : > { %v735_v8 = vld [vmem:[%s4838_s20 + $0xc0] sm:$0xff]  ;;  %v736_v11 = vld [vmem:[%s4838_s20 + $0xc8] sm:$0xff]  ;;  %v4155_v35 = vld [vmem:[%s4880_s25 + $0x210] ss:$8 sps:$4 sm:$0xff]  }
  0xc7   : > { %2550 = vmatpush1.bf16.msra.mxu0 %v4069_v15  ;;  %v3642_v9 = vcombine.high %v727_v7, %v735_v8  ;;  %v4140_v13 = vld [vmem:[%s4880_s25 + $0x340] ss:$8 sps:$4 sm:$0xff]   ;;  %v3644_v14 = vcombine.high %v728_v10, %v736_v11  ;;  %v3641_v15 = vcombine.low %v727_v7, %v735_v8  ;;  %v4158_v36 = vld [vmem:[%s4880_s25 + $0x310] ss:$8 sps:$4 sm:$0xff]   ;;  %v4166_v38 = vld [vmem:[%s4880_s25 + $0x304] ss:$8 sps:$4 sm:$0xff]  }
  0xc8   : > { %2613 = vmatpush1.bf16.msra.mxu1 %v4070_v16  ;;  %2551 = vmatprep.subr.bf16.mxu0 %v4071_v17  ;;  %v3643_v16 = vcombine.low %v728_v10, %v736_v11  ;;  %v4145_v17 = vld [vmem:[%s4880_s25 + $0x234] ss:$8 sps:$4 sm:$0xff]   ;;  %v4206_v10 = vld [vmem:[%s4880_s25 + $0x390] ss:$8 sps:$4 sm:$0xff]   ;;  %v4211_v11 = vld [vmem:[%s4880_s25 + $0x284] ss:$8 sps:$4 sm:$0xff]  }
  0xc9   : > { %2614 = vmatprep.subr.bf16.mxu1 %v4073_v18  ;;  %v4148_v18 = vld [vmem:[%s4880_s25 + $0x334] ss:$8 sps:$4 sm:$0xff]  }
  0xca   : > { %v4995_v40 = vld [vmem:[%s4838_s20 + $0x50] sm:$0xff] }
  0xcb   : > { %2552 = vmatpush2.bf16.msra.mxu0 %v4075_v19  ;;  %v4143_v19 = vld [vmem:[%s4880_s25 + $0x230] ss:$8 sps:$4 sm:$0xff]   ;;  %v4205_v7 = vld [vmem:[%s4880_s25 + $0x294] ss:$8 sps:$4 sm:$0xff]  }
  0xcc   : > { %2615 = vmatpush2.bf16.msra.mxu1 %v4076_v20  ;;  %2553 = vmatprep.subr.bf16.mxu0 %v4077_v21  ;;  %v4146_v20 = vld [vmem:[%s4880_s25 + $0x330] ss:$8 sps:$4 sm:$0xff]   ;;  %v4151_v21 = vld [vmem:[%s4880_s25 + $0x224] ss:$8 sps:$4 sm:$0xff]   ;;  %v4208_v8 = vld [vmem:[%s4880_s25 + $0x394] ss:$8 sps:$4 sm:$0xff]  }
  0xcd   : > { %2616 = vmatprep.subr.bf16.mxu1 %v4079_v22  ;;  %v4154_v22 = vld [vmem:[%s4880_s25 + $0x324] ss:$8 sps:$4 sm:$0xff]  }
  0xcf   : > { %2554 = vmatpush2.bf16.msra.mxu0 %v4081_v23  ;;  %v743_v23 = vld [vmem:[%s4838_s20 + $0x100] sm:$0xff] }
  0xd0   : > { %2617 = vmatpush2.bf16.msra.mxu1 %v4082_v24  ;;  %2555 = vmatprep.subr.bf16.mxu0 %v4083_v25  ;;  %v751_v24 = vld [vmem:[%s4838_s20 + $0x140] sm:$0xff]  ;;  %v744_v25 = vld [vmem:[%s4838_s20 + $0x108] sm:$0xff] }
  0xd1   : > { %2618 = vmatprep.subr.bf16.mxu1 %v4085_v26  ;;  %v3658_v26 = vcombine.high %v743_v23, %v751_v24 }
  0xd3   : > { %2556 = vmatpush2.bf16.msra.mxu0 %v4087_v27  ;;  %v752_v27 = vld [vmem:[%s4838_s20 + $0x148] sm:$0xff] }
  0xd4   : > { %2619 = vmatpush2.bf16.msra.mxu1 %v4088_v28  ;;  %2557 = vmatprep.subr.bf16.mxu0 %v4089_v29  ;;  %v3660_v28 = vcombine.high %v744_v25, %v752_v27  ;;  %v4149_v29 = vld [vmem:[%s4880_s25 + $0x220] ss:$8 sps:$4 sm:$0xff]  }
  0xd5   : > { %2620 = vmatprep.subr.bf16.mxu1 %v4091_v30  ;;  %v4152_v30 = vld [vmem:[%s4880_s25 + $0x320] ss:$8 sps:$4 sm:$0xff]  }
  0xd7   : > { %2558 = vmatpush2.bf16.msra.mxu0 %v4093_v31  ;;  %v3657_v31 = vcombine.low %v743_v23, %v751_v24  ;;  %v730_v23 = vld [vmem:[%s4838_s20 + $0x98] sm:$0xff] }
  0xd8   : > { %2621 = vmatpush2.bf16.msra.mxu1 %v4094_v32  ;;  %2559 = vmatprep.subr.bf16.mxu0 %v4095_v37  ;;  %v3659_v32 = vcombine.low %v744_v25, %v752_v27  ;;  %v4163_v37 = vld [vmem:[%s4880_s25 + $0x204] ss:$8 sps:$4 sm:$0xff]   ;;  %v738_v24 = vld [vmem:[%s4838_s20 + $0xd8] sm:$0xff] }
  0xd9   : > { %2622 = vmatprep.subr.bf16.mxu1 %v4097_v39  ;;  %v4992_v39 = vld [vmem:[%s4838_s20 + $0x10] sm:$0xff]  ;;  %v4223_v25 = vld [vmem:[%s4880_s25 + $0x464] ss:$8 sps:$4 sm:$0xff]  }
  0xdb   : > { %2560 = vmatpush2.bf16.msra.mxu0 %v4099_v41  ;;  %v3630_v41 = vcombine.high %v4992_v39, %v4995_v40 }
  0xdc   : > { %2623 = vmatpush2.bf16.msra.mxu1 %v4100_v42  ;;  %2561 = vmatprep.subr.bf16.mxu0 %v4101_v43  ;;  %v5000_v42 = vld [vmem:[%s4838_s20 + $0x18] sm:$0xff] }
  0xdd   : > { %2624 = vmatprep.subr.bf16.mxu1 %v4103_v44  ;;  %v5003_v43 = vld [vmem:[%s4838_s20 + $0x58] sm:$0xff]  ;;  %v4161_v44 = vld [vmem:[%s4880_s25 + $0x200] ss:$8 sps:$4 sm:$0xff]  }
  0xdf   : > { %2562 = vmatpush2.bf16.msra.mxu0 %v4105_v45  ;;  %v4164_v45 = vld [vmem:[%s4880_s25 + $0x300] ss:$8 sps:$4 sm:$0xff]  }
  0xe0   : > { %2625 = vmatpush2.bf16.msra.mxu1 %v4106_v46  ;;  %2563 = vmatprep.subr.bf16.mxu0 %v4107_v47  ;;  %v3632_v46 = vcombine.high %v5000_v42, %v5003_v43  ;;  %v4169_v47 = vld [vmem:[%s4880_s25 + $0x2f4] ss:$8 sps:$4 sm:$0xff]  }
  0xe1   : > { %2626 = vmatprep.subr.bf16.mxu1 %v4109_v48  ;;  %v4172_v48 = vld [vmem:[%s4880_s25 + $0x3f4] ss:$8 sps:$4 sm:$0xff]  }
  0xe3   : > { %2564 = vmatpush2.bf16.msra.mxu0 %v4111_v49  ;;  %v4167_v49 = vld [vmem:[%s4880_s25 + $0x2f0] ss:$8 sps:$4 sm:$0xff]  }
  0xe4   : > { %2627 = vmatpush2.bf16.msra.mxu1 %v4112_v50  ;;  %2565 = vmatprep.subr.bf16.mxu0 %v4113_v51  ;;  %v4170_v50 = vld [vmem:[%s4880_s25 + $0x3f0] ss:$8 sps:$4 sm:$0xff]   ;;  %v4175_v51 = vld [vmem:[%s4880_s25 + $0x2e4] ss:$8 sps:$4 sm:$0xff]  }
  0xe5   : > { %2628 = vmatprep.subr.bf16.mxu1 %v4115_v52  ;;  %v4178_v52 = vld [vmem:[%s4880_s25 + $0x3e4] ss:$8 sps:$4 sm:$0xff]  }
  0xe7   : > { %2566 = vmatpush2.bf16.msra.mxu0 %v4117_v53  ;;  %v4173_v53 = vld [vmem:[%s4880_s25 + $0x2e0] ss:$8 sps:$4 sm:$0xff]  }
  0xe8   : > { %2629 = vmatpush2.bf16.msra.mxu1 %v4118_v54  ;;  %2661 = vmatprep.subr.bf16.mxu0 %v4121_v55  ;;  %v4176_v54 = vld [vmem:[%s4880_s25 + $0x3e0] ss:$8 sps:$4 sm:$0xff]   ;;  %v4181_v55 = vld [vmem:[%s4880_s25 + $0x2d4] ss:$8 sps:$4 sm:$0xff]  }
  0xe9   : > { %2724 = vmatprep.subr.bf16.mxu1 %v4124_v56  ;;  %v4184_v56 = vld [vmem:[%s4880_s25 + $0x3d4] ss:$8 sps:$4 sm:$0xff]  }
  0xea   : > { %2568 = vmatmul.mubr.bf16.vlgmr.msra.gmra.mxu0 %v3625_v57  ;;  %v4179_v57 = vld [vmem:[%s4880_s25 + $0x2d0] ss:$8 sps:$4 sm:$0xff]  }
  0xeb   : > { %2631 = vmatmul.mubr.bf16.vlgmr.msra.gmra.mxu1 %v3627_v58  ;;  %2662 = vmatpush1.bf16.msra.mxu0 %v4119_v59  ;;  %v4182_v58 = vld [vmem:[%s4880_s25 + $0x3d0] ss:$8 sps:$4 sm:$0xff]   ;;  %v4187_v59 = vld [vmem:[%s4880_s25 + $0x2c4] ss:$8 sps:$4 sm:$0xff]  }
  0xec   : > { %2725 = vmatpush1.bf16.msra.mxu1 %v4122_v60  ;;  %2663 = vmatprep.subr.bf16.mxu0 %v4127_v61  ;;  %v4190_v60 = vld [vmem:[%s4880_s25 + $0x3c4] ss:$8 sps:$4 sm:$0xff]   ;;  %v4185_v61 = vld [vmem:[%s4880_s25 + $0x2c0] ss:$8 sps:$4 sm:$0xff]  }
  0xed   : > { %2726 = vmatprep.subr.bf16.mxu1 %v4130_v62  ;;  %2577 = vmatprep.mubr.bf16.mxu0 %v3642_v9  ;;  %v4188_v62 = vld [vmem:[%s4880_s25 + $0x3c0] ss:$8 sps:$4 sm:$0xff]   ;;  %v4203_v9 = vld [vmem:[%s4880_s25 + $0x290] ss:$8 sps:$4 sm:$0xff]  }
  0xee   : > { %2640 = vmatprep.mubr.bf16.mxu1 %v3644_v14  ;;  %v4212_v14 = vld [vmem:[%s4880_s25 + $0x380] ss:$8 sps:$4 sm:$0xff]  }
  0xef   : > { %2664 = vmatpush1.bf16.msra.mxu0 %v4125_v63  ;;  %v4193_v63 = vld [vmem:[%s4880_s25 + $0x2b4] ss:$8 sps:$4 sm:$0xff]  }
  0xf0   : > { %2727 = vmatpush1.bf16.msra.mxu1 %v4128_v0  ;;  %2665 = vmatprep.subr.bf16.mxu0 %v4133_v1  ;;  %v4196_v0 = vld [vmem:[%s4880_s25 + $0x3b4] ss:$8 sps:$4 sm:$0xff]   ;;  %v4191_v1 = vld [vmem:[%s4880_s25 + $0x2b0] ss:$8 sps:$4 sm:$0xff]  }
  0xf1   : > { %2728 = vmatprep.subr.bf16.mxu1 %v4136_v2  ;;  %v4194_v2 = vld [vmem:[%s4880_s25 + $0x3b0] ss:$8 sps:$4 sm:$0xff]  }
  0xf2   : > { %2578 = vmatmul.mubr.bf16.gmra.mxu0 %v3641_v15  ;;  %v4217_v15 = vld [vmem:[%s4880_s25 + $0x474] ss:$8 sps:$4 sm:$0xff]  }
  0xf3   : > { %2666 = vmatpush1.bf16.msra.mxu0 %v4131_v3  ;;  %2641 = vmatmul.mubr.bf16.gmra.mxu1 %v3643_v16  ;;  %v4199_v3 = vld [vmem:[%s4880_s25 + $0x2a4] ss:$8 sps:$4 sm:$0xff]   ;;  %v4220_v16 = vld [vmem:[%s4880_s25 + $0x574] ss:$8 sps:$4 sm:$0xff]  }
  0xf4   : > { %2729 = vmatpush1.bf16.msra.mxu1 %v4134_v4  ;;  %2667 = vmatprep.subr.bf16.mxu0 %v4139_v5  ;;  %v4202_v4 = vld [vmem:[%s4880_s25 + $0x3a4] ss:$8 sps:$4 sm:$0xff]   ;;  %v4197_v5 = vld [vmem:[%s4880_s25 + $0x2a0] ss:$8 sps:$4 sm:$0xff]  }
  0xf5   : > { %2730 = vmatprep.subr.bf16.mxu1 %v4142_v6  ;;  %2587 = vmatprep.mubr.bf16.mxu0 %v3658_v26  ;;  %v4200_v6 = vld [vmem:[%s4880_s25 + $0x3a0] ss:$8 sps:$4 sm:$0xff]   ;;  %v4226_v26 = vld [vmem:[%s4880_s25 + $0x564] ss:$8 sps:$4 sm:$0xff]  }
  0xf6   : > { %2650 = vmatprep.mubr.bf16.mxu1 %v3660_v28  ;;  %v3648_v28 = vcombine.high %v730_v23, %v738_v24 }
  0xf7   : > { %2668 = vmatpush1.bf16.msra.mxu0 %v4137_v12  ;;  %v4214_v12 = vld [vmem:[%s4880_s25 + $0x384] ss:$8 sps:$4 sm:$0xff]  }
  0xf8   : > { %2731 = vmatpush1.bf16.msra.mxu1 %v4140_v13  ;;  %2669 = vmatprep.subr.bf16.mxu0 %v4145_v17  ;;  %v4209_v13 = vld [vmem:[%s4880_s25 + $0x280] ss:$8 sps:$4 sm:$0xff]   ;;  %v4215_v17 = vld [vmem:[%s4880_s25 + $0x470] ss:$8 sps:$4 sm:$0xff]  }
  0xf9   : > { %2732 = vmatprep.subr.bf16.mxu1 %v4148_v18  ;;  %v4218_v18 = vld [vmem:[%s4880_s25 + $0x570] ss:$8 sps:$4 sm:$0xff]  }
  0xfa   : > { %2588 = vmatmul.mubr.bf16.gmra.mxu0 %v3657_v31  ;;  %v4229_v31 = vld [vmem:[%s4880_s25 + $0x454] ss:$8 sps:$4 sm:$0xff]  }
  0xfb   : > { %2670 = vmatpush1.bf16.msra.mxu0 %v4143_v19  ;;  %2651 = vmatmul.mubr.bf16.gmra.mxu1 %v3659_v32  ;;  %v729_v19 = vld [vmem:[%s4838_s20 + $0x90] sm:$0xff] }
  0xfc   : > { %2733 = vmatpush1.bf16.msra.mxu1 %v4146_v20  ;;  %2671 = vmatprep.subr.bf16.mxu0 %v4151_v21  ;;  %v737_v20 = vld [vmem:[%s4838_s20 + $0xd0] sm:$0xff]  ;;  %v3629_v21 = vcombine.low %v4992_v39, %v4995_v40 }
  0xfd   : > { %2734 = vmatprep.subr.bf16.mxu1 %v4154_v22  ;;  %2693 = vmatprep.mubr.bf16.mxu0 %v3630_v41  ;;  %v3631_v22 = vcombine.low %v5000_v42, %v5003_v43  ;;  %v3646_v27 = vcombine.high %v729_v19, %v737_v20  ;;  %v4232_v32 = vld [vmem:[%s4880_s25 + $0x554] ss:$8 sps:$4 sm:$0xff]   ;;  %v4227_v39 = vld [vmem:[%s4880_s25 + $0x450] ss:$8 sps:$4 sm:$0xff]   ;;  %v4235_v41 = vld [vmem:[%s4880_s25 + $0x444] ss:$8 sps:$4 sm:$0xff]  }
  0xfe   : > { %2756 = vmatprep.mubr.bf16.mxu1 %v3632_v46  ;;  %v4230_v40 = vld [vmem:[%s4880_s25 + $0x550] ss:$8 sps:$4 sm:$0xff]   ;;  %v4238_v42 = vld [vmem:[%s4880_s25 + $0x544] ss:$8 sps:$4 sm:$0xff]   ;;  %v4236_v46 = vld [vmem:[%s4880_s25 + $0x540] ss:$8 sps:$4 sm:$0xff]  }
  0xff   : > { %2672 = vmatpush1.bf16.msra.mxu0 %v4149_v29  ;;  %v4221_v29 = vld [vmem:[%s4880_s25 + $0x460] ss:$8 sps:$4 sm:$0xff]  }
 0x100   : > { %2735 = vmatpush1.bf16.msra.mxu1 %v4152_v30  ;;  %2673 = vmatprep.subr.bf16.mxu0 %v4157_v33  ;;  %v4224_v30 = vld [vmem:[%s4880_s25 + $0x560] ss:$8 sps:$4 sm:$0xff]   ;;  %v745_v33 = vld [vmem:[%s4838_s20 + $0x110] sm:$0xff] }
 0x101   : > { %2736 = vmatprep.subr.bf16.mxu1 %v4160_v34  ;;  %v753_v34 = vld [vmem:[%s4838_s20 + $0x150] sm:$0xff] }
 0x102   : > { %v3662_v43 = vcombine.high %v745_v33, %v753_v34 }
 0x103   : > { %2674 = vmatpush1.bf16.msra.mxu0 %v4155_v35  ;;  %v3645_v35 = vcombine.low %v729_v19, %v737_v20  ;;  %v4283_v19 = vld [vmem:[%s4880_s25 + $0x4c4] ss:$8 sps:$4 sm:$0xff]  }
 0x104   : > { %2737 = vmatpush1.bf16.msra.mxu1 %v4158_v36  ;;  %2675 = vmatprep.subr.bf16.mxu0 %v4163_v37  ;;  %v3647_v36 = vcombine.low %v730_v23, %v738_v24  ;;  %v746_v37 = vld [vmem:[%s4838_s20 + $0x118] sm:$0xff]  ;;  %v4286_v20 = vld [vmem:[%s4880_s25 + $0x5c4] ss:$8 sps:$4 sm:$0xff]  }
 0x105   : > { %2738 = vmatprep.subr.bf16.mxu1 %v4166_v38  ;;  %v754_v38 = vld [vmem:[%s4838_s20 + $0x158] sm:$0xff] }
 0x106   : > { %v4289_v23 = vld [vmem:[%s4880_s25 + $0x4b4] ss:$8 sps:$4 sm:$0xff]  }
 0x107   : > { %2676 = vmatpush1.bf16.msra.mxu0 %v4161_v44  ;;  %v3664_v44 = vcombine.high %v746_v37, %v754_v38  ;;  %v4292_v24 = vld [vmem:[%s4880_s25 + $0x5b4] ss:$8 sps:$4 sm:$0xff]  }
 0x108   : > { %2739 = vmatpush1.bf16.msra.mxu1 %v4164_v45  ;;  %2677 = vmatprep.subr.bf16.mxu0 %v4169_v47  ;;  %v4233_v45 = vld [vmem:[%s4880_s25 + $0x440] ss:$8 sps:$4 sm:$0xff]   ;;  %v4241_v47 = vld [vmem:[%s4880_s25 + $0x434] ss:$8 sps:$4 sm:$0xff]  }
 0x109   : > { %2740 = vmatprep.subr.bf16.mxu1 %v4172_v48  ;;  %v4244_v48 = vld [vmem:[%s4880_s25 + $0x534] ss:$8 sps:$4 sm:$0xff]  }
 0x10b   : > { %2678 = vmatpush2.bf16.msra.mxu0 %v4167_v49  ;;  %v5072_v49 = vld [vmem:[%s4838_s20 + $0x20] sm:$0xff] }
 0x10c   : > { %2741 = vmatpush2.bf16.msra.mxu1 %v4170_v50  ;;  %2679 = vmatprep.subr.bf16.mxu0 %v4175_v51  ;;  %v5075_v50 = vld [vmem:[%s4838_s20 + $0x60] sm:$0xff]  ;;  %v5078_v51 = vld [vmem:[%s4838_s20 + $0x28] sm:$0xff] }
 0x10d   : > { %2742 = vmatprep.subr.bf16.mxu1 %v4178_v52  ;;  %v3661_v52 = vcombine.low %v745_v33, %v753_v34  ;;  %v4299_v33 = vld [vmem:[%s4880_s25 + $0x490] ss:$8 sps:$4 sm:$0xff]  }
 0x10e   : > { %v4302_v34 = vld [vmem:[%s4880_s25 + $0x590] ss:$8 sps:$4 sm:$0xff]  }
 0x10f   : > { %2680 = vmatpush2.bf16.msra.mxu0 %v4173_v53  ;;  %v3663_v53 = vcombine.low %v746_v37, %v754_v38  ;;  %v4305_v37 = vld [vmem:[%s4880_s25 + $0x480] ss:$8 sps:$4 sm:$0xff]  }
 0x110   : > { %2743 = vmatpush2.bf16.msra.mxu1 %v4176_v54  ;;  %2681 = vmatprep.subr.bf16.mxu0 %v4181_v55  ;;  %v5081_v54 = vld [vmem:[%s4838_s20 + $0x68] sm:$0xff]  ;;  %v4239_v55 = vld [vmem:[%s4880_s25 + $0x430] ss:$8 sps:$4 sm:$0xff]  }
 0x111   : > { %2744 = vmatprep.subr.bf16.mxu1 %v4184_v56  ;;  %v4242_v56 = vld [vmem:[%s4880_s25 + $0x530] ss:$8 sps:$4 sm:$0xff]   ;;  %v4308_v38 = vld [vmem:[%s4880_s25 + $0x580] ss:$8 sps:$4 sm:$0xff]  }
 0x113   : > { %2682 = vmatpush2.bf16.msra.mxu0 %v4179_v57  ;;  %v4247_v57 = vld [vmem:[%s4880_s25 + $0x424] ss:$8 sps:$4 sm:$0xff]  }
 0x114   : > { %2745 = vmatpush2.bf16.msra.mxu1 %v4182_v58  ;;  %2683 = vmatprep.subr.bf16.mxu0 %v4187_v59  ;;  %v4250_v58 = vld [vmem:[%s4880_s25 + $0x524] ss:$8 sps:$4 sm:$0xff]   ;;  %v3634_v59 = vcombine.high %v5072_v49, %v5075_v50 }
 0x115   : > { %2746 = vmatprep.subr.bf16.mxu1 %v4190_v60  ;;  %v3636_v60 = vcombine.high %v5078_v51, %v5081_v54 }
 0x117   : > { %2684 = vmatpush2.bf16.msra.mxu0 %v4185_v61  ;;  %v4245_v61 = vld [vmem:[%s4880_s25 + $0x420] ss:$8 sps:$4 sm:$0xff]  }
 0x118   : > { %2747 = vmatpush2.bf16.msra.mxu1 %v4188_v62  ;;  %2685 = vmatprep.subr.bf16.mxu0 %v4193_v63  ;;  %v4248_v62 = vld [vmem:[%s4880_s25 + $0x520] ss:$8 sps:$4 sm:$0xff]   ;;  %v4253_v63 = vld [vmem:[%s4880_s25 + $0x414] ss:$8 sps:$4 sm:$0xff]  }
 0x119   : > { %2748 = vmatprep.subr.bf16.mxu1 %v4196_v0  ;;  %v4256_v0 = vld [vmem:[%s4880_s25 + $0x514] ss:$8 sps:$4 sm:$0xff]  }
 0x11b   : > { %2686 = vmatpush2.bf16.msra.mxu0 %v4191_v1  ;;  %v4251_v1 = vld [vmem:[%s4880_s25 + $0x410] ss:$8 sps:$4 sm:$0xff]  }
 0x11c   : > { %2749 = vmatpush2.bf16.msra.mxu1 %v4194_v2  ;;  %2687 = vmatprep.subr.bf16.mxu0 %v4199_v3  ;;  %v4254_v2 = vld [vmem:[%s4880_s25 + $0x510] ss:$8 sps:$4 sm:$0xff]   ;;  %v4259_v3 = vld [vmem:[%s4880_s25 + $0x404] ss:$8 sps:$4 sm:$0xff]  }
 0x11d   : > { %2750 = vmatprep.subr.bf16.mxu1 %v4202_v4  ;;  %v4262_v4 = vld [vmem:[%s4880_s25 + $0x504] ss:$8 sps:$4 sm:$0xff]  }
 0x11f   : > { %2688 = vmatpush2.bf16.msra.mxu0 %v4197_v5  ;;  %v4257_v5 = vld [vmem:[%s4880_s25 + $0x400] ss:$8 sps:$4 sm:$0xff]  }
 0x120   : > { %2751 = vmatpush2.bf16.msra.mxu1 %v4200_v6  ;;  %2689 = vmatprep.subr.bf16.mxu0 %v4205_v7  ;;  %v4260_v6 = vld [vmem:[%s4880_s25 + $0x500] ss:$8 sps:$4 sm:$0xff]   ;;  %v4265_v7 = vld [vmem:[%s4880_s25 + $0x4f4] ss:$8 sps:$4 sm:$0xff]  }
 0x121   : > { %2752 = vmatprep.subr.bf16.mxu1 %v4208_v8  ;;  %v4268_v8 = vld [vmem:[%s4880_s25 + $0x5f4] ss:$8 sps:$4 sm:$0xff]  }
 0x123   : > { %2690 = vmatpush2.bf16.msra.mxu0 %v4203_v9  ;;  %v4263_v9 = vld [vmem:[%s4880_s25 + $0x4f0] ss:$8 sps:$4 sm:$0xff]  }
 0x124   : > { %2753 = vmatpush2.bf16.msra.mxu1 %v4206_v10  ;;  %2691 = vmatprep.subr.bf16.mxu0 %v4211_v11  ;;  %v4266_v10 = vld [vmem:[%s4880_s25 + $0x5f0] ss:$8 sps:$4 sm:$0xff]   ;;  %v4271_v11 = vld [vmem:[%s4880_s25 + $0x4e4] ss:$8 sps:$4 sm:$0xff]  }
 0x125   : > { %2754 = vmatprep.subr.bf16.mxu1 %v4214_v12  ;;  %v4274_v12 = vld [vmem:[%s4880_s25 + $0x5e4] ss:$8 sps:$4 sm:$0xff]  }
 0x127   : > { %2692 = vmatpush2.bf16.msra.mxu0 %v4209_v13  ;;  %v4269_v13 = vld [vmem:[%s4880_s25 + $0x4e0] ss:$8 sps:$4 sm:$0xff]  }
 0x128   : > { %2755 = vmatpush2.bf16.msra.mxu1 %v4212_v14  ;;  %2787 = vmatprep.subr.bf16.mxu0 %v4217_v15  ;;  %v4272_v14 = vld [vmem:[%s4880_s25 + $0x5e0] ss:$8 sps:$4 sm:$0xff]   ;;  %v4277_v15 = vld [vmem:[%s4880_s25 + $0x4d4] ss:$8 sps:$4 sm:$0xff]  }
 0x129   : > { %2850 = vmatprep.subr.bf16.mxu1 %v4220_v16  ;;  %v4280_v16 = vld [vmem:[%s4880_s25 + $0x5d4] ss:$8 sps:$4 sm:$0xff]  }
 0x12a   : > { %2694 = vmatmul.mubr.bf16.vlgmr.msra.gmra.mxu0 %v3629_v21  ;;  %v4281_v21 = vld [vmem:[%s4880_s25 + $0x4c0] ss:$8 sps:$4 sm:$0xff]  }
 0x12b   : > { %2757 = vmatmul.mubr.bf16.vlgmr.msra.gmra.mxu1 %v3631_v22  ;;  %2788 = vmatpush1.bf16.msra.mxu0 %v4215_v17  ;;  %v4275_v17 = vld [vmem:[%s4880_s25 + $0x4d0] ss:$8 sps:$4 sm:$0xff]   ;;  %v4284_v22 = vld [vmem:[%s4880_s25 + $0x5c0] ss:$8 sps:$4 sm:$0xff]  }
 0x12c   : > { %2851 = vmatpush1.bf16.msra.mxu1 %v4218_v18  ;;  %2789 = vmatprep.subr.bf16.mxu0 %v4223_v25  ;;  %v4278_v18 = vld [vmem:[%s4880_s25 + $0x5d0] ss:$8 sps:$4 sm:$0xff]  }
 0x12d   : > { %2852 = vmatprep.subr.bf16.mxu1 %v4226_v26  ;;  %2703 = vmatprep.mubr.bf16.mxu0 %v3646_v27  ;;  %v4287_v25 = vld [vmem:[%s4880_s25 + $0x4b0] ss:$8 sps:$4 sm:$0xff]   ;;  %v4295_v27 = vld [vmem:[%s4880_s25 + $0x4a4] ss:$8 sps:$4 sm:$0xff]  }
 0x12e   : > { %2766 = vmatprep.mubr.bf16.mxu1 %v3648_v28  ;;  %v4290_v26 = vld [vmem:[%s4880_s25 + $0x5b0] ss:$8 sps:$4 sm:$0xff]   ;;  %v4298_v28 = vld [vmem:[%s4880_s25 + $0x5a4] ss:$8 sps:$4 sm:$0xff]  }
 0x12f   : > { %2790 = vmatpush1.bf16.msra.mxu0 %v4221_v29  ;;  %v4293_v29 = vld [vmem:[%s4880_s25 + $0x4a0] ss:$8 sps:$4 sm:$0xff]  }
 0x130   : > { %2853 = vmatpush1.bf16.msra.mxu1 %v4224_v30  ;;  %2791 = vmatprep.subr.bf16.mxu0 %v4229_v31  ;;  %v4296_v30 = vld [vmem:[%s4880_s25 + $0x5a0] ss:$8 sps:$4 sm:$0xff]   ;;  %v4301_v31 = vld [vmem:[%s4880_s25 + $0x494] ss:$8 sps:$4 sm:$0xff]  }
 0x131   : > { %2854 = vmatprep.subr.bf16.mxu1 %v4232_v32  ;;  %v4304_v32 = vld [vmem:[%s4880_s25 + $0x594] ss:$8 sps:$4 sm:$0xff]  }
 0x132   : > { %2704 = vmatmul.mubr.bf16.gmra.mxu0 %v3645_v35  ;;  %v4307_v35 = vld [vmem:[%s4880_s25 + $0x484] ss:$8 sps:$4 sm:$0xff]  }
 0x133   : > { %2767 = vmatmul.mubr.bf16.gmra.mxu1 %v3647_v36  ;;  %2792 = vmatpush1.bf16.msra.mxu0 %v4227_v39  ;;  %v4310_v36 = vld [vmem:[%s4880_s25 + $0x584] ss:$8 sps:$4 sm:$0xff]   ;;  %v4313_v39 = vld [vmem:[%s4880_s25 + $0x674] ss:$8 sps:$4 sm:$0xff]  }
 0x134   : > { %2855 = vmatpush1.bf16.msra.mxu1 %v4230_v40  ;;  %2793 = vmatprep.subr.bf16.mxu0 %v4235_v41  ;;  %v4316_v40 = vld [vmem:[%s4880_s25 + $0x774] ss:$8 sps:$4 sm:$0xff]   ;;  %v731_v41 = vld [vmem:[%s4838_s20 + $0xa0] sm:$0xff] }
 0x135   : > { %2856 = vmatprep.subr.bf16.mxu1 %v4238_v42  ;;  %2713 = vmatprep.mubr.bf16.mxu0 %v3662_v43  ;;  %v3633_v42 = vcombine.low %v5072_v49, %v5075_v50  ;;  %v3635_v43 = vcombine.low %v5078_v51, %v5081_v54  ;;  %v4317_v51 = vld [vmem:[%s4880_s25 + $0x660] ss:$8 sps:$4 sm:$0xff]  }
 0x136   : > { %2776 = vmatprep.mubr.bf16.mxu1 %v3664_v44  ;;  %v739_v44 = vld [vmem:[%s4838_s20 + $0xe0] sm:$0xff] }
 0x137   : > { %2794 = vmatpush1.bf16.msra.mxu0 %v4233_v45  ;;  %v732_v45 = vld [vmem:[%s4838_s20 + $0xa8] sm:$0xff]  ;;  %v3650_v49 = vcombine.high %v731_v41, %v739_v44 }
 0x138   : > { %2857 = vmatpush1.bf16.msra.mxu1 %v4236_v46  ;;  %2795 = vmatprep.subr.bf16.mxu0 %v4241_v47  ;;  %v740_v46 = vld [vmem:[%s4838_s20 + $0xe8] sm:$0xff]  ;;  %v4311_v47 = vld [vmem:[%s4880_s25 + $0x670] ss:$8 sps:$4 sm:$0xff]  }
 0x139   : > { %2858 = vmatprep.subr.bf16.mxu1 %v4244_v48  ;;  %v4314_v48 = vld [vmem:[%s4880_s25 + $0x770] ss:$8 sps:$4 sm:$0xff]   ;;  %v3652_v50 = vcombine.high %v732_v45, %v740_v46  ;;  %v4320_v54 = vld [vmem:[%s4880_s25 + $0x760] ss:$8 sps:$4 sm:$0xff]  }
 0x13a   : > { %2714 = vmatmul.mubr.bf16.gmra.mxu0 %v3661_v52  ;;  %v4319_v52 = vld [vmem:[%s4880_s25 + $0x664] ss:$8 sps:$4 sm:$0xff]  }
 0x13b   : > { %2777 = vmatmul.mubr.bf16.gmra.mxu1 %v3663_v53  ;;  %2796 = vmatpush1.bf16.msra.mxu0 %v4239_v55  ;;  %v4322_v53 = vld [vmem:[%s4880_s25 + $0x764] ss:$8 sps:$4 sm:$0xff]   ;;  %v4325_v55 = vld [vmem:[%s4880_s25 + $0x654] ss:$8 sps:$4 sm:$0xff]  }
 0x13c   : > { %2859 = vmatpush1.bf16.msra.mxu1 %v4242_v56  ;;  %2797 = vmatprep.subr.bf16.mxu0 %v4247_v57  ;;  %v4328_v56 = vld [vmem:[%s4880_s25 + $0x754] ss:$8 sps:$4 sm:$0xff]   ;;  %v747_v57 = vld [vmem:[%s4838_s20 + $0x120] sm:$0xff] }
 0x13d   : > { %2860 = vmatprep.subr.bf16.mxu1 %v4250_v58  ;;  %2819 = vmatprep.mubr.bf16.mxu0 %v3634_v59  ;;  %v3649_v58 = vcombine.low %v731_v41, %v739_v44  ;;  %v3651_v59 = vcombine.low %v732_v45, %v740_v46  ;;  %v4371_v41 = vld [vmem:[%s4880_s25 + $0x6d0] ss:$8 sps:$4 sm:$0xff]   ;;  %v4382_v44 = vld [vmem:[%s4880_s25 + $0x7c4] ss:$8 sps:$4 sm:$0xff]   ;;  %v4377_v45 = vld [vmem:[%s4880_s25 + $0x6c0] ss:$8 sps:$4 sm:$0xff]  }
 0x13e   : > { %2882 = vmatprep.mubr.bf16.mxu1 %v3636_v60  ;;  %v755_v60 = vld [vmem:[%s4838_s20 + $0x160] sm:$0xff] }
 0x13f   : > { %2798 = vmatpush1.bf16.msra.mxu0 %v4245_v61  ;;  %v748_v61 = vld [vmem:[%s4838_s20 + $0x128] sm:$0xff] }
 0x140   : > { %2861 = vmatpush1.bf16.msra.mxu1 %v4248_v62  ;;  %2799 = vmatprep.subr.bf16.mxu0 %v4253_v63  ;;  %v756_v62 = vld [vmem:[%s4838_s20 + $0x168] sm:$0xff]  ;;  %v4323_v63 = vld [vmem:[%s4880_s25 + $0x650] ss:$8 sps:$4 sm:$0xff]  }
 0x141   : > { %2862 = vmatprep.subr.bf16.mxu1 %v4256_v0  ;;  %v4326_v0 = vld [vmem:[%s4880_s25 + $0x750] ss:$8 sps:$4 sm:$0xff]   ;;  %v4380_v46 = vld [vmem:[%s4880_s25 + $0x7c0] ss:$8 sps:$4 sm:$0xff]  }
 0x143   : > { %2800 = vmatpush1.bf16.msra.mxu0 %v4251_v1  ;;  %v4331_v1 = vld [vmem:[%s4880_s25 + $0x644] ss:$8 sps:$4 sm:$0xff]  }
 0x144   : > { %2863 = vmatpush1.bf16.msra.mxu1 %v4254_v2  ;;  %2801 = vmatprep.subr.bf16.mxu0 %v4259_v3  ;;  %v4334_v2 = vld [vmem:[%s4880_s25 + $0x744] ss:$8 sps:$4 sm:$0xff]   ;;  %v3666_v3 = vcombine.high %v747_v57, %v755_v60 }
 0x145   : > { %2864 = vmatprep.subr.bf16.mxu1 %v4262_v4  ;;  %v3668_v4 = vcombine.high %v748_v61, %v756_v62 }
 0x147   : > { %2802 = vmatpush1.bf16.msra.mxu0 %v4257_v5  ;;  %v4329_v5 = vld [vmem:[%s4880_s25 + $0x640] ss:$8 sps:$4 sm:$0xff]  }
 0x148   : > { %2865 = vmatpush1.bf16.msra.mxu1 %v4260_v6  ;;  %2803 = vmatprep.subr.bf16.mxu0 %v4265_v7  ;;  %v4332_v6 = vld [vmem:[%s4880_s25 + $0x740] ss:$8 sps:$4 sm:$0xff]   ;;  %v4337_v7 = vld [vmem:[%s4880_s25 + $0x634] ss:$8 sps:$4 sm:$0xff]  }
 0x149   : > { %2866 = vmatprep.subr.bf16.mxu1 %v4268_v8  ;;  %v4340_v8 = vld [vmem:[%s4880_s25 + $0x734] ss:$8 sps:$4 sm:$0xff]  }
 0x14b   : > { %2804 = vmatpush2.bf16.msra.mxu0 %v4263_v9  ;;  %v5164_v9 = vld [vmem:[%s4838_s20 + $0x30] sm:$0xff] }
 0x14c   : > { %2867 = vmatpush2.bf16.msra.mxu1 %v4266_v10  ;;  %2805 = vmatprep.subr.bf16.mxu0 %v4271_v11  ;;  %v3665_v10 = vcombine.low %v747_v57, %v755_v60  ;;  %v3667_v11 = vcombine.low %v748_v61, %v756_v62  ;;  %v4395_v57 = vld [vmem:[%s4880_s25 + $0x690] ss:$8 sps:$4 sm:$0xff]   ;;  %v4406_v60 = vld [vmem:[%s4880_s25 + $0x784] ss:$8 sps:$4 sm:$0xff]   ;;  %v4401_v61 = vld [vmem:[%s4880_s25 + $0x680] ss:$8 sps:$4 sm:$0xff]  }
 0x14d   : > { %2868 = vmatprep.subr.bf16.mxu1 %v4274_v12  ;;  %v5167_v12 = vld [vmem:[%s4838_s20 + $0x70] sm:$0xff]  ;;  %v4404_v62 = vld [vmem:[%s4880_s25 + $0x780] ss:$8 sps:$4 sm:$0xff]  }
 0x14f   : > { %2806 = vmatpush2.bf16.msra.mxu0 %v4269_v13  ;;  %v5170_v13 = vld [vmem:[%s4838_s20 + $0x38] sm:$0xff] }
 0x150   : > { %2869 = vmatpush2.bf16.msra.mxu1 %v4272_v14  ;;  %2807 = vmatprep.subr.bf16.mxu0 %v4277_v15  ;;  %v5173_v14 = vld [vmem:[%s4838_s20 + $0x78] sm:$0xff] }
 0x151   : > { %2870 = vmatprep.subr.bf16.mxu1 %v4280_v16  ;;  %v4335_v15 = vld [vmem:[%s4880_s25 + $0x630] ss:$8 sps:$4 sm:$0xff]  }
 0x152   : > { %v4338_v16 = vld [vmem:[%s4880_s25 + $0x730] ss:$8 sps:$4 sm:$0xff]  }
 0x153   : > { %2808 = vmatpush2.bf16.msra.mxu0 %v4275_v17  ;;  %v4343_v17 = vld [vmem:[%s4880_s25 + $0x624] ss:$8 sps:$4 sm:$0xff]  }
 0x154   : > { %2871 = vmatpush2.bf16.msra.mxu1 %v4278_v18  ;;  %2809 = vmatprep.subr.bf16.mxu0 %v4283_v19  ;;  %v4346_v18 = vld [vmem:[%s4880_s25 + $0x724] ss:$8 sps:$4 sm:$0xff]   ;;  %v3638_v19 = vcombine.high %v5164_v9, %v5167_v12 }
 0x155   : > { %2872 = vmatprep.subr.bf16.mxu1 %v4286_v20  ;;  %v3640_v20 = vcombine.high %v5170_v13, %v5173_v14 }
 0x157   : > { %2810 = vmatpush2.bf16.msra.mxu0 %v4281_v21  ;;  %v4341_v21 = vld [vmem:[%s4880_s25 + $0x620] ss:$8 sps:$4 sm:$0xff]  }
 0x158   : > { %2873 = vmatpush2.bf16.msra.mxu1 %v4284_v22  ;;  %2811 = vmatprep.subr.bf16.mxu0 %v4289_v23  ;;  %v4344_v22 = vld [vmem:[%s4880_s25 + $0x720] ss:$8 sps:$4 sm:$0xff]   ;;  %v4349_v23 = vld [vmem:[%s4880_s25 + $0x614] ss:$8 sps:$4 sm:$0xff]  }
 0x159   : > { %2874 = vmatprep.subr.bf16.mxu1 %v4292_v24  ;;  %v4352_v24 = vld [vmem:[%s4880_s25 + $0x714] ss:$8 sps:$4 sm:$0xff]  }
 0x15b   : > { %2812 = vmatpush2.bf16.msra.mxu0 %v4287_v25  ;;  %v4347_v25 = vld [vmem:[%s4880_s25 + $0x610] ss:$8 sps:$4 sm:$0xff]  }
 0x15c   : > { %2875 = vmatpush2.bf16.msra.mxu1 %v4290_v26  ;;  %2813 = vmatprep.subr.bf16.mxu0 %v4295_v27  ;;  %v4350_v26 = vld [vmem:[%s4880_s25 + $0x710] ss:$8 sps:$4 sm:$0xff]   ;;  %v4355_v27 = vld [vmem:[%s4880_s25 + $0x604] ss:$8 sps:$4 sm:$0xff]  }
 0x15d   : > { %2876 = vmatprep.subr.bf16.mxu1 %v4298_v28  ;;  %v4358_v28 = vld [vmem:[%s4880_s25 + $0x704] ss:$8 sps:$4 sm:$0xff]  }
 0x15f   : > { %2814 = vmatpush2.bf16.msra.mxu0 %v4293_v29  ;;  %v4353_v29 = vld [vmem:[%s4880_s25 + $0x600] ss:$8 sps:$4 sm:$0xff]  }
 0x160   : > { %2877 = vmatpush2.bf16.msra.mxu1 %v4296_v30  ;;  %2815 = vmatprep.subr.bf16.mxu0 %v4301_v31  ;;  %v4356_v30 = vld [vmem:[%s4880_s25 + $0x700] ss:$8 sps:$4 sm:$0xff]   ;;  %v4361_v31 = vld [vmem:[%s4880_s25 + $0x6f4] ss:$8 sps:$4 sm:$0xff]  }
 0x161   : > { %2878 = vmatprep.subr.bf16.mxu1 %v4304_v32  ;;  %v4364_v32 = vld [vmem:[%s4880_s25 + $0x7f4] ss:$8 sps:$4 sm:$0xff]  }
 0x163   : > { %2816 = vmatpush2.bf16.msra.mxu0 %v4299_v33  ;;  %v4359_v33 = vld [vmem:[%s4880_s25 + $0x6f0] ss:$8 sps:$4 sm:$0xff]  }
 0x164   : > { %2879 = vmatpush2.bf16.msra.mxu1 %v4302_v34  ;;  %2817 = vmatprep.subr.bf16.mxu0 %v4307_v35  ;;  %v4362_v34 = vld [vmem:[%s4880_s25 + $0x7f0] ss:$8 sps:$4 sm:$0xff]   ;;  %v4367_v35 = vld [vmem:[%s4880_s25 + $0x6e4] ss:$8 sps:$4 sm:$0xff]  }
 0x165   : > { %2880 = vmatprep.subr.bf16.mxu1 %v4310_v36  ;;  %v4370_v36 = vld [vmem:[%s4880_s25 + $0x7e4] ss:$8 sps:$4 sm:$0xff]  }
 0x167   : > { %2818 = vmatpush2.bf16.msra.mxu0 %v4305_v37  ;;  %v4365_v37 = vld [vmem:[%s4880_s25 + $0x6e0] ss:$8 sps:$4 sm:$0xff]  }
 0x168   : > { %2881 = vmatpush2.bf16.msra.mxu1 %v4308_v38  ;;  %2913 = vmatprep.subr.bf16.mxu0 %v4313_v39  ;;  %v4368_v38 = vld [vmem:[%s4880_s25 + $0x7e0] ss:$8 sps:$4 sm:$0xff]   ;;  %v4373_v39 = vld [vmem:[%s4880_s25 + $0x6d4] ss:$8 sps:$4 sm:$0xff]  }
 0x169   : > { %2976 = vmatprep.subr.bf16.mxu1 %v4316_v40  ;;  %v4376_v40 = vld [vmem:[%s4880_s25 + $0x7d4] ss:$8 sps:$4 sm:$0xff]  }
 0x16a   : > { %2820 = vmatmul.mubr.bf16.vlgmr.msra.gmra.mxu0 %v3633_v42  ;;  %v4374_v42 = vld [vmem:[%s4880_s25 + $0x7d0] ss:$8 sps:$4 sm:$0xff]  }
 0x16b   : > { %2883 = vmatmul.mubr.bf16.vlgmr.msra.gmra.mxu1 %v3635_v43  ;;  %2914 = vmatpush1.bf16.msra.mxu0 %v4311_v47  ;;  %v4379_v43 = vld [vmem:[%s4880_s25 + $0x6c4] ss:$8 sps:$4 sm:$0xff]   ;;  %v4385_v47 = vld [vmem:[%s4880_s25 + $0x6b4] ss:$8 sps:$4 sm:$0xff]  }
 0x16c   : > { %2977 = vmatpush1.bf16.msra.mxu1 %v4314_v48  ;;  %2915 = vmatprep.subr.bf16.mxu0 %v4319_v52  ;;  %v4388_v48 = vld [vmem:[%s4880_s25 + $0x7b4] ss:$8 sps:$4 sm:$0xff]   ;;  %v4383_v52 = vld [vmem:[%s4880_s25 + $0x6b0] ss:$8 sps:$4 sm:$0xff]  }
 0x16d   : > { %2978 = vmatprep.subr.bf16.mxu1 %v4322_v53  ;;  %2829 = vmatprep.mubr.bf16.mxu0 %v3650_v49  ;;  %v4386_v53 = vld [vmem:[%s4880_s25 + $0x7b0] ss:$8 sps:$4 sm:$0xff]   ;;  %v4391_v49 = vld [vmem:[%s4880_s25 + $0x6a4] ss:$8 sps:$4 sm:$0xff]  }
 0x16e   : > { %2892 = vmatprep.mubr.bf16.mxu1 %v3652_v50  ;;  %v4394_v50 = vld [vmem:[%s4880_s25 + $0x7a4] ss:$8 sps:$4 sm:$0xff]  }
 0x16f   : > { %2916 = vmatpush1.bf16.msra.mxu0 %v4317_v51  ;;  %v4389_v51 = vld [vmem:[%s4880_s25 + $0x6a0] ss:$8 sps:$4 sm:$0xff]  }
 0x170   : > { %2979 = vmatpush1.bf16.msra.mxu1 %v4320_v54  ;;  %2917 = vmatprep.subr.bf16.mxu0 %v4325_v55  ;;  %v4392_v54 = vld [vmem:[%s4880_s25 + $0x7a0] ss:$8 sps:$4 sm:$0xff]   ;;  %v4397_v55 = vld [vmem:[%s4880_s25 + $0x694] ss:$8 sps:$4 sm:$0xff]  }
 0x171   : > { %2980 = vmatprep.subr.bf16.mxu1 %v4328_v56  ;;  %v4400_v56 = vld [vmem:[%s4880_s25 + $0x794] ss:$8 sps:$4 sm:$0xff]  }
 0x172   : > { %2830 = vmatmul.mubr.bf16.gmra.mxu0 %v3649_v58  ;;  %v4398_v58 = vld [vmem:[%s4880_s25 + $0x790] ss:$8 sps:$4 sm:$0xff]  }
 0x173   : > { %2893 = vmatmul.mubr.bf16.gmra.mxu1 %v3651_v59  ;;  %2918 = vmatpush1.bf16.msra.mxu0 %v4323_v63  ;;  %v4403_v59 = vld [vmem:[%s4880_s25 + $0x684] ss:$8 sps:$4 sm:$0xff]   ;;  %v733_v63 = vld [vmem:[%s4838_s20 + $0xb0] sm:$0xff] }
 0x174   : > { %2981 = vmatpush1.bf16.msra.mxu1 %v4326_v0  ;;  %2919 = vmatprep.subr.bf16.mxu0 %v4331_v1  ;;  %v741_v0 = vld [vmem:[%s4838_s20 + $0xf0] sm:$0xff]  ;;  %v734_v1 = vld [vmem:[%s4838_s20 + $0xb8] sm:$0xff] }
 0x175   : > { %2982 = vmatprep.subr.bf16.mxu1 %v4334_v2  ;;  %2839 = vmatprep.mubr.bf16.mxu0 %v3666_v3  ;;  %v742_v2 = vld [vmem:[%s4838_s20 + $0xf8] sm:$0xff]  ;;  %v3637_v3 = vcombine.low %v5164_v9, %v5167_v12 }
 0x176   : > { %2902 = vmatprep.mubr.bf16.mxu1 %v3668_v4  ;;  %v3639_v4 = vcombine.low %v5170_v13, %v5173_v14 }
 0x177   : > { %2920 = vmatpush1.bf16.msra.mxu0 %v4329_v5  ;;  %v3654_v5 = vcombine.high %v733_v63, %v741_v0 }
 0x178   : > { %2983 = vmatpush1.bf16.msra.mxu1 %v4332_v6  ;;  %2921 = vmatprep.subr.bf16.mxu0 %v4337_v7  ;;  %v3656_v6 = vcombine.high %v734_v1, %v742_v2  ;;  %v749_v7 = vld [vmem:[%s4838_s20 + $0x130] sm:$0xff] }
 0x179   : > { %2984 = vmatprep.subr.bf16.mxu1 %v4340_v8  ;;  %v757_v8 = vld [vmem:[%s4838_s20 + $0x170] sm:$0xff] }
 0x17a   : > { %2840 = vmatmul.mubr.bf16.gmra.mxu0 %v3665_v10  ;;  %v750_v10 = vld [vmem:[%s4838_s20 + $0x138] sm:$0xff]  ;;  %v3669_v9 = vcombine.low %v749_v7, %v757_v8 }
 0x17b   : > { %2903 = vmatmul.mubr.bf16.gmra.mxu1 %v3667_v11  ;;  %2922 = vmatpush1.bf16.msra.mxu0 %v4335_v15  ;;  %v758_v11 = vld [vmem:[%s4838_s20 + $0x178] sm:$0xff]  ;;  %v3653_v15 = vcombine.low %v733_v63, %v741_v0 }
 0x17c   : > { %2985 = vmatpush1.bf16.msra.mxu1 %v4338_v16  ;;  %2923 = vmatprep.subr.bf16.mxu0 %v4343_v17  ;;  %v3655_v16 = vcombine.low %v734_v1, %v742_v2  ;;  %v3670_v17 = vcombine.high %v749_v7, %v757_v8  ;;  %v3671_v12 = vcombine.low %v750_v10, %v758_v11 }
 0x17d   : > { %2986 = vmatprep.subr.bf16.mxu1 %v4346_v18  ;;  %2945 = vmatprep.mubr.bf16.mxu0 %v3638_v19  ;;  %v3672_v18 = vcombine.high %v750_v10, %v758_v11 }
 0x17e   : > { %3008 = vmatprep.mubr.bf16.mxu1 %v3640_v20 }
 0x17f   : > { %2924 = vmatpush1.bf16.msra.mxu0 %v4341_v21 }
 0x180   : > { %2987 = vmatpush1.bf16.msra.mxu1 %v4344_v22  ;;  %2925 = vmatprep.subr.bf16.mxu0 %v4349_v23 }
 0x181   : > { %2988 = vmatprep.subr.bf16.mxu1 %v4352_v24 }
 0x183   : > { %2926 = vmatpush1.bf16.msra.mxu0 %v4347_v25 }
 0x184   : > { %2989 = vmatpush1.bf16.msra.mxu1 %v4350_v26  ;;  %2927 = vmatprep.subr.bf16.mxu0 %v4355_v27 }
 0x185   : > { %2990 = vmatprep.subr.bf16.mxu1 %v4358_v28 }
 0x187   : > { %2928 = vmatpush1.bf16.msra.mxu0 %v4353_v29 }
 0x188   : > { %2991 = vmatpush1.bf16.msra.mxu1 %v4356_v30  ;;  %2929 = vmatprep.subr.bf16.mxu0 %v4361_v31 }
 0x189   : > { %2992 = vmatprep.subr.bf16.mxu1 %v4364_v32 }
 0x18b   : > { %2930 = vmatpush2.bf16.msra.mxu0 %v4359_v33 }
 0x18c   : > { %2993 = vmatpush2.bf16.msra.mxu1 %v4362_v34  ;;  %2931 = vmatprep.subr.bf16.mxu0 %v4367_v35 }
 0x18d   : > { %2994 = vmatprep.subr.bf16.mxu1 %v4370_v36 }
 0x18f   : > { %2932 = vmatpush2.bf16.msra.mxu0 %v4365_v37 }
 0x190   : > { %2995 = vmatpush2.bf16.msra.mxu1 %v4368_v38  ;;  %2933 = vmatprep.subr.bf16.mxu0 %v4373_v39 }
 0x191   : > { %2996 = vmatprep.subr.bf16.mxu1 %v4376_v40 }
 0x193   : > { %2934 = vmatpush2.bf16.msra.mxu0 %v4371_v41 }
 0x194   : > { %2997 = vmatpush2.bf16.msra.mxu1 %v4374_v42  ;;  %2935 = vmatprep.subr.bf16.mxu0 %v4379_v43 }
 0x195   : > { %2998 = vmatprep.subr.bf16.mxu1 %v4382_v44 }
 0x197   : > { %2936 = vmatpush2.bf16.msra.mxu0 %v4377_v45 }
 0x198   : > { %2999 = vmatpush2.bf16.msra.mxu1 %v4380_v46  ;;  %2937 = vmatprep.subr.bf16.mxu0 %v4385_v47 }
 0x199   : > { %3000 = vmatprep.subr.bf16.mxu1 %v4388_v48 }
 0x19b   : > { %2938 = vmatpush2.bf16.msra.mxu0 %v4383_v52 }
 0x19c   : > { %3001 = vmatpush2.bf16.msra.mxu1 %v4386_v53  ;;  %2939 = vmatprep.subr.bf16.mxu0 %v4391_v49 }
 0x19d   : > { %3002 = vmatprep.subr.bf16.mxu1 %v4394_v50 }
 0x19f   : > { %2940 = vmatpush2.bf16.msra.mxu0 %v4389_v51 }
 0x1a0   : > { %3003 = vmatpush2.bf16.msra.mxu1 %v4392_v54  ;;  %2941 = vmatprep.subr.bf16.mxu0 %v4397_v55 }
 0x1a1   : > { %3004 = vmatprep.subr.bf16.mxu1 %v4400_v56 }
 0x1a3   : > { %2942 = vmatpush2.bf16.msra.mxu0 %v4395_v57 }
 0x1a4   : > { %3005 = vmatpush2.bf16.msra.mxu1 %v4398_v58  ;;  %2943 = vmatprep.subr.bf16.mxu0 %v4403_v59 }
 0x1a5   : > { %3006 = vmatprep.subr.bf16.mxu1 %v4406_v60 }
 0x1a7   : > { %2944 = vmatpush2.bf16.msra.mxu0 %v4401_v61 }
 0x1a8   : > { %3007 = vmatpush2.bf16.msra.mxu1 %v4404_v62 }
 0x1aa   : > { %2946 = vmatmul.mubr.bf16.vlgmr.msra.gmra.mxu0 %v3637_v3  ;;  %v5237_v13 = vpop.f32.mrf.mxu0 }
 0x1ab   : > { %3009 = vmatmul.mubr.bf16.vlgmr.msra.gmra.mxu1 %v3639_v4  ;;  %2955 = vmatprep.mubr.bf16.mxu0 %v3654_v5  ;;  %v5239_v14 = vpop.f32.mrf.mxu1 }
 0x1ac   : > { %3018 = vmatprep.mubr.bf16.mxu1 %v3656_v6  ;;  %v5241_v19 = vpop.f32.mrf.mxu0 }
 0x1ad   : > { %v5243_v20 = vpop.f32.mrf.mxu1 }
 0x1ae   : > { %v5245_v21 = vpop.f32.mrf.mxu0 }
 0x1af   : > { %v5247_v22 = vpop.f32.mrf.mxu1 }
 0x1b0   : > { %v5249_v23 = vpop.f32.mrf.mxu0 }
 0x1b1   : > { %v5253_v25 = vpop.f32.mrf.mxu1 }
 0x1b2   : > { %2956 = vmatmul.mubr.bf16.gmra.mxu0 %v3653_v15  ;;  %v5251_v24 = vpop.f32.mrf.mxu0 }
 0x1b3   : > { %3019 = vmatmul.mubr.bf16.gmra.mxu1 %v3655_v16  ;;  %2965 = vmatprep.mubr.bf16.mxu0 %v3670_v17  ;;  %v5255_v26 = vpop.f32.mrf.mxu1 }
 0x1b4   : > { %3028 = vmatprep.mubr.bf16.mxu1 %v3672_v18  ;;  %v5257_v27 = vpop.f32.mrf.mxu0 }
 0x1b5   : > { %v5259_v28 = vpop.f32.mrf.mxu1 }
 0x1b6   : > { %v5261_v29 = vpop.f32.mrf.mxu0 }
 0x1b7   : > { %v5263_v30 = vpop.f32.mrf.mxu1 }
 0x1b8   : > { %v5265_v31 = vpop.f32.mrf.mxu0 }
 0x1b9   : > { %v5267_v32 = vpop.f32.mrf.mxu1 }
 0x1ba   : > { %2966 = vmatmul.mubr.bf16.gmra.mxu0 %v3669_v9  ;;  %v5269_v33 = vpop.f32.mrf.mxu0 }
 0x1bb   : > { %3029 = vmatmul.mubr.bf16.gmra.mxu1 %v3671_v12  ;;  %v5271_v34 = vpop.f32.mrf.mxu1 }
 0x1bc   : > { %v5273_v35 = vpop.f32.mrf.mxu0 }
 0x1bd   : > { %v5275_v36 = vpop.f32.mrf.mxu1 }
 0x1be   : > { %v5277_v37 = vpop.f32.mrf.mxu0 }
 0x1bf   : > { %v5279_v38 = vpop.f32.mrf.mxu1 }
 0x1c0   : > { %v5281_v39 = vpop.f32.mrf.mxu0 }
 0x1c1   : > { %v5283_v41 = vpop.f32.mrf.mxu1 }
 0x1ea   : > { %v2695_v40 = vpop.f32.mrf.mxu0 }
 0x1eb   : > { %v2758_v42 = vpop.f32.mrf.mxu1 }
 0x1ec   : > { %v2697_v43 = vpop.f32.mrf.mxu0 }
 0x1ed   : > { %v2760_v44 = vpop.f32.mrf.mxu1 }
 0x1ee   : > { %v2699_v45 = vpop.f32.mrf.mxu0 }
 0x1ef   : > { %v2762_v46 = vpop.f32.mrf.mxu1 }
 0x1f0   : > { %v2701_v47 = vpop.f32.mrf.mxu0 }
 0x1f1   : > { %v2764_v48 = vpop.f32.mrf.mxu1 }
 0x1f2   : > { %v2705_v52 = vpop.f32.mrf.mxu0 }
 0x1f3   : > { %v2768_v53 = vpop.f32.mrf.mxu1 }
 0x1f4   : > { %v2707_v49 = vpop.f32.mrf.mxu0 }
 0x1f5   : > { %v5285_v50 = vpop.f32.mrf.mxu1 }
 0x1f6   : > { %v2709_v51 = vpop.f32.mrf.mxu0 }
 0x1f7   : > { %v5287_v54 = vpop.f32.mrf.mxu1 }
 0x1f8   : > { %v5289_v55 = vpop.f32.mrf.mxu0 }
 0x1f9   : > { %v5291_v56 = vpop.f32.mrf.mxu1 }
 0x1fa   : > { %v5293_v57 = vpop.f32.mrf.mxu0 }
 0x1fb   : > { %v5295_v58 = vpop.f32.mrf.mxu1 }
 0x1fc   : > { %5586 = vst [vmem:[#allocation20_spill] sm:$0xff] %v5295_v58  ;;  %v5297_v59 = vpop.f32.mrf.mxu0 }
 0x1fd   : > { %v5299_v60 = vpop.f32.mrf.mxu1 }
 0x1fe   : > { %5587 = vst [vmem:[#allocation21_spill] sm:$0xff] %v5299_v60  ;;  %v5301_v61 = vpop.f32.mrf.mxu0  ;;  %v2635_v60 = vadd.f32 %v5243_v20, %v5241_v19 }
 0x1ff   : > { %5588 = vst [vmem:[#allocation22_spill] sm:$0xff] %v5301_v61  ;;  %v5303_v62 = vpop.f32.mrf.mxu1 }
 0x200   : > { %5589 = vst [vmem:[#allocation23_spill] sm:$0xff] %v5303_v62  ;;  %v5305_v63 = vpop.f32.mrf.mxu0 }
 0x201   : > { %5590 = vst [vmem:[#allocation24_spill] sm:$0xff] %v5305_v63  ;;  %v5307_v0 = vpop.f32.mrf.mxu1  ;;  %v2633_v63 = vadd.f32 %v5239_v14, %v5237_v13  ;;  %v2643_v13 = vadd.f32 %v5255_v26, %v5251_v24 }
 0x202   : > { %5591 = vst [vmem:[#allocation25_spill] sm:$0xff] %v5307_v0 }
 0x203   : > { %v2696_v61 = vadd.f32 %v2695_v40, %v2633_v63 }
 0x22a   : > { %v2821_v1 = vpop.f32.mrf.mxu0 }
 0x22b   : > { %v2884_v2 = vpop.f32.mrf.mxu1 }
 0x22c   : > { %v2823_v3 = vpop.f32.mrf.mxu0 }
 0x22d   : > { %v2886_v4 = vpop.f32.mrf.mxu1 }
 0x22e   : > { %v2825_v5 = vpop.f32.mrf.mxu0 }
 0x22f   : > { %v2888_v6 = vpop.f32.mrf.mxu1 }
 0x230   : > { %v2827_v7 = vpop.f32.mrf.mxu0 }
 0x231   : > { %v5309_v8 = vpop.f32.mrf.mxu1 }
 0x232   : > { %v2831_v10 = vpop.f32.mrf.mxu0 }
 0x233   : > { %v5311_v11 = vpop.f32.mrf.mxu1 }
 0x234   : > { %v2833_v15 = vpop.f32.mrf.mxu0 }
 0x235   : > { %v5313_v16 = vpop.f32.mrf.mxu1 }
 0x236   : > { %5592 = vst [vmem:[#allocation26_spill] sm:$0xff] %v5313_v16  ;;  %v5315_v17 = vpop.f32.mrf.mxu0 }
 0x237   : > { %v5317_v18 = vpop.f32.mrf.mxu1 }
 0x238   : > { %5593 = vst [vmem:[#allocation27_spill] sm:$0xff] %v5317_v18  ;;  %v5319_v9 = vpop.f32.mrf.mxu0  ;;  %v2637_v18 = vadd.f32 %v5247_v22, %v5245_v21  ;;  %v2706_v21 = vadd.f32 %v2705_v52, %v2643_v13 }
 0x239   : > { %5594 = vst [vmem:[#allocation28_spill] sm:$0xff] %v5319_v9  ;;  %v5321_v12 = vpop.f32.mrf.mxu1  ;;  %v2698_v9 = vadd.f32 %v2697_v43, %v2635_v60 }
 0x23a   : > { %5595 = vst [vmem:[#allocation29_spill] sm:$0xff] %v5321_v12  ;;  %v5323_v0 = vpop.f32.mrf.mxu0  ;;  %v2639_v12 = vadd.f32 %v5253_v25, %v5249_v23  ;;  %v2647_v23 = vadd.f32 %v5263_v30, %v5261_v29  ;;  %v2653_v29 = vadd.f32 %v5271_v34, %v5269_v33  ;;  %v700_v33 = vld [vmem:[#allocation2] sm:$0xff] }
 0x23b   : > { %5596 = vst [vmem:[#allocation30_spill] sm:$0xff] %v5323_v0  ;;  %v5325_v62 = vpop.f32.mrf.mxu1  ;;  %v2759_v0 = vadd.f32 %v2758_v42, %v2696_v61  ;;  %v2761_v20 = vadd.f32 %v2760_v44, %v2698_v9  ;;  %v2649_v44 = vadd.f32 %v5267_v32, %v5265_v31 }
 0x23c   : > { %5597 = vst [vmem:[#allocation31_spill] sm:$0xff] %v5325_v62  ;;  %v5331_v16 = vpop.f32.mrf.mxu0  ;;  %v2700_v62 = vadd.f32 %v2699_v45, %v2637_v18  ;;  %v2702_v40 = vadd.f32 %v2701_v47, %v2639_v12  ;;  %v2769_v47 = vadd.f32 %v2768_v53, %v2706_v21  ;;  %v2710_v61 = vadd.f32 %v2709_v51, %v2647_v23  ;;  %v702_v21 = vld [vmem:[#allocation2 + $0x18] sm:$0xff] }
 0x23d   : > { %v5333_v58 = vpop.f32.mrf.mxu1  ;;  %v2822_v63 = vadd.f32 %v2821_v1, %v2759_v0  ;;  %v2824_v43 = vadd.f32 %v2823_v3, %v2761_v20  ;;  %v2655_v53 = vadd.f32 %v5275_v36, %v5273_v35  ;;  %v2716_v3 = vadd.f32 %v5293_v57, %v2653_v29 }
 0x23e   : > { %5598 = vst [vmem:[#allocation32_spill] sm:$0xff] %v5333_v58  ;;  %v5341_v14 = vpop.f32.mrf.mxu0  ;;  %v2645_v58 = vadd.f32 %v5259_v28, %v5257_v27  ;;  %v2763_v22 = vadd.f32 %v2762_v46, %v2700_v62  ;;  %v2765_v26 = vadd.f32 %v2764_v48, %v2702_v40  ;;  %v2832_v48 = vadd.f32 %v2831_v10, %v2769_v47  ;;  %v5599_v40 = vld [vmem:[#allocation20_spill] sm:$0xff] }
 0x23f   : > { %v5343_v19 = vpop.f32.mrf.mxu1  ;;  %v2885_v45 = vadd.f32 %v2884_v2, %v2822_v63  ;;  %v2887_v46 = vadd.f32 %v2886_v4, %v2824_v43  ;;  %v2773_v51 = vadd.f32 %v5287_v54, %v2710_v61  ;;  %v2718_v35 = vadd.f32 %v5297_v59, %v2655_v53  ;;  %v701_v54 = vld [vmem:[#allocation2 + $0x58] sm:$0xff]  ;;  %v5601_v63 = vld [vmem:[#allocation26_spill] sm:$0xff] }
 0x240   : > { %v2708_v25 = vadd.f32 %v2707_v49, %v2645_v58  ;;  %v5349_v42 = vpop.f32.mrf.mxu0  ;;  %v2826_v60 = vadd.f32 %v2825_v5, %v2763_v22  ;;  %v2828_v52 = vadd.f32 %v2827_v7, %v2765_v26  ;;  %v2712_v49 = vadd.f32 %v5289_v55, %v2649_v44  ;;  %v699_v58 = vld [vmem:[#allocation2 + $0x30] sm:$0xff]  ;;  %v5602_v43 = vld [vmem:[#allocation28_spill] sm:$0xff] }
 0x241   : > { %v5351_v24 = vpop.f32.mrf.mxu1  ;;  %v2895_v36 = vadd.f32 %v5311_v11, %v2832_v48  ;;  %v2836_v9 = vadd.f32 %v5315_v17, %v2773_v51  ;;  %v2659_v20 = vadd.f32 %v5283_v41, %v5281_v39  ;;  %v5604_v44 = vld [vmem:[#allocation24_spill] sm:$0xff]  ;;  %v703_v61 = vld [vmem:[#allocation2 + $0x50] sm:$0xff] }
 0x242   : > { %v2771_v30 = vadd.f32 %v5285_v50, %v2708_v25  ;;  %v2889_v2 = vadd.f32 %v2888_v6, %v2826_v60  ;;  %v2891_v55 = vadd.f32 %v5309_v8, %v2828_v52  ;;  %v2657_v6 = vadd.f32 %v5279_v38, %v5277_v37  ;;  %v5600_v38 = vld [vmem:[#allocation22_spill] sm:$0xff] }
 0x243   : > { %v2775_v18 = vadd.f32 %v5291_v56, %v2712_v49  ;;  %v2779_v37 = vadd.f32 %v5599_v40, %v2716_v3  ;;  %v2722_v47 = vadd.f32 %v5604_v44, %v2659_v20  ;;  %v5605_v39 = vld [vmem:[#allocation30_spill] sm:$0xff]  ;;  %v5607_v49 = vld [vmem:[#allocation23_spill] sm:$0xff]  ;;  %v707_v20 = vld [vmem:[#allocation2 + $0x28] sm:$0xff] }
 0x244   : > { %v2834_v4 = vadd.f32 %v2833_v15, %v2771_v30  ;;  %v2720_v56 = vadd.f32 %v5600_v38, %v2657_v6 }
 0x245   : > { %v2838_v23 = vadd.f32 %v5602_v43, %v2775_v18  ;;  %v2842_v41 = vadd.f32 %v5605_v39, %v2779_v37 }
 0x246   : > { %v2897_v59 = vadd.f32 %v5601_v63, %v2834_v4  ;;  %v2783_v48 = vadd.f32 %v5607_v49, %v2720_v56  ;;  %v5609_v4 = vld [vmem:[#allocation25_spill] sm:$0xff] }
 0x26a   : > { %v2947_v27 = vpop.f32.mrf.mxu0 }
 0x26b   : > { %v3010_v28 = vpop.f32.mrf.mxu1  ;;  %v2948_v62 = vadd.f32 %v2947_v27, %v2885_v45  ;;  %v5603_v45 = vld [vmem:[#allocation21_spill] sm:$0xff] }
 0x26c   : > { %v2949_v0 = vpop.f32.mrf.mxu0  ;;  %v2781_v60 = vadd.f32 %v5603_v45, %v2718_v35  ;;  %v5611_v35 = vld [vmem:[#allocation32_spill] sm:$0xff] }
 0x26d   : > { %v3012_v1 = vpop.f32.mrf.mxu1  ;;  %v3011_v31 = vadd.f32 %v3010_v28, %v2948_v62  ;;  %v2950_v32 = vadd.f32 %v2949_v0, %v2887_v46  ;;  %v5606_v46 = vld [vmem:[#allocation27_spill] sm:$0xff]  ;;  %v704_v0 = vld [vmem:[#allocation2 + $0x20] sm:$0xff] }
 0x26e   : > { %v2951_v34 = vpop.f32.mrf.mxu0  ;;  %v2899_v52 = vadd.f32 %v5606_v46, %v2836_v9 }
 0x26f   : > { %v3014_v50 = vpop.f32.mrf.mxu1  ;;  %v3039_v5 = vadd.f32 %v3011_v31, %v699_v58  ;;  %v3013_v7 = vadd.f32 %v3012_v1, %v2950_v32  ;;  %v2952_v10 = vadd.f32 %v2951_v34, %v2889_v2  ;;  %v2844_v58 = vadd.f32 %v5331_v16, %v2781_v60  ;;  %v5608_v31 = vld [vmem:[#allocation29_spill] sm:$0xff]  ;;  %v5610_v34 = vld [vmem:[#allocation31_spill] sm:$0xff] }
 0x270   : > { %v2953_v57 = vpop.f32.mrf.mxu0  ;;  %v2901_v32 = vadd.f32 %v5608_v31, %v2838_v23 }
 0x271   : > { %v3016_v15 = vpop.f32.mrf.mxu1  ;;  %3051 = vst [vmem:[#allocation2 + $0x30] sm:$0xff] %v3039_v5  ;;  %v3040_v12 = vadd.f32 %v3013_v7, %v700_v33  ;;  %v3015_v8 = vadd.f32 %v3014_v50, %v2952_v10  ;;  %v2954_v13 = vadd.f32 %v2953_v57, %v2891_v55  ;;  %v2785_v33 = vadd.f32 %v5609_v4, %v2722_v47  ;;  %v705_v55 = vld [vmem:[#allocation2 + $0x8] sm:$0xff] }
 0x272   : > { %v2957_v11 = vpop.f32.mrf.mxu0  ;;  %v2905_v50 = vadd.f32 %v5610_v34, %v2842_v41  ;;  %v2846_v10 = vadd.f32 %v5341_v14, %v2783_v48 }
 0x273   : > { %v3020_v22 = vpop.f32.mrf.mxu1  ;;  %3052 = vst [vmem:[#allocation2] sm:$0xff] %v3040_v12  ;;  %v3041_v17 = vadd.f32 %v3015_v8, %v701_v54  ;;  %v3017_v25 = vadd.f32 %v3016_v15, %v2954_v13  ;;  %v2958_v26 = vadd.f32 %v2957_v11, %v2895_v36  ;;  %v2907_v36 = vadd.f32 %v5611_v35, %v2844_v58  ;;  %v706_v54 = vld [vmem:[#allocation2 + $0x38] sm:$0xff] }
 0x274   : > { %v2959_v27 = vpop.f32.mrf.mxu0  ;;  %v2848_v9 = vadd.f32 %v5349_v42, %v2785_v33  ;;  %v2909_v14 = vadd.f32 %v5343_v19, %v2846_v10  ;;  %v710_v19 = vld [vmem:[#allocation2 + $0x40] sm:$0xff] }
 0x275   : > { %v3022_v28 = vpop.f32.mrf.mxu1  ;;  %3053 = vst [vmem:[#allocation2 + $0x58] sm:$0xff] %v3041_v17  ;;  %v3042_v62 = vadd.f32 %v3017_v25, %v702_v21  ;;  %v3021_v29 = vadd.f32 %v3020_v22, %v2958_v26  ;;  %v2960_v30 = vadd.f32 %v2959_v27, %v2897_v59  ;;  %v708_v59 = vld [vmem:[#allocation2 + $0x48] sm:$0xff]  ;;  %v709_v17 = vld [vmem:[#allocation2 + $0x10] sm:$0xff] }
 0x276   : > { %v2961_v1 = vpop.f32.mrf.mxu0  ;;  %v2911_v22 = vadd.f32 %v5351_v24, %v2848_v9 }
 0x277   : > { %v3024_v2 = vpop.f32.mrf.mxu1  ;;  %3054 = vst [vmem:[#allocation2 + $0x18] sm:$0xff] %v3042_v62  ;;  %v3043_v53 = vadd.f32 %v3021_v29, %v703_v61  ;;  %v3023_v51 = vadd.f32 %v3022_v28, %v2960_v30  ;;  %v2962_v3 = vadd.f32 %v2961_v1, %v2899_v52 }
 0x278   : > { %v2963_v5 = vpop.f32.mrf.mxu0 }
 0x279   : > { %v3026_v7 = vpop.f32.mrf.mxu1  ;;  %3055 = vst [vmem:[#allocation2 + $0x50] sm:$0xff] %v3043_v53  ;;  %v3044_v16 = vadd.f32 %v3023_v51, %v704_v0  ;;  %v3025_v6 = vadd.f32 %v3024_v2, %v2962_v3  ;;  %v2964_v18 = vadd.f32 %v2963_v5, %v2901_v32 }
 0x27a   : > { %v2967_v57 = vpop.f32.mrf.mxu0 }
 0x27b   : > { %v3030_v15 = vpop.f32.mrf.mxu1  ;;  %3056 = vst [vmem:[#allocation2 + $0x20] sm:$0xff] %v3044_v16  ;;  %v3045_v12 = vadd.f32 %v3025_v6, %v705_v55  ;;  %v3027_v8 = vadd.f32 %v3026_v7, %v2964_v18  ;;  %v2968_v13 = vadd.f32 %v2967_v57, %v2905_v50 }
 0x27c   : > { %v2969_v40 = vpop.f32.mrf.mxu0 }
 0x27d   : > { %v3032_v37 = vpop.f32.mrf.mxu1  ;;  %3057 = vst [vmem:[#allocation2 + $0x8] sm:$0xff] %v3045_v12  ;;  %v3046_v38 = vadd.f32 %v3027_v8, %v706_v54  ;;  %v3031_v56 = vadd.f32 %v3030_v15, %v2968_v13  ;;  %v2970_v63 = vadd.f32 %v2969_v40, %v2907_v36 }
 0x27e   : > { %v2971_v21 = vpop.f32.mrf.mxu0 }
 0x27f   : > { %v3034_v11 = vpop.f32.mrf.mxu1  ;;  %3058 = vst [vmem:[#allocation2 + $0x38] sm:$0xff] %v3046_v38  ;;  %v3047_v42 = vadd.f32 %v3031_v56, %v707_v20  ;;  %v3033_v43 = vadd.f32 %v3032_v37, %v2970_v63  ;;  %v2972_v23 = vadd.f32 %v2971_v21, %v2909_v14 }
 0x280   : > { %v2973_v25 = vpop.f32.mrf.mxu0 }
 0x281   : > { %3059 = vst [vmem:[#allocation2 + $0x28] sm:$0xff] %v3047_v42  ;;  %v3048_v26 = vadd.f32 %v3033_v43, %v708_v59  ;;  %v3035_v45 = vadd.f32 %v3034_v11, %v2972_v23  ;;  %v2974_v60 = vadd.f32 %v2973_v25, %v2911_v22  ;;  %v3036_v44 = vpop.f32.mrf.mxu1 }
 0x283   : > { %3060 = vst [vmem:[#allocation2 + $0x48] sm:$0xff] %v3048_v26  ;;  %v3049_v47 = vadd.f32 %v3035_v45, %v709_v17  ;;  %v3037_v39 = vadd.f32 %v3036_v44, %v2974_v60 }
 0x285   : > { %3061 = vst [vmem:[#allocation2 + $0x10] sm:$0xff] %v3049_v47  ;;  %v3050_v41 = vadd.f32 %v3037_v39, %v710_v19 }
 0x287   : > { %3062 = vst [vmem:[#allocation2 + $0x40] sm:$0xff] %v3050_v41 }
 0x288 PF: > { %s3929_s29 = sadd.s32 4294967295, %s4845_s15 }
 0x289   : > { %p3930_p9 = scmp.ne.s32.totalorder %s4515_s27, %s3929_s29 }
 0x28a   : > { %s5612_s13 = scalar_lea.vmem (!%p3930_p9), %s5549_s6, %s4847_s23  ;;  %s3104_s14 = sld [smem:[#allocation6 + %s4519_s28]] (!%p3930_p9) }
 0x28b   : > { %3067 = sbr.rel (%p3930_p9) target bundleno = 1076 (0x434), region = 99  ;;  %s5613_s19 = scalar_lea.vmem (!%p3930_p9), %s5550_s7, %s4847_s23 }
 0x290   : > { %v3144_v24 = vld [vmem:[%s4864_s4 + $0x10] sm:$0xff]  ;;  %v3142_v61 = vld [vmem:[%s4864_s4] sm:$0xff]  ;;  %v4538_v27 = vmov 0   ;;  %v3145_v28 = vld [vmem:[%s4864_s4 + $0x18] sm:$0xff]  ;;  %v4539_v29 = vmov 0.0   ;;  %v3082_v30 = vlaneseq  ;;  %v3117_v50 = vstv %s3104_s14 }
 0x291   : > { %4408 = vset.pattern.permute.xlu1 %v4538_v27  ;;  %4407 = vset.pattern.permute.xlu0 %v4538_v27  ;;  %v3143_v46 = vld [vmem:[%s4864_s4 + $0x8] sm:$0xff]  ;;  %v3146_v62 = vld [vmem:[%s4864_s4 + $0x20] sm:$0xff]  ;;  %v3068_v31 = vld [vmem:[#allocation2 + $0x30] sm:$0xff]  ;;  %vm3341_vm12 = vcmask 392192  }
 0x292   : > { %3161 = vperm.xlu1 %4408, %v3144_v24   ;;  %3151 = vperm.xlu0 %4407, %v3142_v61   ;;  %v3147_v52 = vld [vmem:[%s4864_s4 + $0x28] sm:$0xff]  ;;  %v3083_v49 = vshrl.u32 %v3082_v30, 7  ;;  %v3080_v0 = vld [vmem:[%s5612_s13] sm:$0x3]  ;;  %v3070_v53 = vld [vmem:[#allocation2 + $0x58] sm:$0xff]  ;;  %s3148_s4 = sld [smem:[#allocation8 + %s4519_s28]] }
 0x293   : > { %3409 = vmatprep.mubr.f32.mxu0 %v4539_v29  ;;  %v3069_v32 = vld [vmem:[#allocation2] sm:$0xff]  ;;  %v3071_v51 = vld [vmem:[#allocation2 + $0x18] sm:$0xff]  ;;  %v3072_v3 = vld [vmem:[#allocation2 + $0x50] sm:$0xff] }
 0x294   : > { %v5398_v48 = vsub.s32 0, %v3083_v49  ;;  %v5400_v58 = vsub.s32 1, %v3083_v49  ;;  %v3073_v4 = vld [vmem:[#allocation2 + $0x20] sm:$0xff]  ;;  %v3074_v55 = vld [vmem:[#allocation2 + $0x8] sm:$0xff]  ;;  %v3075_v5 = vld [vmem:[#allocation2 + $0x38] sm:$0xff] }
 0x295   : > { %v3076_v57 = vld [vmem:[#allocation2 + $0x28] sm:$0xff]  ;;  %v3078_v37 = vld [vmem:[#allocation2 + $0x10] sm:$0xff]  ;;  %v3079_v14 = vld [vmem:[#allocation2 + $0x40] sm:$0xff] }
 0x296   : > { %3166 = vperm.xlu1 %4408, %v3145_v28   ;;  %3156 = vperm.xlu0 %4407, %v3143_v46   ;;  %v3085_v1 = vrot.slane %v3080_v0, %v5398_v48  ;;  %v3089_v2 = vrot.slane %v3080_v0, %v5400_v58  ;;  %v3077_v15 = vld [vmem:[#allocation2 + $0x48] sm:$0xff] }
 0x298   : > { %v3092_v33 = vadd.f32 %v3085_v1, %v3068_v31  ;;  %v3093_v34 = vadd.f32 %v3089_v2, %v3069_v32  ;;  %v3094_v7 = vadd.f32 %v3085_v1, %v3070_v53  ;;  %v3095_v10 = vadd.f32 %v3089_v2, %v3071_v51 }
 0x299   : > { %v3096_v16 = vadd.f32 %v3085_v1, %v3072_v3  ;;  %v3097_v6 = vadd.f32 %v3089_v2, %v3073_v4  ;;  %v3098_v36 = vadd.f32 %v3085_v1, %v3074_v55  ;;  %v3099_v54 = vadd.f32 %v3089_v2, %v3075_v5 }
 0x29a   : > { %3176 = vperm.xlu1 %4408, %v3147_v52   ;;  %3171 = vperm.xlu0 %4407, %v3146_v62   ;;  %v3118_v18 = vmul.f32 %v3117_v50, %v3092_v33  ;;  %v3119_v35 = vmul.f32 %v3117_v50, %v3093_v34  ;;  %vm3105_vm0 = vcmp.ge.f32.partialorder %v3092_v33, 0.0  ;;  %vm3106_vm1 = vcmp.ge.f32.partialorder %v3093_v34, 0.0 }
 0x29b   : > { %v3120_v9 = vmul.f32 %v3117_v50, %v3094_v7  ;;  %v3121_v12 = vmul.f32 %v3117_v50, %v3095_v10  ;;  %vm3107_vm2 = vcmp.ge.f32.partialorder %v3094_v7, 0.0  ;;  %vm3108_vm3 = vcmp.ge.f32.partialorder %v3095_v10, 0.0 }
 0x29c   : > { %v3122_v13 = vmul.f32 %v3117_v50, %v3096_v16  ;;  %v3123_v20 = vmul.f32 %v3117_v50, %v3097_v6  ;;  %v3100_v38 = vadd.f32 %v3085_v1, %v3076_v57  ;;  %v3101_v56 = vadd.f32 %v3089_v2, %v3077_v15 }
 0x29d   : > { %vm3109_vm4 = vcmp.ge.f32.partialorder %v3096_v16, 0.0  ;;  %vm3110_vm5 = vcmp.ge.f32.partialorder %v3097_v6, 0.0  ;;  %v5415_v63 = vsel %vm3105_vm0, %v3092_v33, %v3118_v18  ;;  %v5418_v59 = vsel %vm3106_vm1, %v3093_v34, %v3119_v35 }
 0x29e   : > { %v3124_v21 = vmul.f32 %v3117_v50, %v3098_v36  ;;  %v3125_v11 = vmul.f32 %v3117_v50, %v3099_v54  ;;  %v5421_v22 = vsel %vm3107_vm2, %v3094_v7, %v3120_v9  ;;  %v5424_v42 = vsel %vm3108_vm3, %v3095_v10, %v3121_v12 }
 0x29f   : > { %vm3111_vm6 = vcmp.ge.f32.partialorder %v3098_v36, 0.0  ;;  %vm3112_vm7 = vcmp.ge.f32.partialorder %v3099_v54, 0.0  ;;  %v3102_v43 = vadd.f32 %v3085_v1, %v3078_v37  ;;  %v3103_v23 = vadd.f32 %v3089_v2, %v3079_v14 }
 0x2a0   : > { %v3134_v17 = vsel %vm3109_vm4, %v3096_v16, %v3122_v13  ;;  %v3135_v25 = vsel %vm3110_vm5, %v3097_v6, %v3123_v20  ;;  %v3126_v45 = vmul.f32 %v3117_v50, %v3100_v38  ;;  %v3127_v60 = vmul.f32 %v3117_v50, %v3101_v56 }
 0x2a1   : > { %v3136_v24 = vsel %vm3111_vm6, %v3098_v36, %v3124_v21  ;;  %v3137_v61 = vsel %vm3112_vm7, %v3099_v54, %v3125_v11  ;;  %vm3113_vm8 = vcmp.ge.f32.partialorder %v3100_v38, 0.0  ;;  %vm3114_vm9 = vcmp.ge.f32.partialorder %v3101_v56, 0.0 }
 0x2a2   : > { %v3128_v46 = vmul.f32 %v3117_v50, %v3102_v43  ;;  %v3129_v52 = vmul.f32 %v3117_v50, %v3103_v23  ;;  %vm3115_vm10 = vcmp.ge.f32.partialorder %v3102_v43, 0.0  ;;  %vm3116_vm11 = vcmp.ge.f32.partialorder %v3103_v23, 0.0 }
 0x2a3   : > { %v3138_v49 = vsel %vm3113_vm8, %v3100_v38, %v3126_v45  ;;  %v3139_v0 = vsel %vm3114_vm9, %v3101_v56, %v3127_v60  ;;  %v5447_v37 = vstv %s3148_s4 }
 0x2a4   : > { %v3140_v51 = vsel %vm3115_vm10, %v3102_v43, %v3128_v46  ;;  %v3141_v3 = vsel %vm3116_vm11, %v3103_v23, %v3129_v52 }
 0x30d   : > { %v5410_v8 = vpop.permute.xlu1 %3161  ;;  %v5412_v40 = vpop.permute.xlu0 %3151 }
 0x30e   : > { %v3179_v19 = vmul.f32 %v5412_v40, %v5415_v63  ;;  %v3180_v44 = vmul.f32 %v5412_v40, %v5418_v59  ;;  %v3183_v62 = vmul.f32 %v5410_v8, %v3134_v17  ;;  %v3184_v29 = vmul.f32 %v5410_v8, %v3135_v25 }
 0x311   : > { %v5426_v26 = vpop.permute.xlu0 %3156  ;;  %v5432_v47 = vpop.permute.xlu1 %3166 }
 0x312   : > { %v3181_v39 = vmul.f32 %v5426_v26, %v5421_v22  ;;  %v3182_v41 = vmul.f32 %v5426_v26, %v5424_v42  ;;  %v3185_v1 = vmul.f32 %v5432_v47, %v3136_v24  ;;  %v3186_v2 = vmul.f32 %v5432_v47, %v3137_v61 }
 0x314   : > { %v3191_v27 = vadd.f32 %v3181_v39, %v3179_v19  ;;  %v3202_v28 = vadd.f32 %v3182_v41, %v3180_v44 }
 0x315   : > { %v3172_v30 = vpop.permute.xlu0 %3171  ;;  %v5442_v53 = vpop.permute.xlu1 %3176 }
 0x316   : > { %v3192_v31 = vadd.f32 %v3191_v27, %v3183_v62  ;;  %v3203_v32 = vadd.f32 %v3202_v28, %v3184_v29  ;;  %v3187_v4 = vmul.f32 %v3172_v30, %v3138_v49  ;;  %v3188_v33 = vmul.f32 %v3172_v30, %v3139_v0 }
 0x317   : > { %v3189_v55 = vmul.f32 %v5442_v53, %v3140_v51  ;;  %v3190_v5 = vmul.f32 %v5442_v53, %v3141_v3 }
 0x318   : > { %v3193_v34 = vadd.f32 %v3192_v31, %v3185_v1  ;;  %v3204_v50 = vadd.f32 %v3203_v32, %v3186_v2 }
 0x31a   : > { %v3194_v7 = vadd.f32 %v3193_v34, %v3187_v4  ;;  %v3205_v10 = vadd.f32 %v3204_v50, %v3188_v33 }
 0x31c   : > { %v3195_v16 = vadd.f32 %v3194_v7, %v3189_v55  ;;  %v3206_v6 = vadd.f32 %v3205_v10, %v3190_v5 }
 0x31e   : > { %v3196_v18 = vrot.slane %v3195_v16, 4  ;;  %v3207_v35 = vrot.slane %v3206_v6, 4 }
 0x320   : > { %v3197_v36 = vadd.f32 %v3196_v18, %v3195_v16  ;;  %v3208_v54 = vadd.f32 %v3207_v35, %v3206_v6 }
 0x322   : > { %v3198_v57 = vrot.slane %v3197_v36, 2  ;;  %v3209_v15 = vrot.slane %v3208_v54, 2 }
 0x324   : > { %v3199_v9 = vadd.f32 %v3198_v57, %v3197_v36  ;;  %v3210_v12 = vadd.f32 %v3209_v15, %v3208_v54 }
 0x326   : > { %v3200_v13 = vrot.slane %v3199_v9, 1  ;;  %v3211_v20 = vrot.slane %v3210_v12, 1 }
 0x328   : > { %v3201_v14 = vadd.f32 %v3200_v13, %v3199_v9  ;;  %v3212_v38 = vadd.f32 %v3211_v20, %v3210_v12 }
 0x32a   : > { %v3214_v56 = vmul.f32 %v5447_v37, %v3201_v14  ;;  %v3215_v21 = vmul.f32 %v5447_v37, %v3212_v38 }
 0x32c   : > { %v5452_v11 = vsub.f32 %v5415_v63, %v3214_v56  ;;  %v5455_v43 = vsub.f32 %v5418_v59, %v3215_v21  ;;  %v5458_v23 = vsub.f32 %v5421_v22, %v3214_v56  ;;  %v5461_v45 = vsub.f32 %v5424_v42, %v3215_v21 }
 0x32d   : > { %v5463_v60 = vsub.f32 %v3134_v17, %v3214_v56  ;;  %v5465_v19 = vsub.f32 %v3135_v25, %v3215_v21  ;;  %v5467_v44 = vsub.f32 %v3136_v24, %v3214_v56  ;;  %v5469_v39 = vsub.f32 %v3137_v61, %v3215_v21 }
 0x32e   : > { %v3224_v41 = vsub.f32 %v3138_v49, %v3214_v56  ;;  %v5471_v63 = vsub.f32 %v3139_v0, %v3215_v21  ;;  %v3228_v59 = vmul.f32 %v5452_v11, %v5412_v40  ;;  %v3229_v22 = vmul.f32 %v5455_v43, %v5412_v40 }
 0x32f   : > { %v3230_v42 = vmul.f32 %v5458_v23, %v5426_v26  ;;  %v3231_v17 = vmul.f32 %v5461_v45, %v5426_v26  ;;  %v3232_v25 = vmul.f32 %v5463_v60, %v5410_v8  ;;  %v3233_v24 = vmul.f32 %v5465_v19, %v5410_v8 }
 0x330   : > { %v3226_v61 = vsub.f32 %v3140_v51, %v3214_v56  ;;  %v3234_v27 = vmul.f32 %v5467_v44, %v5432_v47  ;;  %v3240_v28 = vmul.f32 %v3228_v59, %v3228_v59  ;;  %v3241_v46 = vmul.f32 %v3229_v22, %v3229_v22  ;;  %v3292_v22 = vld [vmem:[%s5613_s19] sm:$0x3] }
 0x331   : > { %v3235_v40 = vmul.f32 %v5469_v39, %v5432_v47  ;;  %v3242_v52 = vmul.f32 %v3230_v42, %v3230_v42  ;;  %v3243_v62 = vmul.f32 %v3231_v17, %v3231_v17  ;;  %v3236_v29 = vmul.f32 %v3224_v41, %v3172_v30  ;;  %v3316_v42 = vld [vmem:[%s663_s22] sm:$0x3] }
 0x332   : > { %v3237_v26 = vmul.f32 %v5471_v63, %v3172_v30  ;;  %v3244_v49 = vmul.f32 %v3232_v25, %v3232_v25  ;;  %v3245_v0 = vmul.f32 %v3233_v24, %v3233_v24  ;;  %v3227_v31 = vsub.f32 %v3141_v3, %v3215_v21 }
 0x333   : > { %v3252_v1 = vadd.f32 %v3242_v52, %v3240_v28  ;;  %v3263_v2 = vadd.f32 %v3243_v62, %v3241_v46  ;;  %v3238_v8 = vmul.f32 %v3226_v61, %v5442_v53  ;;  %v3246_v32 = vmul.f32 %v3234_v27, %v3234_v27 }
 0x334   : > { %v3247_v51 = vmul.f32 %v3235_v40, %v3235_v40  ;;  %v3239_v34 = vmul.f32 %v3227_v31, %v5442_v53  ;;  %v3248_v50 = vmul.f32 %v3236_v29, %v3236_v29  ;;  %v3249_v47 = vmul.f32 %v3237_v26, %v3237_v26 }
 0x335   : > { %v3253_v4 = vadd.f32 %v3252_v1, %v3244_v49  ;;  %v3264_v33 = vadd.f32 %v3263_v2, %v3245_v0  ;;  %v3250_v7 = vmul.f32 %v3238_v8, %v3238_v8  ;;  %v3297_v17 = vrot.slane %v3292_v22, %v5398_v48 }
 0x336   : > { %v3251_v16 = vmul.f32 %v3239_v34, %v3239_v34  ;;  %v3301_v24 = vrot.slane %v3292_v22, %v5400_v58  ;;  %v3321_v46 = vrot.slane %v3316_v42, %v5398_v48  ;;  %v3325_v52 = vrot.slane %v3316_v42, %v5400_v58 }
 0x337   : > { %v3254_v55 = vadd.f32 %v3253_v4, %v3246_v32  ;;  %v3265_v5 = vadd.f32 %v3264_v33, %v3247_v51 }
 0x339   : > { %v3255_v10 = vadd.f32 %v3254_v55, %v3248_v50  ;;  %v3266_v30 = vadd.f32 %v3265_v5, %v3249_v47 }
 0x33b   : > { %v3256_v6 = vadd.f32 %v3255_v10, %v3250_v7  ;;  %v3267_v18 = vadd.f32 %v3266_v30, %v3251_v16  ;;  %v3340_v30 = vld [vmem:[%s672_s26] sm:$0x3] }
 0x33d   : > { %v3257_v35 = vrot.slane %v3256_v6, 4  ;;  %v3268_v3 = vrot.slane %v3267_v18, 4 }
 0x33f   : > { %v3258_v36 = vadd.f32 %v3257_v35, %v3256_v6  ;;  %v3269_v54 = vadd.f32 %v3268_v3, %v3267_v18 }
 0x341   : > { %v3259_v57 = vrot.slane %v3258_v36, 2  ;;  %v3270_v15 = vrot.slane %v3269_v54, 2 }
 0x343   : > { %v3260_v9 = vadd.f32 %v3259_v57, %v3258_v36  ;;  %v3271_v53 = vadd.f32 %v3270_v15, %v3269_v54 }
 0x345   : > { %v3261_v12 = vrot.slane %v3260_v9, 1  ;;  %v3272_v13 = vrot.slane %v3271_v53, 1 }
 0x347   : > { %v3262_v20 = vadd.f32 %v3261_v12, %v3260_v9  ;;  %v3273_v14 = vadd.f32 %v3272_v13, %v3271_v53 }
 0x349   : > { %v3274_v38 = vmul.f32 %v3262_v20, %v5447_v37  ;;  %v3275_v56 = vmul.f32 %v3273_v14, %v5447_v37 }
 0x34b   : > { %v3276_v21 = vadd.f32 1e-05, %v3274_v38  ;;  %v3277_v59 = vadd.f32 1e-05, %v3275_v56 }
 0x34d   : > { %4409 = vrsqrt.f32 %v3276_v21 }
 0x34e   : > { %4411 = vrsqrt.f32 %v3277_v59 }
 0x35a   : > { %v4410_v25 = vpop.eup %4409 }
 0x35b   : > { %v4412_v37 = vpop.eup %4411  ;;  %v3288_v27 = vmul.f32 %v4410_v25, %v3224_v41  ;;  %v3290_v28 = vmul.f32 %v4410_v25, %v3226_v61  ;;  %v3286_v49 = vmul.f32 %v4410_v25, %v5467_v44  ;;  %v3284_v41 = vmul.f32 %v4410_v25, %v5463_v60 }
 0x35c   : > { %v3291_v40 = vmul.f32 %v4412_v37, %v3227_v31  ;;  %v3289_v62 = vmul.f32 %v4412_v37, %v5471_v63  ;;  %v3287_v29 = vmul.f32 %v4412_v37, %v5469_v39  ;;  %v3285_v2 = vmul.f32 %v4412_v37, %v5465_v19 }
 0x35d   : > { %v3314_v26 = vmul.f32 %v3297_v17, %v3290_v28  ;;  %v3312_v32 = vmul.f32 %v3297_v17, %v3288_v27  ;;  %v3310_v31 = vmul.f32 %v3297_v17, %v3286_v49  ;;  %v3283_v58 = vmul.f32 %v4412_v37, %v5461_v45 }
 0x35e   : > { %v3315_v0 = vmul.f32 %v3301_v24, %v3291_v40  ;;  %v3313_v1 = vmul.f32 %v3301_v24, %v3289_v62  ;;  %v3311_v48 = vmul.f32 %v3301_v24, %v3287_v29  ;;  %v3282_v63 = vmul.f32 %v4410_v25, %v5458_v23 }
 0x35f   : > { %v3338_v8 = vadd.f32 %v3321_v46, %v3314_v26  ;;  %v3309_v51 = vmul.f32 %v3301_v24, %v3285_v2  ;;  %v3281_v44 = vmul.f32 %v4412_v37, %v5455_v43  ;;  %v3336_v4 = vadd.f32 %v3321_v46, %v3312_v32 }
 0x360   : > { %v3339_v61 = vadd.f32 %v3325_v52, %v3315_v0  ;;  %v3337_v39 = vadd.f32 %v3325_v52, %v3313_v1  ;;  %v3308_v33 = vmul.f32 %v3297_v17, %v3284_v41  ;;  %v3280_v19 = vmul.f32 %v4410_v25, %v5452_v11 }
 0x361   : > { %v3335_v34 = vadd.f32 %v3325_v52, %v3311_v48  ;;  %v3307_v60 = vmul.f32 %v3301_v24, %v3283_v58  ;;  %v3334_v50 = vadd.f32 %v3321_v46, %v3310_v31  ;;  %v3306_v47 = vmul.f32 %v3297_v17, %v3282_v63 }
 0x362   : > { %3365 = vmatprep.subr.mxu0 %v3339_v61  ;;  %v3333_v45 = vadd.f32 %v3325_v52, %v3309_v51  ;;  %v3305_v23 = vmul.f32 %v3301_v24, %v3281_v44  ;;  %v3332_v55 = vadd.f32 %v3321_v46, %v3308_v33  ;;  %v3304_v5 = vmul.f32 %v3297_v17, %v3280_v19 }
 0x363   : > { %3366 = vmatpush1.msra.mxu0 %v3338_v8  ;;  %v3331_v43 = vadd.f32 %v3325_v52, %v3307_v60  ;;  %v3330_v7 = vadd.f32 %v3321_v46, %v3306_v47 }
 0x364   : > { %3367 = vmatprep.subr.mxu0 %v3337_v39  ;;  %v3329_v11 = vadd.f32 %v3325_v52, %v3305_v23  ;;  %v3328_v10 = vadd.f32 %v3321_v46, %v3304_v5 }
 0x365   : > { %3368 = vmatpush1.msra.mxu0 %v3336_v4 }
 0x366   : > { %3369 = vmatprep.subr.mxu0 %v3335_v34 }
 0x367   : > { %3370 = vmatpush1.msra.mxu0 %v3334_v50 }
 0x368   : > { %3371 = vmatprep.subr.mxu0 %v3333_v45 }
 0x369   : > { %3372 = vmatpush1.msra.mxu0 %v3332_v55 }
 0x36a   : > { %3373 = vmatprep.subr.mxu0 %v3331_v43 }
 0x36b   : > { %3374 = vmatpush1.msra.mxu0 %v3330_v7 }
 0x36c   : > { %3375 = vmatprep.subr.mxu0 %v3329_v11 }
 0x36d   : > { %3376 = vmatpush1.msra.mxu0 %v3328_v10 }
 0x36e   : > { %3931 = vmatmul.mubr.msk.f32.vlgmr.msra.gmra.mxu0 %vm3341_vm12, %v3340_v30 }
 0x42e   : > { %v3411_v16 = vpop.f32.mrf.mxu0 }
 0x430   : > { %v3413_v6 = vpop.f32.mrf.mxu0 }
 0x431   : > { %v3418_v18 = vcombine.low %v3411_v16, %v3413_v6 }
 0x433   : > { %3932 = vst.sshfl [vmem:[%s4874_s10] sm:$0x33 pattern:$0x76325410] %v3418_v18 }
 0x434 PF: > { %s33_s12 = sadd.s32 1, %s4531_s12   ;;  %s5615_s1 = sld [smem:[#allocation14_spill]] }
 0x435   : > { %p30_p11 = scmp.ge.s32.totalorder %s33_s12, 34   ;;  %s5616_s26 = sld [smem:[#allocation19_spill]] }
 0x436   : > { %s5617_s27 = sld [smem:[#allocation15_spill]] }
 0x437   : > { %s5618_s28 = sld [smem:[#allocation16_spill]]  ;;  %32 = sbr.rel (!%p30_p11) target bundleno = 33 (0x21), region = 153 }
 0x438   : > { %s5619_s29 = sld [smem:[#allocation17_spill]] }
 0x439   : > { %s5620_s30 = sld [smem:[#allocation18_spill]] }
 0x43c   :  { %3449 = vsyncpa [#allocation7], 1 }
 0x43d   :  { %3451 = vsyncpa [#allocation7 + $0x1], 1 }
 0x43e   :  { %3452 = vsyncpa [#allocation9], 1 }

</bundles_post_ra>
